<compile_context>
chip_gen: v7x
topology: tpu7x:2x2x1
jax: 0.10.0
libtpu: 0.0.40
codegen_flags: <defaults>
</compile_context>

<pallas_src>
import functools

import jax
import jax.numpy as jnp
from jax import lax
from jax.experimental import pallas as pl
from jax.experimental.pallas import tpu as pltpu

N_INPUTS = 2       # n_inputs
N_HIDDEN = 10      # n_hidden1 (even, required by sp)
N_OUTPUTS = 10     # n_outputs

H_PAD = 16                 # pad each 10x10 matrix to 16x16 (exact: exp -> block_diag(exp(M), I))
PACK = 8                   # 8 matrices of 16x16 per 128x128 block-diagonal MXU operand
PACK_DIM = PACK * H_PAD    # 128
FC_OUT_PAD = 128           # lane-dense fused-FC output row (extra cols are exact zeros)

EXP_SCALE_POW = 4          # scaling & squaring: exp(M) = exp(M/2^s)^(2^s)
EXP_TAYLOR_K = 8           # Horner/Taylor order for the scaled exponential
# TODO(synk): torch.matrix_exp uses adaptive Pade; fixed scaling-&-squaring Taylor here
# (over-accurate for the small-norm Lie-algebra matrices this layer produces).


def _eye(n, dtype):
    r = lax.broadcasted_iota(jnp.int32, (n, n), 0)
    c = lax.broadcasted_iota(jnp.int32, (n, n), 1)
    return (r == c).astype(dtype)


def dev_fc_kernel(dxcol_ref, a_bd_ref, w3_ref, b_ref, out_ref):
    """Fused path-development + FC for one batch element.

    dxcol_ref: (1, N_INPUTS, G, 128, 1)  dx[b, 8g + r//16, i] replicated down each 16-row block
    a_bd_ref:  (N_INPUTS, 128, 128)      A_i block-diagonally replicated 8x (zero-padded 10->16)
    w3_ref:    (16, 16, 128)             FC weight, w3[r, c, o] = W[r*10 + c, o] (zero-padded)
    b_ref:     (1, 128)                  FC bias (zero-padded)
    out_ref:   (1, 1, 128)               fused FC output row (lane-dense)
    """
    num_groups = dxcol_ref.shape[2]
    eye = _eye(PACK_DIM, jnp.float32)
    a_bd = [a_bd_ref[i] for i in range(N_INPUTS)]

    # 1. Build packed Lie-algebra matrices: M_g = block_diag(M_{8g}, ..., M_{8g+7}).
    #    (128,1) column * (128,128) block-diag generator -> pure VPU lane-broadcast multiplies.
    m_packs = []
    for g in range(num_groups):
        m = dxcol_ref[0, 0, g] * a_bd[0]
        for i in range(1, N_INPUTS):
            m = m + dxcol_ref[0, i, g] * a_bd[i]
        m_packs.append(m)

    # 2. Packed matrix exponential (scaling & squaring + Horner Taylor); the G independent
    #    chains are advanced level-by-level so the MXU always has independent work in flight.
    inv_scale = 1.0 / float(1 << EXP_SCALE_POW)
    ms = [m * inv_scale for m in m_packs]
    rs = [eye for _ in range(num_groups)]
    for k in range(EXP_TAYLOR_K, 0, -1):
        rs = [
            eye + jnp.dot(ms[g], rs[g], preferred_element_type=jnp.float32) * (1.0 / k)
            for g in range(num_groups)
        ]
    for _ in range(EXP_SCALE_POW):
        rs = [jnp.dot(r, r, preferred_element_type=jnp.float32) for r in rs]

    # 3. Extract the 16x16 diagonal blocks (exp(M_t), time-ordered) and combine them with a
    #    log-depth tree product: Z = E_0 @ E_1 @ ... @ E_{T-1}.
    mats = []
    for g in range(num_groups):
        for j in range(PACK):
            lo = j * H_PAD
            mats.append(rs[g][lo:lo + H_PAD, lo:lo + H_PAD])
    while len(mats) > 1:
        nxt = [
            jnp.dot(mats[2 * i], mats[2 * i + 1], preferred_element_type=jnp.float32)
            for i in range(len(mats) // 2)
        ]
        if len(mats) % 2:
            nxt.append(mats[-1])
        mats = nxt
    z = mats[0]  # (16, 16); top-left 10x10 is the development, rest is exact identity/zero

    # 4. Fused FC: out = flatten(Z[:10, :10]) @ W + b  (row-wise contraction, zero-padded W3
    #    makes the padded rows/cols exact no-ops). Lane-dense (1, 128) store.
    acc = b_ref[...]
    for r in range(N_HIDDEN):
        acc = acc + jnp.dot(z[r:r + 1, :], w3_ref[r], preferred_element_type=jnp.float32)
    out_ref[0] = acc


def dev_fc(dxcol, a_bd, w3, b_row):
    batch = dxcol.shape[0]
    num_groups = dxcol.shape[2]
    return pl.pallas_call(
        dev_fc_kernel,
        out_shape=jax.ShapeDtypeStruct((batch, 1, FC_OUT_PAD), jnp.float32),
        grid=(batch,),
        in_specs=[
            pl.BlockSpec((1, N_INPUTS, num_groups, PACK_DIM, 1),
                         lambda b: (b, 0, 0, 0, 0)),
            pl.BlockSpec((N_INPUTS, PACK_DIM, PACK_DIM), lambda b: (0, 0, 0)),
            pl.BlockSpec((H_PAD, H_PAD, FC_OUT_PAD), lambda b: (0, 0, 0)),
            pl.BlockSpec((1, FC_OUT_PAD), lambda b: (0, 0)),
        ],
        out_specs=pl.BlockSpec((1, 1, FC_OUT_PAD), lambda b: (b, 0, 0)),
        compiler_params=pltpu.CompilerParams(dimension_semantics=("parallel",)),
    )(dxcol, a_bd, w3, b_row)


def init_params(key):
    """Deterministic synthetic parameters matching the module's shapes."""
    k1, k2, k3 = jax.random.split(key, 3)

    # development_layer projection weights, parametrized into sp(n)
    # (Hamiltonian matrices: M^T J + J M = 0).
    a_raw = 0.2 * jax.random.normal(k1, (N_INPUTS, N_HIDDEN, N_HIDDEN), jnp.float32)
    n = N_HIDDEN // 2
    j_mat = jnp.block(
        [[jnp.zeros((n, n)), jnp.eye(n)], [-jnp.eye(n), jnp.zeros((n, n))]]
    ).astype(jnp.float32)

    def hamiltonian_proj(x):
        return 0.5 * (x + j_mat @ x.T @ j_mat)

    a = jax.vmap(hamiltonian_proj)(a_raw)                       # (N_INPUTS, 10, 10)
    a16 = (jnp.zeros((N_INPUTS, H_PAD, H_PAD), jnp.float32)
           .at[:, :N_HIDDEN, :N_HIDDEN].set(a))
    # Block-diagonally replicate each generator PACK times -> (N_INPUTS, 128, 128).
    a_bd = jnp.zeros((N_INPUTS, PACK_DIM, PACK_DIM), jnp.float32)
    for j in range(PACK):
        a_bd = a_bd.at[:, j * H_PAD:(j + 1) * H_PAD, j * H_PAD:(j + 1) * H_PAD].set(a16)

    # nn.Linear(n_hidden1 * n_hidden1, n_outputs).
    # TODO(synk): torch stores weight as (out, in); transpose if loading real PyTorch weights.
    fan_in = N_HIDDEN * N_HIDDEN
    bound = 1.0 / jnp.sqrt(jnp.float32(fan_in))
    w = jax.random.uniform(k2, (fan_in, N_OUTPUTS), jnp.float32, -bound, bound)
    b = jax.random.uniform(k3, (N_OUTPUTS,), jnp.float32, -bound, bound)
    # w3[r, c, o] = W[r*10 + c, o] (row-major flatten), zero-padded to (16, 16, 128).
    w3 = (jnp.zeros((H_PAD, H_PAD, FC_OUT_PAD), jnp.float32)
          .at[:N_HIDDEN, :N_HIDDEN, :N_OUTPUTS]
          .set(w.reshape(N_HIDDEN, N_HIDDEN, N_OUTPUTS)))
    b_row = jnp.zeros((1, FC_OUT_PAD), jnp.float32).at[0, :N_OUTPUTS].set(b)
    return {"a_bd": a_bd, "w3": w3, "b_row": b_row}


@functools.partial(jax.jit)
def development_model_forward(x, a_bd, w3, b_row):
    # x: (B, T, N_INPUTS)
    batch, seq_len, _ = x.shape
    n_steps = seq_len - 1
    num_groups = max(1, -(-n_steps // PACK))          # ceil(n_steps / 8)
    t_pad = num_groups * PACK

    dx = x[:, 1:, :] - x[:, :-1, :]                   # path increments (glue)
    dx = jnp.pad(dx, ((0, 0), (0, t_pad - n_steps), (0, 0)))   # zero steps -> exp(0)=I, exact
    # dxcol[b, i, g, r, 0] = dx[b, 8g + r//16, i]  (each increment replicated over its 16-row
    # diagonal block so the kernel builds block_diag(M_t) with pure broadcast multiplies).
    dxcol = jnp.repeat(dx, H_PAD, axis=1)                         # (B, t_pad*16, N_INPUTS)
    dxcol = dxcol.reshape(batch, num_groups, PACK_DIM, N_INPUTS)  # (B, G, 128, N_INPUTS)
    dxcol = dxcol.transpose(0, 3, 1, 2)[..., None]                # (B, N_INPUTS, G, 128, 1)

    out_pad = dev_fc(dxcol, a_bd, w3, b_row)          # fused development + flatten + FC
    out = out_pad[:, 0, :N_OUTPUTS]
    return out.reshape(-1, N_OUTPUTS)                 # out.view(-1, n_outputs)


if __name__ == "__main__":
    key = jax.random.PRNGKey(0)
    pkey, xkey = jax.random.split(key)
    params = init_params(pkey)

    BATCH, SEQ_LEN = 2, 17          # 16 increments -> 2 packed groups of 8 per batch element
    x = jax.random.normal(xkey, (BATCH, SEQ_LEN, N_INPUTS), jnp.float32)

    out = development_model_forward(x, params["a_bd"], params["w3"], params["b_row"])
    jax.block_until_ready(out)
    assert out.shape == (BATCH, N_OUTPUTS) and out.dtype == jnp.float32
    assert bool(jnp.all(jnp.isfinite(out)))
    print("KERNEL_OK")
</pallas_src>

<mosaic_0001>
module attributes {stable_mosaic.version = 11 : i64} {
  func.func @dev_fc_kernel(%arg0: i32, %arg1: memref<1x2x2x128x1xf32, #tpu.memory_space<vmem>>, %arg2: memref<2x128x128xf32, #tpu.memory_space<vmem>>, %arg3: memref<16x16x128xf32, #tpu.memory_space<vmem>>, %arg4: memref<1x128xf32, #tpu.memory_space<vmem>>, %arg5: memref<1x1x128xf32, #tpu.memory_space<vmem>>) attributes {dimension_semantics = [#tpu.dimension_semantics<parallel>], iteration_bounds = array<i64: 2>, scalar_prefetch = 0 : i64, scratch_operands = 0 : i64, tpu.core_type = #tpu.core_type<tc>, window_params = [{transform_indices = @transform_0, window_bounds = array<i64: 1, 2, 2, 128, 1>}, {pipeline_mode = #tpu.pipeline_mode<synchronous>, transform_indices = @transform_1, window_bounds = array<i64: 2, 128, 128>}, {pipeline_mode = #tpu.pipeline_mode<synchronous>, transform_indices = @transform_2, window_bounds = array<i64: 16, 16, 128>}, {pipeline_mode = #tpu.pipeline_mode<synchronous>, transform_indices = @transform_3, window_bounds = array<i64: 1, 128>}, {transform_indices = @transform_4, window_bounds = array<i64: 1, 1, 128>}]} {
    %0 = tpu.iota {dimensions = array<i32: 0>} : vector<128x128xi32>
    %1 = tpu.iota {dimensions = array<i32: 1>} : vector<128x128xi32>
    %2 = arith.cmpi eq, %0, %1 : vector<128x128xi32>
    %3 = arith.extui %2 : vector<128x128xi1> to vector<128x128xi32>
    %4 = arith.sitofp %3 : vector<128x128xi32> to vector<128x128xf32>
    %c0 = arith.constant 0 : index
    %c0_0 = arith.constant 0 : index
    %c0_1 = arith.constant 0 : index
    %5 = vector.load %arg2[%c0, %c0_0, %c0_1] : memref<2x128x128xf32, #tpu.memory_space<vmem>>, vector<1x128x128xf32>
    %6 = vector.shape_cast %5 : vector<1x128x128xf32> to vector<128x128xf32>
    %c1 = arith.constant 1 : index
    %c0_2 = arith.constant 0 : index
    %c0_3 = arith.constant 0 : index
    %7 = vector.load %arg2[%c1, %c0_2, %c0_3] : memref<2x128x128xf32, #tpu.memory_space<vmem>>, vector<1x128x128xf32>
    %8 = vector.shape_cast %7 : vector<1x128x128xf32> to vector<128x128xf32>
    %c0_4 = arith.constant 0 : index
    %c0_5 = arith.constant 0 : index
    %c0_6 = arith.constant 0 : index
    %c0_7 = arith.constant 0 : index
    %c0_8 = arith.constant 0 : index
    %9 = vector.load %arg1[%c0_4, %c0_5, %c0_6, %c0_7, %c0_8] : memref<1x2x2x128x1xf32, #tpu.memory_space<vmem>>, vector<1x1x1x128x1xf32>
    %10 = vector.shape_cast %9 : vector<1x1x1x128x1xf32> to vector<128x1xf32>
    %11 = vector.broadcast %10 : vector<128x1xf32> to vector<128x128xf32>
    %12 = arith.mulf %11, %6 : vector<128x128xf32>
    %c0_9 = arith.constant 0 : index
    %c1_10 = arith.constant 1 : index
    %c0_11 = arith.constant 0 : index
    %c0_12 = arith.constant 0 : index
    %c0_13 = arith.constant 0 : index
    %13 = vector.load %arg1[%c0_9, %c1_10, %c0_11, %c0_12, %c0_13] : memref<1x2x2x128x1xf32, #tpu.memory_space<vmem>>, vector<1x1x1x128x1xf32>
    %14 = vector.shape_cast %13 : vector<1x1x1x128x1xf32> to vector<128x1xf32>
    %15 = vector.broadcast %14 : vector<128x1xf32> to vector<128x128xf32>
    %16 = arith.mulf %15, %8 : vector<128x128xf32>
    %17 = arith.addf %12, %16 : vector<128x128xf32>
    %c0_14 = arith.constant 0 : index
    %c0_15 = arith.constant 0 : index
    %c1_16 = arith.constant 1 : index
    %c0_17 = arith.constant 0 : index
    %c0_18 = arith.constant 0 : index
    %18 = vector.load %arg1[%c0_14, %c0_15, %c1_16, %c0_17, %c0_18] : memref<1x2x2x128x1xf32, #tpu.memory_space<vmem>>, vector<1x1x1x128x1xf32>
    %19 = vector.shape_cast %18 : vector<1x1x1x128x1xf32> to vector<128x1xf32>
    %20 = vector.broadcast %19 : vector<128x1xf32> to vector<128x128xf32>
    %21 = arith.mulf %20, %6 : vector<128x128xf32>
    %c0_19 = arith.constant 0 : index
    %c1_20 = arith.constant 1 : index
    %c1_21 = arith.constant 1 : index
    %c0_22 = arith.constant 0 : index
    %c0_23 = arith.constant 0 : index
    %22 = vector.load %arg1[%c0_19, %c1_20, %c1_21, %c0_22, %c0_23] : memref<1x2x2x128x1xf32, #tpu.memory_space<vmem>>, vector<1x1x1x128x1xf32>
    %23 = vector.shape_cast %22 : vector<1x1x1x128x1xf32> to vector<128x1xf32>
    %24 = vector.broadcast %23 : vector<128x1xf32> to vector<128x128xf32>
    %25 = arith.mulf %24, %8 : vector<128x128xf32>
    %26 = arith.addf %21, %25 : vector<128x128xf32>
    %cst = arith.constant 6.250000e-02 : f32
    %27 = vector.broadcast %cst : f32 to vector<128x128xf32>
    %28 = arith.mulf %17, %27 : vector<128x128xf32>
    %cst_24 = arith.constant 6.250000e-02 : f32
    %29 = vector.broadcast %cst_24 : f32 to vector<128x128xf32>
    %30 = arith.mulf %26, %29 : vector<128x128xf32>
    %cst_25 = arith.constant dense<0.000000e+00> : vector<128x128xf32>
    %31 = tpu.matmul %28, %4, %cst_25 {dimension_numbers = #tpu.dot_dimension_numbers<[1], [0], [0], [1], [0, 0, 1, 1], [], []>} : vector<128x128xf32>, vector<128x128xf32>, vector<128x128xf32> -> vector<128x128xf32>
    %cst_26 = arith.constant 1.250000e-01 : f32
    %32 = vector.broadcast %cst_26 : f32 to vector<128x128xf32>
    %33 = arith.mulf %31, %32 : vector<128x128xf32>
    %34 = arith.addf %4, %33 : vector<128x128xf32>
    %cst_27 = arith.constant dense<0.000000e+00> : vector<128x128xf32>
    %35 = tpu.matmul %30, %4, %cst_27 {dimension_numbers = #tpu.dot_dimension_numbers<[1], [0], [0], [1], [0, 0, 1, 1], [], []>} : vector<128x128xf32>, vector<128x128xf32>, vector<128x128xf32> -> vector<128x128xf32>
    %cst_28 = arith.constant 1.250000e-01 : f32
    %36 = vector.broadcast %cst_28 : f32 to vector<128x128xf32>
    %37 = arith.mulf %35, %36 : vector<128x128xf32>
    %38 = arith.addf %4, %37 : vector<128x128xf32>
    %cst_29 = arith.constant dense<0.000000e+00> : vector<128x128xf32>
    %39 = tpu.matmul %28, %34, %cst_29 {dimension_numbers = #tpu.dot_dimension_numbers<[1], [0], [0], [1], [0, 0, 1, 1], [], []>} : vector<128x128xf32>, vector<128x128xf32>, vector<128x128xf32> -> vector<128x128xf32>
    %cst_30 = arith.constant 0.142857149 : f32
    %40 = vector.broadcast %cst_30 : f32 to vector<128x128xf32>
    %41 = arith.mulf %39, %40 : vector<128x128xf32>
    %42 = arith.addf %4, %41 : vector<128x128xf32>
    %cst_31 = arith.constant dense<0.000000e+00> : vector<128x128xf32>
    %43 = tpu.matmul %30, %38, %cst_31 {dimension_numbers = #tpu.dot_dimension_numbers<[1], [0], [0], [1], [0, 0, 1, 1], [], []>} : vector<128x128xf32>, vector<128x128xf32>, vector<128x128xf32> -> vector<128x128xf32>
    %cst_32 = arith.constant 0.142857149 : f32
    %44 = vector.broadcast %cst_32 : f32 to vector<128x128xf32>
    %45 = arith.mulf %43, %44 : vector<128x128xf32>
    %46 = arith.addf %4, %45 : vector<128x128xf32>
    %cst_33 = arith.constant dense<0.000000e+00> : vector<128x128xf32>
    %47 = tpu.matmul %28, %42, %cst_33 {dimension_numbers = #tpu.dot_dimension_numbers<[1], [0], [0], [1], [0, 0, 1, 1], [], []>} : vector<128x128xf32>, vector<128x128xf32>, vector<128x128xf32> -> vector<128x128xf32>
    %cst_34 = arith.constant 0.166666672 : f32
    %48 = vector.broadcast %cst_34 : f32 to vector<128x128xf32>
    %49 = arith.mulf %47, %48 : vector<128x128xf32>
    %50 = arith.addf %4, %49 : vector<128x128xf32>
    %cst_35 = arith.constant dense<0.000000e+00> : vector<128x128xf32>
    %51 = tpu.matmul %30, %46, %cst_35 {dimension_numbers = #tpu.dot_dimension_numbers<[1], [0], [0], [1], [0, 0, 1, 1], [], []>} : vector<128x128xf32>, vector<128x128xf32>, vector<128x128xf32> -> vector<128x128xf32>
    %cst_36 = arith.constant 0.166666672 : f32
    %52 = vector.broadcast %cst_36 : f32 to vector<128x128xf32>
    %53 = arith.mulf %51, %52 : vector<128x128xf32>
    %54 = arith.addf %4, %53 : vector<128x128xf32>
    %cst_37 = arith.constant dense<0.000000e+00> : vector<128x128xf32>
    %55 = tpu.matmul %28, %50, %cst_37 {dimension_numbers = #tpu.dot_dimension_numbers<[1], [0], [0], [1], [0, 0, 1, 1], [], []>} : vector<128x128xf32>, vector<128x128xf32>, vector<128x128xf32> -> vector<128x128xf32>
    %cst_38 = arith.constant 2.000000e-01 : f32
    %56 = vector.broadcast %cst_38 : f32 to vector<128x128xf32>
    %57 = arith.mulf %55, %56 : vector<128x128xf32>
    %58 = arith.addf %4, %57 : vector<128x128xf32>
    %cst_39 = arith.constant dense<0.000000e+00> : vector<128x128xf32>
    %59 = tpu.matmul %30, %54, %cst_39 {dimension_numbers = #tpu.dot_dimension_numbers<[1], [0], [0], [1], [0, 0, 1, 1], [], []>} : vector<128x128xf32>, vector<128x128xf32>, vector<128x128xf32> -> vector<128x128xf32>
    %cst_40 = arith.constant 2.000000e-01 : f32
    %60 = vector.broadcast %cst_40 : f32 to vector<128x128xf32>
    %61 = arith.mulf %59, %60 : vector<128x128xf32>
    %62 = arith.addf %4, %61 : vector<128x128xf32>
    %cst_41 = arith.constant dense<0.000000e+00> : vector<128x128xf32>
    %63 = tpu.matmul %28, %58, %cst_41 {dimension_numbers = #tpu.dot_dimension_numbers<[1], [0], [0], [1], [0, 0, 1, 1], [], []>} : vector<128x128xf32>, vector<128x128xf32>, vector<128x128xf32> -> vector<128x128xf32>
    %cst_42 = arith.constant 2.500000e-01 : f32
    %64 = vector.broadcast %cst_42 : f32 to vector<128x128xf32>
    %65 = arith.mulf %63, %64 : vector<128x128xf32>
    %66 = arith.addf %4, %65 : vector<128x128xf32>
    %cst_43 = arith.constant dense<0.000000e+00> : vector<128x128xf32>
    %67 = tpu.matmul %30, %62, %cst_43 {dimension_numbers = #tpu.dot_dimension_numbers<[1], [0], [0], [1], [0, 0, 1, 1], [], []>} : vector<128x128xf32>, vector<128x128xf32>, vector<128x128xf32> -> vector<128x128xf32>
    %cst_44 = arith.constant 2.500000e-01 : f32
    %68 = vector.broadcast %cst_44 : f32 to vector<128x128xf32>
    %69 = arith.mulf %67, %68 : vector<128x128xf32>
    %70 = arith.addf %4, %69 : vector<128x128xf32>
    %cst_45 = arith.constant dense<0.000000e+00> : vector<128x128xf32>
    %71 = tpu.matmul %28, %66, %cst_45 {dimension_numbers = #tpu.dot_dimension_numbers<[1], [0], [0], [1], [0, 0, 1, 1], [], []>} : vector<128x128xf32>, vector<128x128xf32>, vector<128x128xf32> -> vector<128x128xf32>
    %cst_46 = arith.constant 0.333333343 : f32
    %72 = vector.broadcast %cst_46 : f32 to vector<128x128xf32>
    %73 = arith.mulf %71, %72 : vector<128x128xf32>
    %74 = arith.addf %4, %73 : vector<128x128xf32>
    %cst_47 = arith.constant dense<0.000000e+00> : vector<128x128xf32>
    %75 = tpu.matmul %30, %70, %cst_47 {dimension_numbers = #tpu.dot_dimension_numbers<[1], [0], [0], [1], [0, 0, 1, 1], [], []>} : vector<128x128xf32>, vector<128x128xf32>, vector<128x128xf32> -> vector<128x128xf32>
    %cst_48 = arith.constant 0.333333343 : f32
    %76 = vector.broadcast %cst_48 : f32 to vector<128x128xf32>
    %77 = arith.mulf %75, %76 : vector<128x128xf32>
    %78 = arith.addf %4, %77 : vector<128x128xf32>
    %cst_49 = arith.constant dense<0.000000e+00> : vector<128x128xf32>
    %79 = tpu.matmul %28, %74, %cst_49 {dimension_numbers = #tpu.dot_dimension_numbers<[1], [0], [0], [1], [0, 0, 1, 1], [], []>} : vector<128x128xf32>, vector<128x128xf32>, vector<128x128xf32> -> vector<128x128xf32>
    %cst_50 = arith.constant 5.000000e-01 : f32
    %80 = vector.broadcast %cst_50 : f32 to vector<128x128xf32>
    %81 = arith.mulf %79, %80 : vector<128x128xf32>
    %82 = arith.addf %4, %81 : vector<128x128xf32>
    %cst_51 = arith.constant dense<0.000000e+00> : vector<128x128xf32>
    %83 = tpu.matmul %30, %78, %cst_51 {dimension_numbers = #tpu.dot_dimension_numbers<[1], [0], [0], [1], [0, 0, 1, 1], [], []>} : vector<128x128xf32>, vector<128x128xf32>, vector<128x128xf32> -> vector<128x128xf32>
    %cst_52 = arith.constant 5.000000e-01 : f32
    %84 = vector.broadcast %cst_52 : f32 to vector<128x128xf32>
    %85 = arith.mulf %83, %84 : vector<128x128xf32>
    %86 = arith.addf %4, %85 : vector<128x128xf32>
    %cst_53 = arith.constant dense<0.000000e+00> : vector<128x128xf32>
    %87 = tpu.matmul %28, %82, %cst_53 {dimension_numbers = #tpu.dot_dimension_numbers<[1], [0], [0], [1], [0, 0, 1, 1], [], []>} : vector<128x128xf32>, vector<128x128xf32>, vector<128x128xf32> -> vector<128x128xf32>
    %cst_54 = arith.constant 1.000000e+00 : f32
    %88 = vector.broadcast %cst_54 : f32 to vector<128x128xf32>
    %89 = arith.mulf %87, %88 : vector<128x128xf32>
    %90 = arith.addf %4, %89 : vector<128x128xf32>
    %cst_55 = arith.constant dense<0.000000e+00> : vector<128x128xf32>
    %91 = tpu.matmul %30, %86, %cst_55 {dimension_numbers = #tpu.dot_dimension_numbers<[1], [0], [0], [1], [0, 0, 1, 1], [], []>} : vector<128x128xf32>, vector<128x128xf32>, vector<128x128xf32> -> vector<128x128xf32>
    %cst_56 = arith.constant 1.000000e+00 : f32
    %92 = vector.broadcast %cst_56 : f32 to vector<128x128xf32>
    %93 = arith.mulf %91, %92 : vector<128x128xf32>
    %94 = arith.addf %4, %93 : vector<128x128xf32>
    %cst_57 = arith.constant dense<0.000000e+00> : vector<128x128xf32>
    %95 = tpu.matmul %90, %90, %cst_57 {dimension_numbers = #tpu.dot_dimension_numbers<[1], [0], [0], [1], [0, 0, 1, 1], [], []>} : vector<128x128xf32>, vector<128x128xf32>, vector<128x128xf32> -> vector<128x128xf32>
    %cst_58 = arith.constant dense<0.000000e+00> : vector<128x128xf32>
    %96 = tpu.matmul %94, %94, %cst_58 {dimension_numbers = #tpu.dot_dimension_numbers<[1], [0], [0], [1], [0, 0, 1, 1], [], []>} : vector<128x128xf32>, vector<128x128xf32>, vector<128x128xf32> -> vector<128x128xf32>
    %cst_59 = arith.constant dense<0.000000e+00> : vector<128x128xf32>
    %97 = tpu.matmul %95, %95, %cst_59 {dimension_numbers = #tpu.dot_dimension_numbers<[1], [0], [0], [1], [0, 0, 1, 1], [], []>} : vector<128x128xf32>, vector<128x128xf32>, vector<128x128xf32> -> vector<128x128xf32>
    %cst_60 = arith.constant dense<0.000000e+00> : vector<128x128xf32>
    %98 = tpu.matmul %96, %96, %cst_60 {dimension_numbers = #tpu.dot_dimension_numbers<[1], [0], [0], [1], [0, 0, 1, 1], [], []>} : vector<128x128xf32>, vector<128x128xf32>, vector<128x128xf32> -> vector<128x128xf32>
    %cst_61 = arith.constant dense<0.000000e+00> : vector<128x128xf32>
    %99 = tpu.matmul %97, %97, %cst_61 {dimension_numbers = #tpu.dot_dimension_numbers<[1], [0], [0], [1], [0, 0, 1, 1], [], []>} : vector<128x128xf32>, vector<128x128xf32>, vector<128x128xf32> -> vector<128x128xf32>
    %cst_62 = arith.constant dense<0.000000e+00> : vector<128x128xf32>
    %100 = tpu.matmul %98, %98, %cst_62 {dimension_numbers = #tpu.dot_dimension_numbers<[1], [0], [0], [1], [0, 0, 1, 1], [], []>} : vector<128x128xf32>, vector<128x128xf32>, vector<128x128xf32> -> vector<128x128xf32>
    %cst_63 = arith.constant dense<0.000000e+00> : vector<128x128xf32>
    %101 = tpu.matmul %99, %99, %cst_63 {dimension_numbers = #tpu.dot_dimension_numbers<[1], [0], [0], [1], [0, 0, 1, 1], [], []>} : vector<128x128xf32>, vector<128x128xf32>, vector<128x128xf32> -> vector<128x128xf32>
    %cst_64 = arith.constant dense<0.000000e+00> : vector<128x128xf32>
    %102 = tpu.matmul %100, %100, %cst_64 {dimension_numbers = #tpu.dot_dimension_numbers<[1], [0], [0], [1], [0, 0, 1, 1], [], []>} : vector<128x128xf32>, vector<128x128xf32>, vector<128x128xf32> -> vector<128x128xf32>
    %103 = vector.extract_strided_slice %101 {offsets = [0, 0], sizes = [16, 16], strides = [1, 1]} : vector<128x128xf32> to vector<16x16xf32>
    %104 = vector.extract_strided_slice %101 {offsets = [16, 16], sizes = [16, 16], strides = [1, 1]} : vector<128x128xf32> to vector<16x16xf32>
    %105 = vector.extract_strided_slice %101 {offsets = [32, 32], sizes = [16, 16], strides = [1, 1]} : vector<128x128xf32> to vector<16x16xf32>
    %106 = vector.extract_strided_slice %101 {offsets = [48, 48], sizes = [16, 16], strides = [1, 1]} : vector<128x128xf32> to vector<16x16xf32>
    %107 = vector.extract_strided_slice %101 {offsets = [64, 64], sizes = [16, 16], strides = [1, 1]} : vector<128x128xf32> to vector<16x16xf32>
    %108 = vector.extract_strided_slice %101 {offsets = [80, 80], sizes = [16, 16], strides = [1, 1]} : vector<128x128xf32> to vector<16x16xf32>
    %109 = vector.extract_strided_slice %101 {offsets = [96, 96], sizes = [16, 16], strides = [1, 1]} : vector<128x128xf32> to vector<16x16xf32>
    %110 = vector.extract_strided_slice %101 {offsets = [112, 112], sizes = [16, 16], strides = [1, 1]} : vector<128x128xf32> to vector<16x16xf32>
    %111 = vector.extract_strided_slice %102 {offsets = [0, 0], sizes = [16, 16], strides = [1, 1]} : vector<128x128xf32> to vector<16x16xf32>
    %112 = vector.extract_strided_slice %102 {offsets = [16, 16], sizes = [16, 16], strides = [1, 1]} : vector<128x128xf32> to vector<16x16xf32>
    %113 = vector.extract_strided_slice %102 {offsets = [32, 32], sizes = [16, 16], strides = [1, 1]} : vector<128x128xf32> to vector<16x16xf32>
    %114 = vector.extract_strided_slice %102 {offsets = [48, 48], sizes = [16, 16], strides = [1, 1]} : vector<128x128xf32> to vector<16x16xf32>
    %115 = vector.extract_strided_slice %102 {offsets = [64, 64], sizes = [16, 16], strides = [1, 1]} : vector<128x128xf32> to vector<16x16xf32>
    %116 = vector.extract_strided_slice %102 {offsets = [80, 80], sizes = [16, 16], strides = [1, 1]} : vector<128x128xf32> to vector<16x16xf32>
    %117 = vector.extract_strided_slice %102 {offsets = [96, 96], sizes = [16, 16], strides = [1, 1]} : vector<128x128xf32> to vector<16x16xf32>
    %118 = vector.extract_strided_slice %102 {offsets = [112, 112], sizes = [16, 16], strides = [1, 1]} : vector<128x128xf32> to vector<16x16xf32>
    %cst_65 = arith.constant dense<0.000000e+00> : vector<16x16xf32>
    %119 = tpu.matmul %103, %104, %cst_65 {dimension_numbers = #tpu.dot_dimension_numbers<[1], [0], [0], [1], [0, 0, 1, 1], [], []>} : vector<16x16xf32>, vector<16x16xf32>, vector<16x16xf32> -> vector<16x16xf32>
    %cst_66 = arith.constant dense<0.000000e+00> : vector<16x16xf32>
    %120 = tpu.matmul %105, %106, %cst_66 {dimension_numbers = #tpu.dot_dimension_numbers<[1], [0], [0], [1], [0, 0, 1, 1], [], []>} : vector<16x16xf32>, vector<16x16xf32>, vector<16x16xf32> -> vector<16x16xf32>
    %cst_67 = arith.constant dense<0.000000e+00> : vector<16x16xf32>
    %121 = tpu.matmul %107, %108, %cst_67 {dimension_numbers = #tpu.dot_dimension_numbers<[1], [0], [0], [1], [0, 0, 1, 1], [], []>} : vector<16x16xf32>, vector<16x16xf32>, vector<16x16xf32> -> vector<16x16xf32>
    %cst_68 = arith.constant dense<0.000000e+00> : vector<16x16xf32>
    %122 = tpu.matmul %109, %110, %cst_68 {dimension_numbers = #tpu.dot_dimension_numbers<[1], [0], [0], [1], [0, 0, 1, 1], [], []>} : vector<16x16xf32>, vector<16x16xf32>, vector<16x16xf32> -> vector<16x16xf32>
    %cst_69 = arith.constant dense<0.000000e+00> : vector<16x16xf32>
    %123 = tpu.matmul %111, %112, %cst_69 {dimension_numbers = #tpu.dot_dimension_numbers<[1], [0], [0], [1], [0, 0, 1, 1], [], []>} : vector<16x16xf32>, vector<16x16xf32>, vector<16x16xf32> -> vector<16x16xf32>
    %cst_70 = arith.constant dense<0.000000e+00> : vector<16x16xf32>
    %124 = tpu.matmul %113, %114, %cst_70 {dimension_numbers = #tpu.dot_dimension_numbers<[1], [0], [0], [1], [0, 0, 1, 1], [], []>} : vector<16x16xf32>, vector<16x16xf32>, vector<16x16xf32> -> vector<16x16xf32>
    %cst_71 = arith.constant dense<0.000000e+00> : vector<16x16xf32>
    %125 = tpu.matmul %115, %116, %cst_71 {dimension_numbers = #tpu.dot_dimension_numbers<[1], [0], [0], [1], [0, 0, 1, 1], [], []>} : vector<16x16xf32>, vector<16x16xf32>, vector<16x16xf32> -> vector<16x16xf32>
    %cst_72 = arith.constant dense<0.000000e+00> : vector<16x16xf32>
    %126 = tpu.matmul %117, %118, %cst_72 {dimension_numbers = #tpu.dot_dimension_numbers<[1], [0], [0], [1], [0, 0, 1, 1], [], []>} : vector<16x16xf32>, vector<16x16xf32>, vector<16x16xf32> -> vector<16x16xf32>
    %cst_73 = arith.constant dense<0.000000e+00> : vector<16x16xf32>
    %127 = tpu.matmul %119, %120, %cst_73 {dimension_numbers = #tpu.dot_dimension_numbers<[1], [0], [0], [1], [0, 0, 1, 1], [], []>} : vector<16x16xf32>, vector<16x16xf32>, vector<16x16xf32> -> vector<16x16xf32>
    %cst_74 = arith.constant dense<0.000000e+00> : vector<16x16xf32>
    %128 = tpu.matmul %121, %122, %cst_74 {dimension_numbers = #tpu.dot_dimension_numbers<[1], [0], [0], [1], [0, 0, 1, 1], [], []>} : vector<16x16xf32>, vector<16x16xf32>, vector<16x16xf32> -> vector<16x16xf32>
    %cst_75 = arith.constant dense<0.000000e+00> : vector<16x16xf32>
    %129 = tpu.matmul %123, %124, %cst_75 {dimension_numbers = #tpu.dot_dimension_numbers<[1], [0], [0], [1], [0, 0, 1, 1], [], []>} : vector<16x16xf32>, vector<16x16xf32>, vector<16x16xf32> -> vector<16x16xf32>
    %cst_76 = arith.constant dense<0.000000e+00> : vector<16x16xf32>
    %130 = tpu.matmul %125, %126, %cst_76 {dimension_numbers = #tpu.dot_dimension_numbers<[1], [0], [0], [1], [0, 0, 1, 1], [], []>} : vector<16x16xf32>, vector<16x16xf32>, vector<16x16xf32> -> vector<16x16xf32>
    %cst_77 = arith.constant dense<0.000000e+00> : vector<16x16xf32>
    %131 = tpu.matmul %127, %128, %cst_77 {dimension_numbers = #tpu.dot_dimension_numbers<[1], [0], [0], [1], [0, 0, 1, 1], [], []>} : vector<16x16xf32>, vector<16x16xf32>, vector<16x16xf32> -> vector<16x16xf32>
    %cst_78 = arith.constant dense<0.000000e+00> : vector<16x16xf32>
    %132 = tpu.matmul %129, %130, %cst_78 {dimension_numbers = #tpu.dot_dimension_numbers<[1], [0], [0], [1], [0, 0, 1, 1], [], []>} : vector<16x16xf32>, vector<16x16xf32>, vector<16x16xf32> -> vector<16x16xf32>
    %cst_79 = arith.constant dense<0.000000e+00> : vector<16x16xf32>
    %133 = tpu.matmul %131, %132, %cst_79 {dimension_numbers = #tpu.dot_dimension_numbers<[1], [0], [0], [1], [0, 0, 1, 1], [], []>} : vector<16x16xf32>, vector<16x16xf32>, vector<16x16xf32> -> vector<16x16xf32>
    %c0_80 = arith.constant 0 : index
    %c0_81 = arith.constant 0 : index
    %134 = vector.load %arg4[%c0_80, %c0_81] : memref<1x128xf32, #tpu.memory_space<vmem>>, vector<1x128xf32>
    %135 = vector.extract_strided_slice %133 {offsets = [0, 0], sizes = [1, 16], strides = [1, 1]} : vector<16x16xf32> to vector<1x16xf32>
    %c0_82 = arith.constant 0 : index
    %c0_83 = arith.constant 0 : index
    %c0_84 = arith.constant 0 : index
    %136 = vector.load %arg3[%c0_82, %c0_83, %c0_84] : memref<16x16x128xf32, #tpu.memory_space<vmem>>, vector<1x16x128xf32>
    %137 = vector.shape_cast %136 : vector<1x16x128xf32> to vector<16x128xf32>
    %cst_85 = arith.constant dense<0.000000e+00> : vector<1x128xf32>
    %138 = tpu.matmul %135, %137, %cst_85 {dimension_numbers = #tpu.dot_dimension_numbers<[1], [0], [0], [1], [0, 0, 1, 1], [], []>} : vector<1x16xf32>, vector<16x128xf32>, vector<1x128xf32> -> vector<1x128xf32>
    %139 = arith.addf %134, %138 : vector<1x128xf32>
    %140 = vector.extract_strided_slice %133 {offsets = [1, 0], sizes = [1, 16], strides = [1, 1]} : vector<16x16xf32> to vector<1x16xf32>
    %c1_86 = arith.constant 1 : index
    %c0_87 = arith.constant 0 : index
    %c0_88 = arith.constant 0 : index
    %141 = vector.load %arg3[%c1_86, %c0_87, %c0_88] : memref<16x16x128xf32, #tpu.memory_space<vmem>>, vector<1x16x128xf32>
    %142 = vector.shape_cast %141 : vector<1x16x128xf32> to vector<16x128xf32>
    %cst_89 = arith.constant dense<0.000000e+00> : vector<1x128xf32>
    %143 = tpu.matmul %140, %142, %cst_89 {dimension_numbers = #tpu.dot_dimension_numbers<[1], [0], [0], [1], [0, 0, 1, 1], [], []>} : vector<1x16xf32>, vector<16x128xf32>, vector<1x128xf32> -> vector<1x128xf32>
    %144 = arith.addf %139, %143 : vector<1x128xf32>
    %145 = vector.extract_strided_slice %133 {offsets = [2, 0], sizes = [1, 16], strides = [1, 1]} : vector<16x16xf32> to vector<1x16xf32>
    %c2 = arith.constant 2 : index
    %c0_90 = arith.constant 0 : index
    %c0_91 = arith.constant 0 : index
    %146 = vector.load %arg3[%c2, %c0_90, %c0_91] : memref<16x16x128xf32, #tpu.memory_space<vmem>>, vector<1x16x128xf32>
    %147 = vector.shape_cast %146 : vector<1x16x128xf32> to vector<16x128xf32>
    %cst_92 = arith.constant dense<0.000000e+00> : vector<1x128xf32>
    %148 = tpu.matmul %145, %147, %cst_92 {dimension_numbers = #tpu.dot_dimension_numbers<[1], [0], [0], [1], [0, 0, 1, 1], [], []>} : vector<1x16xf32>, vector<16x128xf32>, vector<1x128xf32> -> vector<1x128xf32>
    %149 = arith.addf %144, %148 : vector<1x128xf32>
    %150 = vector.extract_strided_slice %133 {offsets = [3, 0], sizes = [1, 16], strides = [1, 1]} : vector<16x16xf32> to vector<1x16xf32>
    %c3 = arith.constant 3 : index
    %c0_93 = arith.constant 0 : index
    %c0_94 = arith.constant 0 : index
    %151 = vector.load %arg3[%c3, %c0_93, %c0_94] : memref<16x16x128xf32, #tpu.memory_space<vmem>>, vector<1x16x128xf32>
    %152 = vector.shape_cast %151 : vector<1x16x128xf32> to vector<16x128xf32>
    %cst_95 = arith.constant dense<0.000000e+00> : vector<1x128xf32>
    %153 = tpu.matmul %150, %152, %cst_95 {dimension_numbers = #tpu.dot_dimension_numbers<[1], [0], [0], [1], [0, 0, 1, 1], [], []>} : vector<1x16xf32>, vector<16x128xf32>, vector<1x128xf32> -> vector<1x128xf32>
    %154 = arith.addf %149, %153 : vector<1x128xf32>
    %155 = vector.extract_strided_slice %133 {offsets = [4, 0], sizes = [1, 16], strides = [1, 1]} : vector<16x16xf32> to vector<1x16xf32>
    %c4 = arith.constant 4 : index
    %c0_96 = arith.constant 0 : index
    %c0_97 = arith.constant 0 : index
    %156 = vector.load %arg3[%c4, %c0_96, %c0_97] : memref<16x16x128xf32, #tpu.memory_space<vmem>>, vector<1x16x128xf32>
    %157 = vector.shape_cast %156 : vector<1x16x128xf32> to vector<16x128xf32>
    %cst_98 = arith.constant dense<0.000000e+00> : vector<1x128xf32>
    %158 = tpu.matmul %155, %157, %cst_98 {dimension_numbers = #tpu.dot_dimension_numbers<[1], [0], [0], [1], [0, 0, 1, 1], [], []>} : vector<1x16xf32>, vector<16x128xf32>, vector<1x128xf32> -> vector<1x128xf32>
    %159 = arith.addf %154, %158 : vector<1x128xf32>
    %160 = vector.extract_strided_slice %133 {offsets = [5, 0], sizes = [1, 16], strides = [1, 1]} : vector<16x16xf32> to vector<1x16xf32>
    %c5 = arith.constant 5 : index
    %c0_99 = arith.constant 0 : index
    %c0_100 = arith.constant 0 : index
    %161 = vector.load %arg3[%c5, %c0_99, %c0_100] : memref<16x16x128xf32, #tpu.memory_space<vmem>>, vector<1x16x128xf32>
    %162 = vector.shape_cast %161 : vector<1x16x128xf32> to vector<16x128xf32>
    %cst_101 = arith.constant dense<0.000000e+00> : vector<1x128xf32>
    %163 = tpu.matmul %160, %162, %cst_101 {dimension_numbers = #tpu.dot_dimension_numbers<[1], [0], [0], [1], [0, 0, 1, 1], [], []>} : vector<1x16xf32>, vector<16x128xf32>, vector<1x128xf32> -> vector<1x128xf32>
    %164 = arith.addf %159, %163 : vector<1x128xf32>
    %165 = vector.extract_strided_slice %133 {offsets = [6, 0], sizes = [1, 16], strides = [1, 1]} : vector<16x16xf32> to vector<1x16xf32>
    %c6 = arith.constant 6 : index
    %c0_102 = arith.constant 0 : index
    %c0_103 = arith.constant 0 : index
    %166 = vector.load %arg3[%c6, %c0_102, %c0_103] : memref<16x16x128xf32, #tpu.memory_space<vmem>>, vector<1x16x128xf32>
    %167 = vector.shape_cast %166 : vector<1x16x128xf32> to vector<16x128xf32>
    %cst_104 = arith.constant dense<0.000000e+00> : vector<1x128xf32>
    %168 = tpu.matmul %165, %167, %cst_104 {dimension_numbers = #tpu.dot_dimension_numbers<[1], [0], [0], [1], [0, 0, 1, 1], [], []>} : vector<1x16xf32>, vector<16x128xf32>, vector<1x128xf32> -> vector<1x128xf32>
    %169 = arith.addf %164, %168 : vector<1x128xf32>
    %170 = vector.extract_strided_slice %133 {offsets = [7, 0], sizes = [1, 16], strides = [1, 1]} : vector<16x16xf32> to vector<1x16xf32>
    %c7 = arith.constant 7 : index
    %c0_105 = arith.constant 0 : index
    %c0_106 = arith.constant 0 : index
    %171 = vector.load %arg3[%c7, %c0_105, %c0_106] : memref<16x16x128xf32, #tpu.memory_space<vmem>>, vector<1x16x128xf32>
    %172 = vector.shape_cast %171 : vector<1x16x128xf32> to vector<16x128xf32>
    %cst_107 = arith.constant dense<0.000000e+00> : vector<1x128xf32>
    %173 = tpu.matmul %170, %172, %cst_107 {dimension_numbers = #tpu.dot_dimension_numbers<[1], [0], [0], [1], [0, 0, 1, 1], [], []>} : vector<1x16xf32>, vector<16x128xf32>, vector<1x128xf32> -> vector<1x128xf32>
    %174 = arith.addf %169, %173 : vector<1x128xf32>
    %175 = vector.extract_strided_slice %133 {offsets = [8, 0], sizes = [1, 16], strides = [1, 1]} : vector<16x16xf32> to vector<1x16xf32>
    %c8 = arith.constant 8 : index
    %c0_108 = arith.constant 0 : index
    %c0_109 = arith.constant 0 : index
    %176 = vector.load %arg3[%c8, %c0_108, %c0_109] : memref<16x16x128xf32, #tpu.memory_space<vmem>>, vector<1x16x128xf32>
    %177 = vector.shape_cast %176 : vector<1x16x128xf32> to vector<16x128xf32>
    %cst_110 = arith.constant dense<0.000000e+00> : vector<1x128xf32>
    %178 = tpu.matmul %175, %177, %cst_110 {dimension_numbers = #tpu.dot_dimension_numbers<[1], [0], [0], [1], [0, 0, 1, 1], [], []>} : vector<1x16xf32>, vector<16x128xf32>, vector<1x128xf32> -> vector<1x128xf32>
    %179 = arith.addf %174, %178 : vector<1x128xf32>
    %180 = vector.extract_strided_slice %133 {offsets = [9, 0], sizes = [1, 16], strides = [1, 1]} : vector<16x16xf32> to vector<1x16xf32>
    %c9 = arith.constant 9 : index
    %c0_111 = arith.constant 0 : index
    %c0_112 = arith.constant 0 : index
    %181 = vector.load %arg3[%c9, %c0_111, %c0_112] : memref<16x16x128xf32, #tpu.memory_space<vmem>>, vector<1x16x128xf32>
    %182 = vector.shape_cast %181 : vector<1x16x128xf32> to vector<16x128xf32>
    %cst_113 = arith.constant dense<0.000000e+00> : vector<1x128xf32>
    %183 = tpu.matmul %180, %182, %cst_113 {dimension_numbers = #tpu.dot_dimension_numbers<[1], [0], [0], [1], [0, 0, 1, 1], [], []>} : vector<1x16xf32>, vector<16x128xf32>, vector<1x128xf32> -> vector<1x128xf32>
    %184 = arith.addf %179, %183 : vector<1x128xf32>
    %c0_114 = arith.constant 0 : index
    %c0_115 = arith.constant 0 : index
    %c0_116 = arith.constant 0 : index
    %185 = vector.load %arg5[%c0_114, %c0_115, %c0_116] : memref<1x1x128xf32, #tpu.memory_space<vmem>>, vector<1x1x128xf32>
    %186 = vector.shape_cast %185 : vector<1x1x128xf32> to vector<1x128xf32>
    %187 = vector.shape_cast %184 : vector<1x128xf32> to vector<1x1x128xf32>
    tpu.vector_store %arg5[%c0_114, %c0_115, %c0_116], %187 {strides = array<i32>} : memref<1x1x128xf32, #tpu.memory_space<vmem>>, vector<1x1x128xf32>,
    return
  }
  func.func @transform_0(%arg0: i32) -> (i32, i32, i32, i32, i32) {
    %c0_i32 = arith.constant 0 : i32
    %c0_i32_0 = arith.constant 0 : i32
    %c0_i32_1 = arith.constant 0 : i32
    %c0_i32_2 = arith.constant 0 : i32
    %c0_i32_3 = arith.constant 0 : i32
    return %arg0, %c0_i32, %c0_i32_0, %c0_i32_1, %c0_i32_2 : i32, i32, i32, i32, i32
  }
  func.func @transform_1(%arg0: i32) -> (i32, i32, i32) {
    %c0_i32 = arith.constant 0 : i32
    %c0_i32_0 = arith.constant 0 : i32
    %c0_i32_1 = arith.constant 0 : i32
    %c0_i32_2 = arith.constant 0 : i32
    return %c0_i32, %c0_i32_0, %c0_i32_1 : i32, i32, i32
  }
  func.func @transform_2(%arg0: i32) -> (i32, i32, i32) {
    %c0_i32 = arith.constant 0 : i32
    %c0_i32_0 = arith.constant 0 : i32
    %c0_i32_1 = arith.constant 0 : i32
    %c0_i32_2 = arith.constant 0 : i32
    return %c0_i32, %c0_i32_0, %c0_i32_1 : i32, i32, i32
  }
  func.func @transform_3(%arg0: i32) -> (i32, i32) {
    %c0_i32 = arith.constant 0 : i32
    %c0_i32_0 = arith.constant 0 : i32
    %c0_i32_1 = arith.constant 0 : i32
    return %c0_i32, %c0_i32_0 : i32, i32
  }
  func.func @transform_4(%arg0: i32) -> (i32, i32, i32) {
    %c0_i32 = arith.constant 0 : i32
    %c0_i32_0 = arith.constant 0 : i32
    %c0_i32_1 = arith.constant 0 : i32
    return %arg0, %c0_i32, %c0_i32_0 : i32, i32, i32
  }
}

</mosaic_0001>

<bundles_post_ra>
// kernel: development_model_forward.1
= control target key start
LH: loop header
LB: loop body
LE: loop exit
PB: predicated region body
PF: predicated region fallthrough
CT: control target
= control target key end

     0   :  { %9 = vsyncpa [#allocation3], 0  ;;  %s12005_s0 = inlined_call_operand.vmem [shape: f32[2,2,2,128,1], index: 0, kind: input, shape index: {}]   ;;  %s12006_s1 = inlined_call_operand.vmem [shape: f32[2,128,128], index: 1, kind: input, shape index: {}]   ;;  %s12007_s2 = inlined_call_operand.vmem [shape: f32[16,16,128], index: 2, kind: input, shape index: {}]   ;;  %s12008_s3 = inlined_call_operand.vmem [shape: f32[1,128], index: 3, kind: input, shape index: {}]   ;;  %s12009_s4 = inlined_call_operand.hbm [shape: f32[2,1,128], index: 4, kind: output, shape index: {}]  }
   0x1   :  { %11 = vsyncpa [#allocation3 + $0x1], 0  ;;  %s10558_s15 = smov 0   ;;  %s10560_s16 = smov 0  }
   0x2   :  { %s10562_s17 = smov 0   ;;  %s10564_s18 = smov 0  }
   0x3 LB: > { %s10579_s19 = sadd.s32 4294967295, %s10518_s18   ;;  %s6913_s20 = sadd.s32 4294967294, %s10518_s18   ;;  %s10518_s18 = sphi %s10564_s18, %s12098_s18   ;;  %s10514_s17 = sphi %s10562_s17, %s12097_s17   ;;  %s10510_s16 = sphi %s10560_s16, %s12096_s16   ;;  %s10506_s15 = sphi %s10558_s15, %s12095_s15  }
   0x4   : > { %s10583_s21 = sadd.s32 1, %s10518_s18   ;;  %s113_s22 = sadd.s32 1, %s10514_s17 }
   0x5   : > { %s110_s23 = ssub.s32 %s10518_s18, %s10583_s21  ;;  %p123_p0 = scmp.ne.s32.totalorder %s10514_s17, %s10510_s16 }
   0x6   : > { %p111_p1 = scmp.eq.s32.totalorder %s110_s23, 0  ;;  %p124_p2 = scmp.eq.s32.totalorder %s10579_s19, 1 }
   0x7   : > { %p129_p3 = scmp.ne.s32.totalorder %s10510_s16, %s10506_s15  ;;  %p130_p4 = scmp.eq.s32.totalorder %s6913_s20, 1 }
   0x8   : > { %s10594_s24 = scalar_select %p111_p1, %s10514_s17, %s113_s22  }
   0x9   : > { %p10596_p5 = por %p124_p2, %p123_p0  ;;  %p10600_p6 = por %p130_p4, %p129_p3 }
   0xa   : > { %p6916_p7 = scmp.ge.s32.totalorder %s10518_s18, 1  ;;  %p165_p8 = scmp.lt.s32.totalorder %s10518_s18, 3 }
   0xc   : > { %p166_p9 = pnand %p6916_p7, %p165_p8 }
   0xe   : > { %169 = sbr.rel (%p166_p9) target bundleno = 4545 (0x11c1), region = 36 }
  0x15   : > { %p190_p10 = scmp.lt.s32.totalorder %s10579_s19, 1  ;;  %v10520_v0 = vmov 0   ;;  %v195_v5 = vlaneseq  ;;  %v10521_v21 = vmov 1.0|1.0   ;;  %v10901_v42 = vld [vmem:[%s12006_s1 + $0x8] sm:$0xff]  ;;  %s10524_s29 = smov 96  }
  0x16   : > { %10415 = vset.pattern.permute.xlu1 %v10520_v0  ;;  %10414 = vset.pattern.permute.xlu0 %v10520_v0  ;;  %s10525_s30 = smov 80   ;;  %s10527_s6 = smov 48  }
  0x17   : > { %s191_s27 = scalar_select %p190_p10, %s10579_s19, 1  ;;  %v10619_v8 = vshrl.u32 %v195_v5, 7  ;;  %v10626_v12 = vand.u32 127, %v195_v5 }
  0x18   : > { %s10528_s7 = smov 32   ;;  %s10529_s8 = smov 16  }
  0x19   : > { %s7092_s28 = sshll.u32 %s191_s27, 9  ;;  %v10624_v11 = vadd.s32 8, %v10619_v8  ;;  %v10629_v13 = vadd.s32 16, %v10619_v8  ;;  %v10632_v14 = vadd.s32 24, %v10619_v8  ;;  %vm214_vm0 = vcmp.eq.s32.totalorder %v10619_v8, %v10626_v12  ;;  %s188_s20 = sand.u32 1, %s10510_s16  }
  0x1a   : > { %s10611_s5 = scalar_lea.vmem %s12005_s0, %s7092_s28  ;;  %v10645_v17 = vadd.s32 32, %v10619_v8  ;;  %v10648_v18 = vadd.s32 40, %v10619_v8  ;;  %v10676_v23 = vadd.s32 48, %v10619_v8  ;;  %v10679_v24 = vadd.s32 56, %v10619_v8  ;;  %s10523_s28 = smov 112  }
  0x1b   : > { %v296_v1 = vld [vmem:[%s10611_s5 + $0x8] sm:$0xff]  ;;  %v295_v2 = vld [vmem:[%s10611_s5] sm:$0xff]  ;;  %v6953_v6 = vld [vmem:[%s10611_s5 + $0x110] sm:$0xff]  ;;  %vm215_vm1 = vcmp.eq.s32.totalorder %v10624_v11, %v10626_v12  ;;  %vm216_vm2 = vcmp.eq.s32.totalorder %v10629_v13, %v10626_v12  ;;  %vm217_vm3 = vcmp.eq.s32.totalorder %v10632_v14, %v10626_v12  ;;  %v10708_v28 = vadd.s32 64, %v10619_v8  ;;  %s7089_s27 = sshll.u32 %s10579_s19, 4  ;;  %s10532_s19 = smov [#allocation2]  }
  0x1c   : > { %318 = vperm.xlu1 %10415, %v296_v1   ;;  %313 = vperm.xlu0 %10414, %v295_v2   ;;  %v6952_v3 = vld [vmem:[%s10611_s5 + $0x108] sm:$0xff]  ;;  %v6951_v4 = vld [vmem:[%s10611_s5 + $0x100] sm:$0xff]  ;;  %v297_v7 = vld [vmem:[%s10611_s5 + $0x10] sm:$0xff]  ;;  %vm218_vm6 = vcmp.eq.s32.totalorder %v10645_v17, %v10626_v12  ;;  %vm219_vm7 = vcmp.eq.s32.totalorder %v10648_v18, %v10626_v12  ;;  %vm220_vm9 = vcmp.eq.s32.totalorder %v10676_v23, %v10626_v12  ;;  %v10711_v29 = vadd.s32 72, %v10619_v8  ;;  %s10460_s9 = sshll.u32 %s10532_s19, 4  ;;  %s10461_s9 = int_to_ptr.vmem [resolvable:$false] %s10460_s9 }
  0x1d   : > { %v6954_v9 = vld [vmem:[%s10611_s5 + $0x118] sm:$0xff]  ;;  %v6955_v15 = vld [vmem:[%s10611_s5 + $0x120] sm:$0xff]  ;;  %v6956_v19 = vld [vmem:[%s10611_s5 + $0x128] sm:$0xff]  ;;  %vm221_vm10 = vcmp.eq.s32.totalorder %v10679_v24, %v10626_v12  ;;  %vm222_vm12 = vcmp.eq.s32.totalorder %v10708_v28, %v10626_v12  ;;  %v10742_v33 = vadd.s32 80, %v10619_v8  ;;  %v10745_v34 = vadd.s32 88, %v10619_v8  ;;  %s10462_s10 = scalar_lea.vmem %s10461_s9, 32 }
  0x1e   : > { %v298_v10 = vld [vmem:[%s10611_s5 + $0x18] sm:$0xff]  ;;  %v299_v16 = vld [vmem:[%s10611_s5 + $0x20] sm:$0xff]  ;;  %v300_v20 = vld [vmem:[%s10611_s5 + $0x28] sm:$0xff]  ;;  %vm223_vm13 = vcmp.eq.s32.totalorder %v10711_v29, %v10626_v12  ;;  %v10776_v38 = vadd.s32 96, %v10619_v8  ;;  %v10779_v39 = vadd.s32 104, %v10619_v8  ;;  %v10810_v43 = vadd.s32 112, %v10619_v8 }
  0x1f   : > { %vm9470_vm4 = vmpackc.low %vm215_vm1, %vm214_vm0  ;;  %v6957_v25 = vld [vmem:[%s10611_s5 + $0x130] sm:$0xff]  ;;  %v6958_v30 = vld [vmem:[%s10611_s5 + $0x138] sm:$0xff]  ;;  %vm12010_vm15 = vcmp.eq.s32.totalorder %v10742_v33, %v10626_v12  ;;  %v10813_v44 = vadd.s32 120, %v10619_v8 }
  0x20   : > { %431 = vperm.xlu1 %10415, %v6952_v3   ;;  %426 = vperm.xlu0 %10414, %v6951_v4   ;;  %vm10665_vm5 = vmpackc.low %vm217_vm3, %vm216_vm2  ;;  %v301_v26 = vld [vmem:[%s10611_s5 + $0x30] sm:$0xff]  ;;  %v302_v31 = vld [vmem:[%s10611_s5 + $0x38] sm:$0xff] }
  0x21   : > { %9471 = vmatprep.subr.msk.bf16.mxu0 %vm9470_vm4, %v10521_v21  ;;  %9503 = vmatprep.subr.msk.bf16.mxu1 %vm9470_vm4, %v10521_v21  ;;  %vm10696_vm8 = vmpackc.low %vm219_vm7, %vm218_vm6  ;;  %v6959_v35 = vld [vmem:[%s10611_s5 + $0x140] sm:$0xff]  ;;  %v6960_v40 = vld [vmem:[%s10611_s5 + $0x148] sm:$0xff] }
  0x22   : > { %9473 = vmatpush3.bf16.msk.msra.mxu0 %vm9470_vm4, %v10521_v21  ;;  %9505 = vmatpush3.bf16.msk.msra.mxu1 %vm9470_vm4, %v10521_v21  ;;  %vm10730_vm11 = vmpackc.low %vm221_vm10, %vm220_vm9  ;;  %v303_v36 = vld [vmem:[%s10611_s5 + $0x40] sm:$0xff]  ;;  %vm12011_vm4 = vcmp.eq.s32.totalorder %v10745_v34, %v10626_v12  ;;  %v304_v41 = vld [vmem:[%s10611_s5 + $0x48] sm:$0xff] }
  0x23   : > { %9475 = vmatprep.subr.msk.bf16.mxu0 %vm10665_vm5, %v10521_v21  ;;  %9507 = vmatprep.subr.msk.bf16.mxu1 %vm10665_vm5, %v10521_v21  ;;  %vm10764_vm14 = vmpackc.low %vm223_vm13, %vm222_vm12  ;;  %v6961_v45 = vld [vmem:[%s10611_s5 + $0x150] sm:$0xff]  ;;  %v6962_v47 = vld [vmem:[%s10611_s5 + $0x158] sm:$0xff] }
  0x24   : > { %436 = vperm.xlu1 %10415, %v6953_v6   ;;  %323 = vperm.xlu0 %10414, %v297_v7   ;;  %v305_v46 = vld [vmem:[%s10611_s5 + $0x50] sm:$0xff]  ;;  %v306_v48 = vld [vmem:[%s10611_s5 + $0x58] sm:$0xff]  ;;  %v6963_v49 = vld [vmem:[%s10611_s5 + $0x160] sm:$0xff] }
  0x25   : > { %v307_v50 = vld [vmem:[%s10611_s5 + $0x60] sm:$0xff]  ;;  %v6964_v51 = vld [vmem:[%s10611_s5 + $0x168] sm:$0xff]  ;;  %v6965_v53 = vld [vmem:[%s10611_s5 + $0x170] sm:$0xff] }
  0x26   : > { %9477 = vmatpush3.bf16.msk.msra.mxu0 %vm10665_vm5, %v10521_v21  ;;  %9509 = vmatpush3.bf16.msk.msra.mxu1 %vm10665_vm5, %v10521_v21  ;;  %vm10798_vm5 = vmpackc.low %vm12011_vm4, %vm12010_vm15  ;;  %vm229_vm4 = vcmp.eq.s32.totalorder %v10813_v44, %v10626_v12  ;;  %v308_v52 = vld [vmem:[%s10611_s5 + $0x68] sm:$0xff]  ;;  %v309_v54 = vld [vmem:[%s10611_s5 + $0x70] sm:$0xff] }
  0x27   : > { %9479 = vmatprep.subr.msk.bf16.mxu0 %vm10696_vm8, %v10521_v21  ;;  %9511 = vmatprep.subr.msk.bf16.mxu1 %vm10696_vm8, %v10521_v21  ;;  %v6966_v55 = vld [vmem:[%s10611_s5 + $0x178] sm:$0xff]  ;;  %v6983_v57 = vld [vmem:[%s10611_s5 + $0x180] sm:$0xff]  ;;  %v6984_v59 = vld [vmem:[%s10611_s5 + $0x188] sm:$0xff] }
  0x28   : > { %441 = vperm.xlu1 %10415, %v6954_v9   ;;  %328 = vperm.xlu0 %10414, %v298_v10   ;;  %v310_v56 = vld [vmem:[%s10611_s5 + $0x78] sm:$0xff]  ;;  %v6967_v58 = vld [vmem:[%s10611_s5 + $0x80] sm:$0xff]  ;;  %v6968_v60 = vld [vmem:[%s10611_s5 + $0x88] sm:$0xff] }
  0x29   : > { %v6985_v61 = vld [vmem:[%s10611_s5 + $0x190] sm:$0xff]  ;;  %v6986_v63 = vld [vmem:[%s10611_s5 + $0x198] sm:$0xff]  ;;  %v6987_v1 = vld [vmem:[%s10611_s5 + $0x1a0] sm:$0xff] }
  0x2a   : > { %9481 = vmatpush3.bf16.msk.msra.mxu0 %vm10696_vm8, %v10521_v21  ;;  %9513 = vmatpush3.bf16.msk.msra.mxu1 %vm10696_vm8, %v10521_v21  ;;  %vm12012_vm8 = vcmp.eq.s32.totalorder %v10776_v38, %v10626_v12  ;;  %v6969_v62 = vld [vmem:[%s10611_s5 + $0x90] sm:$0xff]  ;;  %v6970_v0 = vld [vmem:[%s10611_s5 + $0x98] sm:$0xff]  ;;  %v6971_v2 = vld [vmem:[%s10611_s5 + $0xa0] sm:$0xff] }
  0x2b   : > { %9483 = vmatprep.subr.msk.bf16.mxu0 %vm10730_vm11, %v10521_v21  ;;  %9515 = vmatprep.subr.msk.bf16.mxu1 %vm10730_vm11, %v10521_v21  ;;  %v6988_v3 = vld [vmem:[%s10611_s5 + $0x1a8] sm:$0xff]  ;;  %v6989_v5 = vld [vmem:[%s10611_s5 + $0x1b0] sm:$0xff]  ;;  %v6990_v7 = vld [vmem:[%s10611_s5 + $0x1b8] sm:$0xff] }
  0x2c   : > { %446 = vperm.xlu1 %10415, %v6955_v15   ;;  %333 = vperm.xlu0 %10414, %v299_v16   ;;  %v6972_v4 = vld [vmem:[%s10611_s5 + $0xa8] sm:$0xff]  ;;  %v6973_v6 = vld [vmem:[%s10611_s5 + $0xb0] sm:$0xff]  ;;  %v6974_v9 = vld [vmem:[%s10611_s5 + $0xb8] sm:$0xff] }
  0x2d   : > { %v6991_v10 = vld [vmem:[%s10611_s5 + $0x1c0] sm:$0xff]  ;;  %v6992_v16 = vld [vmem:[%s10611_s5 + $0x1c8] sm:$0xff]  ;;  %v6994_v22 = vld [vmem:[%s10611_s5 + $0x1d8] sm:$0xff] }
  0x2e   : > { %9485 = vmatpush3.bf16.msk.msra.mxu0 %vm10730_vm11, %v10521_v21  ;;  %9517 = vmatpush3.bf16.msk.msra.mxu1 %vm10730_vm11, %v10521_v21  ;;  %vm227_vm11 = vcmp.eq.s32.totalorder %v10779_v39, %v10626_v12  ;;  %v6975_v15 = vld [vmem:[%s10611_s5 + $0xc0] sm:$0xff]  ;;  %v6997_v32 = vld [vmem:[%s10611_s5 + $0x1f0] sm:$0xff]  ;;  %v6982_v37 = vld [vmem:[%s10611_s5 + $0xf8] sm:$0xff] }
  0x2f   : > { %9487 = vmatprep.subr.msk.bf16.mxu0 %vm10764_vm14, %v10521_v21  ;;  %9519 = vmatprep.subr.msk.bf16.mxu1 %vm10764_vm14, %v10521_v21  ;;  %vm9494_vm15 = vmpackc.low %vm227_vm11, %vm12012_vm8  ;;  %v6979_v27 = vld [vmem:[%s10611_s5 + $0xe0] sm:$0xff] }
  0x30   : > { %451 = vperm.xlu1 %10415, %v6956_v19   ;;  %338 = vperm.xlu0 %10414, %v300_v20   ;;  %v6976_v19 = vld [vmem:[%s10611_s5 + $0xc8] sm:$0xff]  ;;  %v6993_v20 = vld [vmem:[%s10611_s5 + $0x1d0] sm:$0xff] }
  0x32   : > { %9489 = vmatpush3.bf16.msk.msra.mxu0 %vm10764_vm14, %v10521_v21  ;;  %9521 = vmatpush3.bf16.msk.msra.mxu1 %vm10764_vm14, %v10521_v21  ;;  %vm228_vm14 = vcmp.eq.s32.totalorder %v10810_v43, %v10626_v12 }
  0x33   : > { %9491 = vmatprep.subr.msk.bf16.mxu0 %vm10798_vm5, %v10521_v21  ;;  %9523 = vmatprep.subr.msk.bf16.mxu1 %vm10798_vm5, %v10521_v21  ;;  %vm9498_vm8 = vmpackc.low %vm229_vm4, %vm228_vm14 }
  0x34   : > { %456 = vperm.xlu1 %10415, %v6957_v25   ;;  %343 = vperm.xlu0 %10414, %v301_v26   ;;  %v6978_v25 = vld [vmem:[%s10611_s5 + $0xd8] sm:$0xff]  ;;  %v6995_v26 = vld [vmem:[%s10611_s5 + $0x1e0] sm:$0xff] }
  0x36   : > { %9493 = vmatpush3.bf16.msk.msra.mxu0 %vm10798_vm5, %v10521_v21  ;;  %9525 = vmatpush3.bf16.msk.msra.mxu1 %vm10798_vm5, %v10521_v21 }
  0x37   : > { %9495 = vmatprep.subr.msk.bf16.mxu0 %vm9494_vm15, %v10521_v21  ;;  %9527 = vmatprep.subr.msk.bf16.mxu1 %vm9494_vm15, %v10521_v21 }
  0x38   : > { %461 = vperm.xlu1 %10415, %v6958_v30   ;;  %348 = vperm.xlu0 %10414, %v302_v31   ;;  %v6996_v30 = vld [vmem:[%s10611_s5 + $0x1e8] sm:$0xff] }
  0x39   : > { %v6980_v31 = vld [vmem:[%s10611_s5 + $0xe8] sm:$0xff] }
  0x3a   : > { %9497 = vmatpush3.bf16.msk.msra.mxu0 %vm9494_vm15, %v10521_v21  ;;  %9529 = vmatpush3.bf16.msk.msra.mxu1 %vm9494_vm15, %v10521_v21 }
  0x3b   : > { %9499 = vmatprep.subr.msk.bf16.mxu0 %vm9498_vm8, %v10521_v21  ;;  %9531 = vmatprep.subr.msk.bf16.mxu1 %vm9498_vm8, %v10521_v21 }
  0x3c   : > { %466 = vperm.xlu1 %10415, %v6959_v35   ;;  %353 = vperm.xlu0 %10414, %v303_v36   ;;  %v6981_v35 = vld [vmem:[%s10611_s5 + $0xf0] sm:$0xff]  ;;  %v6998_v36 = vld [vmem:[%s10611_s5 + $0x1f8] sm:$0xff] }
  0x3e   : > { %9501 = vmatpush3.bf16.msk.msra.mxu0 %vm9498_vm8, %v10521_v21  ;;  %9533 = vmatpush3.bf16.msk.msra.mxu1 %vm9498_vm8, %v10521_v21  ;;  %v6977_v21 = vld [vmem:[%s10611_s5 + $0xd0] sm:$0xff]  ;;  %s10526_s5 = smov 64  }
  0x40   : > { %471 = vperm.xlu1 %10415, %v6960_v40   ;;  %358 = vperm.xlu0 %10414, %v304_v41  }
  0x44   : > { %476 = vperm.xlu1 %10415, %v6961_v45   ;;  %363 = vperm.xlu0 %10414, %v305_v46   ;;  %v10906_v45 = vld [vmem:[%s12006_s1] sm:$0xff]  ;;  %v10911_v46 = vld [vmem:[%s12006_s1 + $0x88] sm:$0xff] }
  0x48   : > { %481 = vperm.xlu1 %10415, %v6962_v47   ;;  %368 = vperm.xlu0 %10414, %v306_v48   ;;  %v10916_v47 = vld [vmem:[%s12006_s1 + $0x80] sm:$0xff] }
  0x4c   : > { %486 = vperm.xlu1 %10415, %v6963_v49   ;;  %373 = vperm.xlu0 %10414, %v307_v50  }
  0x50   : > { %491 = vperm.xlu1 %10415, %v6964_v51   ;;  %378 = vperm.xlu0 %10414, %v308_v52  }
  0x54   : > { %496 = vperm.xlu1 %10415, %v6965_v53   ;;  %383 = vperm.xlu0 %10414, %v309_v54   ;;  %v10925_v54 = vld [vmem:[%s12006_s1 + $0x90] sm:$0xff] }
  0x58   : > { %501 = vperm.xlu1 %10415, %v6966_v55   ;;  %388 = vperm.xlu0 %10414, %v310_v56   ;;  %v10930_v55 = vld [vmem:[%s12006_s1 + $0x10] sm:$0xff] }
  0x5c   : > { %668 = vperm.xlu1 %10415, %v6983_v57   ;;  %555 = vperm.xlu0 %10414, %v6967_v58  }
  0x60   : > { %673 = vperm.xlu1 %10415, %v6984_v59   ;;  %560 = vperm.xlu0 %10414, %v6968_v60  }
  0x64   : > { %678 = vperm.xlu1 %10415, %v6985_v61   ;;  %565 = vperm.xlu0 %10414, %v6969_v62  }
  0x68   : > { %683 = vperm.xlu1 %10415, %v6986_v63   ;;  %570 = vperm.xlu0 %10414, %v6970_v0   ;;  %v10941_v0 = vld [vmem:[%s12006_s1 + $0x98] sm:$0xff] }
  0x6c   : > { %688 = vperm.xlu1 %10415, %v6987_v1   ;;  %575 = vperm.xlu0 %10414, %v6971_v2   ;;  %v10946_v1 = vld [vmem:[%s12006_s1 + $0x18] sm:$0xff] }
  0x70   : > { %693 = vperm.xlu1 %10415, %v6988_v3   ;;  %580 = vperm.xlu0 %10414, %v6972_v4  }
  0x74   : > { %698 = vperm.xlu1 %10415, %v6989_v5   ;;  %585 = vperm.xlu0 %10414, %v6973_v6  }
  0x78   : > { %703 = vperm.xlu1 %10415, %v6990_v7   ;;  %590 = vperm.xlu0 %10414, %v6974_v9   ;;  %v10957_v9 = vld [vmem:[%s12006_s1 + $0xa0] sm:$0xff] }
  0x7c   : > { %708 = vperm.xlu1 %10415, %v6991_v10   ;;  %595 = vperm.xlu0 %10414, %v6975_v15   ;;  %v10962_v10 = vld [vmem:[%s12006_s1 + $0x20] sm:$0xff] }
  0x80   : > { %713 = vperm.xlu1 %10415, %v6992_v16   ;;  %600 = vperm.xlu0 %10414, %v6976_v19  }
  0x84   : > { %718 = vperm.xlu1 %10415, %v6993_v20   ;;  %605 = vperm.xlu0 %10414, %v6977_v21  }
  0x88   : > { %723 = vperm.xlu1 %10415, %v6994_v22   ;;  %610 = vperm.xlu0 %10414, %v6978_v25   ;;  %v10972_v25 = vld [vmem:[%s12006_s1 + $0xa8] sm:$0xff] }
  0x8c   : > { %728 = vperm.xlu1 %10415, %v6995_v26   ;;  %615 = vperm.xlu0 %10414, %v6979_v27   ;;  %v10977_v26 = vld [vmem:[%s12006_s1 + $0x28] sm:$0xff] }
  0x90   : > { %733 = vperm.xlu1 %10415, %v6996_v30   ;;  %620 = vperm.xlu0 %10414, %v6980_v31  }
  0x94   : > { %738 = vperm.xlu1 %10415, %v6997_v32   ;;  %625 = vperm.xlu0 %10414, %v6981_v35  }
  0x98   : > { %743 = vperm.xlu1 %10415, %v6998_v36   ;;  %630 = vperm.xlu0 %10414, %v6982_v37   ;;  %v10987_v37 = vld [vmem:[%s12006_s1 + $0xb0] sm:$0xff] }
  0x9b   : > { %v319_v40 = vpop.permute.xlu1 %318  ;;  %v314_v41 = vpop.permute.xlu0 %313 }
  0x9c   : > { %v392_v50 = vmul.f32 %v319_v40, %v10901_v42  ;;  %v391_v51 = vmul.f32 %v314_v41, %v10906_v45  ;;  %v10992_v40 = vld [vmem:[%s12006_s1 + $0x30] sm:$0xff] }
  0x9f   : > { %v432_v48 = vpop.permute.xlu1 %431  ;;  %v427_v49 = vpop.permute.xlu0 %426 }
  0xa0   : > { %v505_v52 = vmul.f32 %v10911_v46, %v432_v48  ;;  %v504_v53 = vmul.f32 %v10916_v47, %v427_v49 }
  0xa2   : > { %v521_v56 = vadd.f32 %v505_v52, %v392_v50  ;;  %v520_v57 = vadd.f32 %v504_v53, %v391_v51  ;;  %v11002_v53 = vld [vmem:[%s12006_s1 + $0xb8] sm:$0xff] }
  0xa3   : > { %v437_v58 = vpop.permute.xlu1 %436  ;;  %v324_v59 = vpop.permute.xlu0 %323 }
  0xa4   : > { %v10932_v60 = vmul.f32 0.0625, %v521_v56  ;;  %v10934_v61 = vmul.f32 0.0625, %v520_v57  ;;  %v506_v62 = vmul.f32 %v10925_v54, %v437_v58  ;;  %v393_v63 = vmul.f32 %v324_v59, %v10930_v55  ;;  %v11007_v56 = vld [vmem:[%s12006_s1 + $0x38] sm:$0xff] }
  0xa6   : > { %12057 = vst [vmem:[#allocation5_spill] sm:$0xff] %v10932_v60  ;;  %12058 = vst [vmem:[#allocation6_spill] sm:$0xff] %v10934_v61  ;;  %v522_v2 = vadd.f32 %v506_v62, %v393_v63  ;;  %7983 = vmatprep.mubr.f32.mxu0 %v10934_v61 }
  0xa7   : > { %v442_v3 = vpop.permute.xlu1 %441  ;;  %7984 = vmatmul.mubr.f32.vlgmr.msra.gmra.mrb[0].mxu0 %v10932_v60  ;;  %v329_v4 = vpop.permute.xlu0 %328 }
  0xa8   : > { %v10950_v5 = vmul.f32 0.0625, %v522_v2  ;;  %v507_v6 = vmul.f32 %v10941_v0, %v442_v3  ;;  %v394_v7 = vmul.f32 %v329_v4, %v10946_v1  ;;  %v11017_v3 = vld [vmem:[%s12006_s1 + $0xc0] sm:$0xff] }
  0xa9   : > { %v11022_v4 = vld [vmem:[%s12006_s1 + $0x40] sm:$0xff] }
  0xaa   : > { %12059 = vst [vmem:[#allocation7_spill] sm:$0xff] %v10950_v5  ;;  %v523_v15 = vadd.f32 %v507_v6, %v394_v7  ;;  %7986 = vmatprep.mubr.f32.mxu0 %v10950_v5 }
  0xab   : > { %v447_v16 = vpop.permute.xlu1 %446  ;;  %v334_v19 = vpop.permute.xlu0 %333 }
  0xac   : > { %v10965_v20 = vmul.f32 0.0625, %v523_v15  ;;  %v508_v21 = vmul.f32 %v10957_v9, %v447_v16  ;;  %v395_v22 = vmul.f32 %v334_v19, %v10962_v10 }
  0xad   : > { %v12075_v43 = vld [vmem:[#allocation5_spill] sm:$0xff] }
  0xae   : > { %12060 = vst [vmem:[#allocation8_spill] sm:$0xff] %v10965_v20  ;;  %v524_v27 = vadd.f32 %v508_v21, %v395_v22  ;;  %7987 = vmatmul.mubr.f32.gmra.mrb[2].mxu0 %v10965_v20  ;;  %v11032_v22 = vld [vmem:[%s12006_s1 + $0xc8] sm:$0xff] }
  0xaf   : > { %v452_v30 = vpop.permute.xlu1 %451  ;;  %v339_v31 = vpop.permute.xlu0 %338 }
  0xb0   : > { %v10980_v32 = vmul.f32 0.0625, %v524_v27  ;;  %v509_v35 = vmul.f32 %v10972_v25, %v452_v30  ;;  %v396_v36 = vmul.f32 %v339_v31, %v10977_v26  ;;  %v11037_v27 = vld [vmem:[%s12006_s1 + $0x48] sm:$0xff] }
  0xb2   : > { %12061 = vst [vmem:[#allocation9_spill] sm:$0xff] %v10980_v32  ;;  %v525_v41 = vadd.f32 %v509_v35, %v396_v36  ;;  %7989 = vmatprep.mubr.f32.mxu0 %v10980_v32 }
  0xb3   : > { %v457_v48 = vpop.permute.xlu1 %456  ;;  %v344_v49 = vpop.permute.xlu0 %343 }
  0xb4   : > { %v10995_v50 = vmul.f32 0.0625, %v525_v41  ;;  %v510_v51 = vmul.f32 %v10987_v37, %v457_v48  ;;  %v397_v52 = vmul.f32 %v344_v49, %v10992_v40  ;;  %v11047_v49 = vld [vmem:[%s12006_s1 + $0xd0] sm:$0xff] }
  0xb6   : > { %12062 = vst [vmem:[#allocation10_spill] sm:$0xff] %v10995_v50  ;;  %v526_v57 = vadd.f32 %v510_v51, %v397_v52  ;;  %7990 = vmatmul.mubr.f32.gmra.mrb[4].mxu0 %v10995_v50  ;;  %v11052_v51 = vld [vmem:[%s12006_s1 + $0x50] sm:$0xff] }
  0xb7   : > { %v462_v58 = vpop.permute.xlu1 %461  ;;  %v349_v59 = vpop.permute.xlu0 %348 }
  0xb8   : > { %v11010_v62 = vmul.f32 0.0625, %v526_v57  ;;  %v511_v63 = vmul.f32 %v11002_v53, %v462_v58  ;;  %v398_v2 = vmul.f32 %v349_v59, %v11007_v56 }
  0xba   : > { %12063 = vst [vmem:[#allocation11_spill] sm:$0xff] %v11010_v62  ;;  %v527_v6 = vadd.f32 %v511_v63, %v398_v2  ;;  %7992 = vmatprep.mubr.f32.mxu0 %v11010_v62  ;;  %v11127_v62 = vld [vmem:[%s12006_s1 + $0x78] sm:$0xff] }
  0xbb   : > { %v467_v7 = vpop.permute.xlu1 %466  ;;  %v354_v15 = vpop.permute.xlu0 %353 }
  0xbc   : > { %v11025_v16 = vmul.f32 0.0625, %v527_v6  ;;  %v512_v19 = vmul.f32 %v11017_v3, %v467_v7  ;;  %v399_v21 = vmul.f32 %v354_v15, %v11022_v4  ;;  %v11062_v6 = vld [vmem:[%s12006_s1 + $0xd8] sm:$0xff] }
  0xbd   : > { %v11067_v7 = vld [vmem:[%s12006_s1 + $0x58] sm:$0xff] }
  0xbe   : > { %12064 = vst [vmem:[#allocation12_spill] sm:$0xff] %v11025_v16  ;;  %v528_v30 = vadd.f32 %v512_v19, %v399_v21  ;;  %7993 = vmatmul.mubr.f32.gmra.mrb[6].mxu0 %v11025_v16  ;;  %v11122_v16 = vld [vmem:[%s12006_s1 + $0xf8] sm:$0xff] }
  0xbf   : > { %v472_v31 = vpop.permute.xlu1 %471  ;;  %v359_v35 = vpop.permute.xlu0 %358 }
  0xc0   : > { %v11040_v36 = vmul.f32 0.0625, %v528_v30  ;;  %v513_v41 = vmul.f32 %v11032_v22, %v472_v31  ;;  %v400_v48 = vmul.f32 %v359_v35, %v11037_v27 }
  0xc2   : > { %12065 = vst [vmem:[#allocation13_spill] sm:$0xff] %v11040_v36  ;;  %v529_v52 = vadd.f32 %v513_v41, %v400_v48  ;;  %7995 = vmatprep.mubr.f32.mxu0 %v11040_v36  ;;  %v11077_v41 = vld [vmem:[%s12006_s1 + $0xe0] sm:$0xff]  ;;  %v11112_v36 = vld [vmem:[%s12006_s1 + $0x70] sm:$0xff] }
  0xc3   : > { %v477_v57 = vpop.permute.xlu1 %476  ;;  %v364_v58 = vpop.permute.xlu0 %363  ;;  %v11082_v48 = vld [vmem:[%s12006_s1 + $0x60] sm:$0xff] }
  0xc4   : > { %v11055_v59 = vmul.f32 0.0625, %v529_v52  ;;  %v514_v63 = vmul.f32 %v11047_v49, %v477_v57  ;;  %v401_v2 = vmul.f32 %v364_v58, %v11052_v51 }
  0xc6   : > { %12066 = vst [vmem:[#allocation14_spill] sm:$0xff] %v11055_v59  ;;  %v530_v15 = vadd.f32 %v514_v63, %v401_v2  ;;  %7996 = vmatmul.mubr.f32.gmra.mrb[8].mxu0 %v11055_v59  ;;  %v11107_v59 = vld [vmem:[%s12006_s1 + $0xf0] sm:$0xff] }
  0xc7   : > { %v482_v19 = vpop.permute.xlu1 %481  ;;  %v369_v21 = vpop.permute.xlu0 %368 }
  0xc8   : > { %v11070_v30 = vmul.f32 0.0625, %v530_v15  ;;  %v515_v31 = vmul.f32 %v11062_v6, %v482_v19  ;;  %v402_v35 = vmul.f32 %v369_v21, %v11067_v7  ;;  %v11092_v19 = vld [vmem:[%s12006_s1 + $0xe8] sm:$0xff] }
  0xc9   : > { %v11097_v21 = vld [vmem:[%s12006_s1 + $0x68] sm:$0xff] }
  0xca   : > { %12067 = vst [vmem:[#allocation15_spill] sm:$0xff] %v11070_v30  ;;  %v531_v52 = vadd.f32 %v515_v31, %v402_v35  ;;  %7998 = vmatprep.mubr.f32.mxu0 %v11070_v30 }
  0xcb   : > { %v487_v57 = vpop.permute.xlu1 %486  ;;  %v374_v58 = vpop.permute.xlu0 %373 }
  0xcc   : > { %v11085_v63 = vmul.f32 0.0625, %v531_v52  ;;  %v516_v2 = vmul.f32 %v11077_v41, %v487_v57  ;;  %v403_v15 = vmul.f32 %v374_v58, %v11082_v48 }
  0xce   : > { %12068 = vst [vmem:[#allocation16_spill] sm:$0xff] %v11085_v63  ;;  %v532_v31 = vadd.f32 %v516_v2, %v403_v15  ;;  %7999 = vmatmul.mubr.f32.gmra.mrb[10].mxu0 %v11085_v63 }
  0xcf   : > { %v492_v35 = vpop.permute.xlu1 %491  ;;  %v379_v52 = vpop.permute.xlu0 %378 }
  0xd0   : > { %v11100_v30 = vmul.f32 0.0625, %v532_v31  ;;  %v517_v57 = vmul.f32 %v11092_v19, %v492_v35  ;;  %v404_v58 = vmul.f32 %v379_v52, %v11097_v21 }
  0xd2   : > { %12069 = vst [vmem:[#allocation17_spill] sm:$0xff] %v11100_v30  ;;  %v533_v2 = vadd.f32 %v517_v57, %v404_v58  ;;  %8001 = vmatprep.mubr.f32.mxu0 %v11100_v30 }
  0xd3   : > { %v497_v15 = vpop.permute.xlu1 %496  ;;  %v384_v31 = vpop.permute.xlu0 %383 }
  0xd4   : > { %v11115_v63 = vmul.f32 0.0625, %v533_v2  ;;  %v518_v35 = vmul.f32 %v11107_v59, %v497_v15  ;;  %v405_v52 = vmul.f32 %v384_v31, %v11112_v36 }
  0xd6   : > { %12070 = vst [vmem:[#allocation18_spill] sm:$0xff] %v11115_v63  ;;  %v534_v57 = vadd.f32 %v518_v35, %v405_v52  ;;  %8002 = vmatmul.mubr.f32.gmra.mrb[12].mxu0 %v11115_v63 }
  0xd7   : > { %v502_v58 = vpop.permute.xlu1 %501  ;;  %v389_v2 = vpop.permute.xlu0 %388 }
  0xd8   : > { %v11130_v30 = vmul.f32 0.0625, %v534_v57  ;;  %v519_v15 = vmul.f32 %v11122_v16, %v502_v58  ;;  %v406_v31 = vmul.f32 %v389_v2, %v11127_v62 }
  0xda   : > { %v535_v50 = vadd.f32 %v519_v15, %v406_v31  ;;  %8004 = vmatprep.mubr.f32.mxu0 %v11130_v30 }
  0xdb   : > { %v669_v32 = vpop.permute.xlu1 %668  ;;  %v556_v20 = vpop.permute.xlu0 %555 }
  0xdc   : > { %v11135_v5 = vmul.f32 0.0625, %v535_v50  ;;  %v746_v60 = vmul.f32 %v10916_v47, %v669_v32  ;;  %v633_v35 = vmul.f32 %v556_v20, %v10906_v45 }
  0xde   : > { %v762_v52 = vadd.f32 %v746_v60, %v633_v35  ;;  %8005 = vmatmul.mubr.f32.gmra.mrb[14].mxu0 %v11135_v5 }
  0xdf   : > { %v674_v57 = vpop.permute.xlu1 %673  ;;  %8095 = vmatprep.mubr.f32.mxu0 %v10934_v61  ;;  %v561_v58 = vpop.permute.xlu0 %560 }
  0xe0   : > { %v11141_v63 = vmul.f32 0.0625, %v762_v52  ;;  %v747_v2 = vmul.f32 %v10911_v46, %v674_v57  ;;  %v634_v15 = vmul.f32 %v561_v58, %v10901_v42 }
  0xe2   : > { %12071 = vst [vmem:[#allocation19_spill] sm:$0xff] %v11141_v63  ;;  %v763_v31 = vadd.f32 %v747_v2, %v634_v15  ;;  %8039 = vmatprep.mubr.f32.mxu1 %v11141_v63 }
  0xe3   : > { %v679_v50 = vpop.permute.xlu1 %678  ;;  %v566_v47 = vpop.permute.xlu0 %565 }
  0xe4   : > { %v11146_v32 = vmul.f32 0.0625, %v763_v31  ;;  %v748_v45 = vmul.f32 %v10925_v54, %v679_v50  ;;  %v635_v60 = vmul.f32 %v566_v47, %v10930_v55 }
  0xe6   : > { %v764_v20 = vadd.f32 %v748_v45, %v635_v60  ;;  %8040 = vmatmul.mubr.f32.vlgmr.msra.gmra.mrb[0].mxu1 %v11146_v32 }
  0xe7   : > { %v684_v35 = vpop.permute.xlu1 %683  ;;  %v571_v52 = vpop.permute.xlu0 %570 }
  0xe8   : > { %v11151_v61 = vmul.f32 0.0625, %v764_v20  ;;  %v749_v42 = vmul.f32 %v10941_v0, %v684_v35  ;;  %v636_v46 = vmul.f32 %v571_v52, %v10946_v1 }
  0xea   : > { %v765_v57 = vadd.f32 %v749_v42, %v636_v46  ;;  %8042 = vmatprep.mubr.f32.mxu1 %v11151_v61 }
  0xeb   : > { %v689_v58 = vpop.permute.xlu1 %688  ;;  %v576_v2 = vpop.permute.xlu0 %575 }
  0xec   : > { %v11156_v15 = vmul.f32 0.0625, %v765_v57  ;;  %v750_v54 = vmul.f32 %v10957_v9, %v689_v58  ;;  %v637_v55 = vmul.f32 %v576_v2, %v10962_v10 }
  0xee   : > { %v766_v31 = vadd.f32 %v750_v54, %v637_v55  ;;  %8043 = vmatmul.mubr.f32.gmra.mrb[2].mxu1 %v11156_v15 }
  0xef   : > { %v694_v50 = vpop.permute.xlu1 %693  ;;  %v581_v47 = vpop.permute.xlu0 %580 }
  0xf0   : > { %v11161_v45 = vmul.f32 0.0625, %v766_v31  ;;  %v751_v0 = vmul.f32 %v10972_v25, %v694_v50  ;;  %v638_v1 = vmul.f32 %v581_v47, %v10977_v26 }
  0xf2   : > { %v767_v60 = vadd.f32 %v751_v0, %v638_v1  ;;  %8045 = vmatprep.mubr.f32.mxu1 %v11161_v45 }
  0xf3   : > { %v699_v20 = vpop.permute.xlu1 %698  ;;  %v586_v35 = vpop.permute.xlu0 %585 }
  0xf4   : > { %v11166_v52 = vmul.f32 0.0625, %v767_v60  ;;  %v752_v9 = vmul.f32 %v10987_v37, %v699_v20  ;;  %v639_v10 = vmul.f32 %v586_v35, %v10992_v40 }
  0xf6   : > { %v768_v42 = vadd.f32 %v752_v9, %v639_v10  ;;  %8046 = vmatmul.mubr.f32.gmra.mrb[4].mxu1 %v11166_v52 }
  0xf7   : > { %v704_v46 = vpop.permute.xlu1 %703  ;;  %v591_v57 = vpop.permute.xlu0 %590 }
  0xf8   : > { %v11171_v58 = vmul.f32 0.0625, %v768_v42  ;;  %v753_v25 = vmul.f32 %v11002_v53, %v704_v46  ;;  %v640_v26 = vmul.f32 %v591_v57, %v11007_v56 }
  0xfa   : > { %v769_v2 = vadd.f32 %v753_v25, %v640_v26  ;;  %8048 = vmatprep.mubr.f32.mxu1 %v11171_v58 }
  0xfb   : > { %v709_v54 = vpop.permute.xlu1 %708  ;;  %v596_v55 = vpop.permute.xlu0 %595 }
  0xfc   : > { %v11176_v31 = vmul.f32 0.0625, %v769_v2  ;;  %v754_v37 = vmul.f32 %v11017_v3, %v709_v54  ;;  %v641_v40 = vmul.f32 %v596_v55, %v11022_v4 }
  0xfe   : > { %v770_v50 = vadd.f32 %v754_v37, %v641_v40  ;;  %8049 = vmatmul.mubr.f32.gmra.mrb[6].mxu1 %v11176_v31 }
  0xff   : > { %v714_v47 = vpop.permute.xlu1 %713  ;;  %v601_v0 = vpop.permute.xlu0 %600 }
 0x100   : > { %v11181_v1 = vmul.f32 0.0625, %v770_v50  ;;  %v755_v53 = vmul.f32 %v11032_v22, %v714_v47  ;;  %v642_v56 = vmul.f32 %v601_v0, %v11037_v27 }
 0x102   : > { %v771_v60 = vadd.f32 %v755_v53, %v642_v56  ;;  %8051 = vmatprep.mubr.f32.mxu1 %v11181_v1 }
 0x103   : > { %v719_v20 = vpop.permute.xlu1 %718  ;;  %v606_v35 = vpop.permute.xlu0 %605 }
 0x104   : > { %v11186_v9 = vmul.f32 0.0625, %v771_v60  ;;  %v756_v3 = vmul.f32 %v11047_v49, %v719_v20  ;;  %v643_v4 = vmul.f32 %v606_v35, %v11052_v51 }
 0x106   : > { %v772_v10 = vadd.f32 %v756_v3, %v643_v4  ;;  %8052 = vmatmul.mubr.f32.gmra.mrb[8].mxu1 %v11186_v9 }
 0x107   : > { %v724_v42 = vpop.permute.xlu1 %723  ;;  %v611_v46 = vpop.permute.xlu0 %610 }
 0x108   : > { %v11191_v57 = vmul.f32 0.0625, %v772_v10  ;;  %v757_v22 = vmul.f32 %v11062_v6, %v724_v42  ;;  %v644_v27 = vmul.f32 %v611_v46, %v11067_v7 }
 0x10a   : > { %v773_v25 = vadd.f32 %v757_v22, %v644_v27  ;;  %8054 = vmatprep.mubr.f32.mxu1 %v11191_v57 }
 0x10b   : > { %v729_v26 = vpop.permute.xlu1 %728  ;;  %v616_v2 = vpop.permute.xlu0 %615 }
 0x10c   : > { %v11196_v54 = vmul.f32 0.0625, %v773_v25  ;;  %v758_v49 = vmul.f32 %v11077_v41, %v729_v26  ;;  %v645_v51 = vmul.f32 %v616_v2, %v11082_v48 }
 0x10e   : > { %v774_v55 = vadd.f32 %v758_v49, %v645_v51  ;;  %8055 = vmatmul.mubr.f32.gmra.mrb[10].mxu1 %v11196_v54 }
 0x10f   : > { %v734_v37 = vpop.permute.xlu1 %733  ;;  %v621_v40 = vpop.permute.xlu0 %620 }
 0x110   : > { %v11201_v50 = vmul.f32 0.0625, %v774_v55  ;;  %v759_v6 = vmul.f32 %v11092_v19, %v734_v37  ;;  %v646_v7 = vmul.f32 %v621_v40, %v11097_v21 }
 0x112   : > { %v775_v47 = vadd.f32 %v759_v6, %v646_v7  ;;  %8057 = vmatprep.mubr.f32.mxu1 %v11201_v50 }
 0x113   : > { %v739_v0 = vpop.permute.xlu1 %738  ;;  %v626_v53 = vpop.permute.xlu0 %625 }
 0x114   : > { %v11206_v56 = vmul.f32 0.0625, %v775_v47  ;;  %v760_v41 = vmul.f32 %v11107_v59, %v739_v0  ;;  %v647_v48 = vmul.f32 %v626_v53, %v11112_v36  ;;  %v12041_v36 = vmov 0.0  }
 0x115   : > { %v11224_v59 = vsel %vm215_vm1, 1.0, %v12041_v36  ;;  %v11238_v11 = vsel %vm217_vm3, 1.0, %v12041_v36  ;;  %v11244_v8 = vsel %vm216_vm2, 1.0, %v12041_v36  ;;  %v11252_v14 = vsel %vm219_vm7, 1.0, %v12041_v36 }
 0x116   : > { %v776_v60 = vadd.f32 %v760_v41, %v647_v48  ;;  %8058 = vmatmul.mubr.f32.gmra.mrb[12].mxu1 %v11206_v56  ;;  %v11258_v13 = vsel %vm218_vm6, 1.0, %v12041_v36  ;;  %v11266_v18 = vsel %vm221_vm10, 1.0, %v12041_v36  ;;  %v11272_v17 = vsel %vm220_vm9, 1.0, %v12041_v36 }
 0x117   : > { %v744_v20 = vpop.permute.xlu1 %743  ;;  %v631_v35 = vpop.permute.xlu0 %630  ;;  %v11280_v24 = vsel %vm223_vm13, 1.0, %v12041_v36  ;;  %v11286_v23 = vsel %vm222_vm12, 1.0, %v12041_v36  ;;  %vm12073_vm1 = vcmp.eq.s32.totalorder %v10742_v33, %v10626_v12  ;;  %vm12074_vm2 = vcmp.eq.s32.totalorder %v10776_v38, %v10626_v12 }
 0x118   : > { %v11211_v3 = vmul.f32 0.0625, %v776_v60  ;;  %v761_v19 = vmul.f32 %v11122_v16, %v744_v20  ;;  %v648_v21 = vmul.f32 %v631_v35, %v11127_v62  ;;  %v11230_v62 = vsel %vm214_vm0, 1.0, %v12041_v36 }
 0x119   : > { %vm12072_vm0 = vcmp.eq.s32.totalorder %v10745_v34, %v10626_v12  ;;  %v11300_v28 = vsel %vm12073_vm1, 1.0, %v12041_v36  ;;  %v11308_v34 = vsel %vm227_vm11, 1.0, %v12041_v36  ;;  %v11314_v33 = vsel %vm12074_vm2, 1.0, %v12041_v36 }
 0x11a   : > { %v777_v4 = vadd.f32 %v761_v19, %v648_v21  ;;  %8060 = vmatprep.mubr.f32.mxu1 %v11211_v3  ;;  %v11294_v29 = vsel %vm12072_vm0, 1.0, %v12041_v36  ;;  %v11322_v39 = vsel %vm229_vm4, 1.0, %v12041_v36  ;;  %v11328_v38 = vsel %vm228_vm14, 1.0, %v12041_v36 }
 0x11b   : > { %vm4778_vm3 = vcmask 130048   ;;  %vm10531_vm6 = vmmov 0  }
 0x11c   : > { %v11216_v10 = vmul.f32 0.0625, %v777_v4 }
 0x11e   : > { %8061 = vmatmul.mubr.f32.gmra.mrb[14].mxu1 %v11216_v10 }
 0x11f   : > { %8151 = vmatprep.mubr.f32.mxu1 %v11141_v63 }
 0x17a   : > { %v7985_v42 = vpop.f32.mrb[0].mxu0 }
 0x17b   : > { %v956_v16 = vmul.f32 0.125, %v7985_v42  ;;  %v876_v46 = vpop.f32.mrb[1].mxu0 }
 0x17c   : > { %v955_v22 = vmul.f32 0.125, %v876_v46 }
 0x17d   : > { %v972_v27 = vadd.f32 %v11224_v59, %v956_v16 }
 0x17e   : > { %v971_v25 = vadd.f32 %v11230_v62, %v955_v22 }
 0x180   : > { %v9534_v26 = vpack.c.bf16 %v972_v27, %v971_v25 }
 0x181   : > { %v7988_v2 = vpop.f32.mrb[2].mxu0 }
 0x182   : > { %v958_v49 = vmul.f32 0.125, %v7988_v2  ;;  %v886_v51 = vpop.f32.mrb[3].mxu0  ;;  %9535 = vmatprep.subr.bf16.mxu0 %v9534_v26 }
 0x183   : > { %v957_v55 = vmul.f32 0.125, %v886_v51  ;;  %9537 = vmatpush3.bf16.msra.mxu0 %v9534_v26 }
 0x184   : > { %v974_v37 = vadd.f32 %v11238_v11, %v958_v49 }
 0x185   : > { %v973_v40 = vadd.f32 %v11244_v8, %v957_v55 }
 0x187   : > { %v9538_v6 = vpack.c.bf16 %v974_v37, %v973_v40 }
 0x189   : > { %v7991_v7 = vpop.f32.mrb[4].mxu0  ;;  %9539 = vmatprep.subr.bf16.mxu0 %v9538_v6 }
 0x18a   : > { %v960_v47 = vmul.f32 0.125, %v7991_v7  ;;  %v896_v0 = vpop.f32.mrb[5].mxu0  ;;  %9541 = vmatpush3.bf16.msra.mxu0 %v9538_v6 }
 0x18b   : > { %v959_v53 = vmul.f32 0.125, %v896_v0 }
 0x18c   : > { %v976_v41 = vadd.f32 %v11252_v14, %v960_v47 }
 0x18d   : > { %v975_v48 = vadd.f32 %v11258_v13, %v959_v53 }
 0x18f   : > { %v9542_v60 = vpack.c.bf16 %v976_v41, %v975_v48 }
 0x191   : > { %v7994_v20 = vpop.f32.mrb[6].mxu0  ;;  %9543 = vmatprep.subr.bf16.mxu0 %v9542_v60 }
 0x192   : > { %v962_v35 = vmul.f32 0.125, %v7994_v20  ;;  %v906_v19 = vpop.f32.mrb[7].mxu0  ;;  %9545 = vmatpush3.bf16.msra.mxu0 %v9542_v60 }
 0x193   : > { %v961_v21 = vmul.f32 0.125, %v906_v19 }
 0x194   : > { %v978_v4 = vadd.f32 %v11266_v18, %v962_v35 }
 0x195   : > { %v977_v42 = vadd.f32 %v11272_v17, %v961_v21 }
 0x197   : > { %v9546_v16 = vpack.c.bf16 %v978_v4, %v977_v42 }
 0x199   : > { %v7997_v46 = vpop.f32.mrb[8].mxu0  ;;  %9547 = vmatprep.subr.bf16.mxu0 %v9546_v16 }
 0x19a   : > { %v964_v22 = vmul.f32 0.125, %v7997_v46  ;;  %v916_v27 = vpop.f32.mrb[9].mxu0  ;;  %9549 = vmatpush3.bf16.msra.mxu0 %v9546_v16 }
 0x19b   : > { %v963_v25 = vmul.f32 0.125, %v916_v27 }
 0x19c   : > { %v980_v26 = vadd.f32 %v11280_v24, %v964_v22 }
 0x19d   : > { %v979_v2 = vadd.f32 %v11286_v23, %v963_v25 }
 0x19f   : > { %v9550_v49 = vpack.c.bf16 %v980_v26, %v979_v2 }
 0x1a1   : > { %v8000_v51 = vpop.f32.mrb[10].mxu0  ;;  %9551 = vmatprep.subr.bf16.mxu0 %v9550_v49 }
 0x1a2   : > { %v966_v55 = vmul.f32 0.125, %v8000_v51  ;;  %v926_v37 = vpop.f32.mrb[11].mxu0  ;;  %9553 = vmatpush3.bf16.msra.mxu0 %v9550_v49  ;;  %v12076_v49 = vld [vmem:[#allocation7_spill] sm:$0xff] }
 0x1a3   : > { %v965_v40 = vmul.f32 0.125, %v926_v37  ;;  %v12077_v37 = vld [vmem:[#allocation8_spill] sm:$0xff] }
 0x1a4   : > { %v982_v6 = vadd.f32 %v11294_v29, %v966_v55 }
 0x1a5   : > { %v981_v7 = vadd.f32 %v11300_v28, %v965_v40 }
 0x1a7   : > { %v9554_v47 = vpack.c.bf16 %v982_v6, %v981_v7  ;;  %v12078_v7 = vld [vmem:[#allocation9_spill] sm:$0xff] }
 0x1a9   : > { %v8003_v0 = vpop.f32.mrb[12].mxu0  ;;  %9555 = vmatprep.subr.bf16.mxu0 %v9554_v47 }
 0x1aa   : > { %v968_v53 = vmul.f32 0.125, %v8003_v0  ;;  %v936_v41 = vpop.f32.mrb[13].mxu0  ;;  %9557 = vmatpush3.bf16.msra.mxu0 %v9554_v47 }
 0x1ab   : > { %v967_v48 = vmul.f32 0.125, %v936_v41  ;;  %v12079_v41 = vld [vmem:[#allocation10_spill] sm:$0xff] }
 0x1ac   : > { %v984_v60 = vadd.f32 %v11308_v34, %v968_v53 }
 0x1ad   : > { %v983_v20 = vadd.f32 %v11314_v33, %v967_v48  ;;  %v12080_v48 = vld [vmem:[#allocation11_spill] sm:$0xff] }
 0x1af   : > { %v9558_v35 = vpack.c.bf16 %v984_v60, %v983_v20 }
 0x1b1   : > { %v8006_v19 = vpop.f32.mrb[14].mxu0  ;;  %9559 = vmatprep.subr.bf16.mxu0 %v9558_v35 }
 0x1b2   : > { %v970_v21 = vmul.f32 0.125, %v8006_v19  ;;  %v946_v4 = vpop.f32.mrb[15].mxu0  ;;  %9561 = vmatpush3.bf16.msra.mxu0 %v9558_v35  ;;  %v12081_v35 = vld [vmem:[#allocation12_spill] sm:$0xff] }
 0x1b3   : > { %v969_v42 = vmul.f32 0.125, %v946_v4  ;;  %v12082_v4 = vld [vmem:[#allocation13_spill] sm:$0xff] }
 0x1b4   : > { %v986_v16 = vadd.f32 %v11322_v39, %v970_v21 }
 0x1b5   : > { %v985_v46 = vadd.f32 %v11328_v38, %v969_v42 }
 0x1b7   : > { %v9562_v22 = vpack.c.bf16 %v986_v16, %v985_v46 }
 0x1b9   : > { %v8041_v44 = vpop.f32.mrb[0].mxu1  ;;  %9563 = vmatprep.subr.bf16.mxu0 %v9562_v22 }
 0x1ba   : > { %v1133_v27 = vmul.f32 0.125, %v8041_v44  ;;  %v1053_v25 = vpop.f32.mrb[1].mxu1  ;;  %9565 = vmatpush3.bf16.msra.mxu0 %v9562_v22  ;;  %v12083_v22 = vld [vmem:[#allocation14_spill] sm:$0xff]  ;;  %v12084_v44 = vld [vmem:[#allocation15_spill] sm:$0xff] }
 0x1bb   : > { %v1132_v26 = vmul.f32 0.125, %v1053_v25 }
 0x1bc   : > { %v1149_v2 = vadd.f32 %v11224_v59, %v1133_v27 }
 0x1bd   : > { %v1148_v12 = vadd.f32 %v11230_v62, %v1132_v26  ;;  %8096 = vmatmul.mubr.f32.vlgmr.msra.gmra.mrb[16].mxu0 %v12075_v43  ;;  %v12085_v26 = vld [vmem:[#allocation16_spill] sm:$0xff] }
 0x1be   : > { %8098 = vmatprep.mubr.f32.mxu0 %v12076_v49 }
 0x1bf   : > { %v9566_v51 = vpack.c.bf16 %v1149_v2, %v1148_v12 }
 0x1c1   : > { %v8044_v55 = vpop.f32.mrb[2].mxu1  ;;  %8099 = vmatmul.mubr.f32.gmra.mrb[18].mxu0 %v12077_v37  ;;  %9567 = vmatprep.subr.bf16.mxu1 %v9566_v51 }
 0x1c2   : > { %v1135_v40 = vmul.f32 0.125, %v8044_v55  ;;  %v1063_v6 = vpop.f32.mrb[3].mxu1  ;;  %8101 = vmatprep.mubr.f32.mxu0 %v12078_v7  ;;  %9569 = vmatpush3.bf16.msra.mxu1 %v9566_v51  ;;  %v12086_v51 = vld [vmem:[#allocation17_spill] sm:$0xff] }
 0x1c3   : > { %v1134_v47 = vmul.f32 0.125, %v1063_v6 }
 0x1c4   : > { %v1151_v0 = vadd.f32 %v11238_v11, %v1135_v40 }
 0x1c5   : > { %v1150_v53 = vadd.f32 %v11244_v8, %v1134_v47  ;;  %8102 = vmatmul.mubr.f32.gmra.mrb[20].mxu0 %v12079_v41  ;;  %v12087_v47 = vld [vmem:[#allocation18_spill] sm:$0xff] }
 0x1c6   : > { %8104 = vmatprep.mubr.f32.mxu0 %v12080_v48 }
 0x1c7   : > { %v9570_v60 = vpack.c.bf16 %v1151_v0, %v1150_v53 }
 0x1c9   : > { %v8047_v20 = vpop.f32.mrb[4].mxu1  ;;  %8105 = vmatmul.mubr.f32.gmra.mrb[22].mxu0 %v12081_v35  ;;  %9571 = vmatprep.subr.bf16.mxu1 %v9570_v60 }
 0x1ca   : > { %v1137_v19 = vmul.f32 0.125, %v8047_v20  ;;  %v1073_v21 = vpop.f32.mrb[5].mxu1  ;;  %8107 = vmatprep.mubr.f32.mxu0 %v12082_v4  ;;  %9573 = vmatpush3.bf16.msra.mxu1 %v9570_v60 }
 0x1cb   : > { %v1136_v42 = vmul.f32 0.125, %v1073_v21 }
 0x1cc   : > { %v1153_v16 = vadd.f32 %v11252_v14, %v1137_v19  ;;  %v12088_v19 = vld [vmem:[#allocation6_spill] sm:$0xff] }
 0x1cd   : > { %v1152_v46 = vadd.f32 %v11258_v13, %v1136_v42  ;;  %8108 = vmatmul.mubr.f32.gmra.mrb[24].mxu0 %v12083_v22 }
 0x1ce   : > { %8110 = vmatprep.mubr.f32.mxu0 %v12084_v44 }
 0x1cf   : > { %v9574_v27 = vpack.c.bf16 %v1153_v16, %v1152_v46 }
 0x1d1   : > { %v8050_v25 = vpop.f32.mrb[6].mxu1  ;;  %8111 = vmatmul.mubr.f32.gmra.mrb[26].mxu0 %v12085_v26  ;;  %9575 = vmatprep.subr.bf16.mxu1 %v9574_v27 }
 0x1d2   : > { %v1139_v2 = vmul.f32 0.125, %v8050_v25  ;;  %v1083_v12 = vpop.f32.mrb[7].mxu1  ;;  %8113 = vmatprep.mubr.f32.mxu0 %v12086_v51  ;;  %9577 = vmatpush3.bf16.msra.mxu1 %v9574_v27 }
 0x1d3   : > { %v1138_v55 = vmul.f32 0.125, %v1083_v12 }
 0x1d4   : > { %v1155_v40 = vadd.f32 %v11266_v18, %v1139_v2 }
 0x1d5   : > { %v1154_v6 = vadd.f32 %v11272_v17, %v1138_v55  ;;  %8114 = vmatmul.mubr.f32.gmra.mrb[28].mxu0 %v12087_v47 }
 0x1d6   : > { %8116 = vmatprep.mubr.f32.mxu0 %v11130_v30 }
 0x1d7   : > { %v9578_v0 = vpack.c.bf16 %v1155_v40, %v1154_v6 }
 0x1d9   : > { %v8053_v53 = vpop.f32.mrb[8].mxu1  ;;  %8117 = vmatmul.mubr.f32.gmra.mrb[30].mxu0 %v11135_v5  ;;  %9579 = vmatprep.subr.bf16.mxu1 %v9578_v0 }
 0x1da   : > { %v1141_v60 = vmul.f32 0.125, %v8053_v53  ;;  %v1093_v20 = vpop.f32.mrb[9].mxu1  ;;  %9581 = vmatpush3.bf16.msra.mxu1 %v9578_v0  ;;  %8207 = vmatprep.mubr.f32.mxu0 %v12088_v19 }
 0x1db   : > { %v1140_v21 = vmul.f32 0.125, %v1093_v20 }
 0x1dc   : > { %v1157_v42 = vadd.f32 %v11280_v24, %v1141_v60 }
 0x1dd   : > { %v1156_v16 = vadd.f32 %v11286_v23, %v1140_v21 }
 0x1df   : > { %v9582_v46 = vpack.c.bf16 %v1157_v42, %v1156_v16 }
 0x1e1   : > { %v8056_v27 = vpop.f32.mrb[10].mxu1  ;;  %9583 = vmatprep.subr.bf16.mxu1 %v9582_v46 }
 0x1e2   : > { %v1143_v25 = vmul.f32 0.125, %v8056_v27  ;;  %v1103_v2 = vpop.f32.mrb[11].mxu1  ;;  %9585 = vmatpush3.bf16.msra.mxu1 %v9582_v46 }
 0x1e3   : > { %v1142_v12 = vmul.f32 0.125, %v1103_v2 }
 0x1e4   : > { %v1159_v55 = vadd.f32 %v11294_v29, %v1143_v25 }
 0x1e5   : > { %v1158_v40 = vadd.f32 %v11300_v28, %v1142_v12 }
 0x1e7   : > { %v9586_v6 = vpack.c.bf16 %v1159_v55, %v1158_v40 }
 0x1e9   : > { %v8059_v0 = vpop.f32.mrb[12].mxu1  ;;  %9587 = vmatprep.subr.bf16.mxu1 %v9586_v6 }
 0x1ea   : > { %v1145_v53 = vmul.f32 0.125, %v8059_v0  ;;  %v1113_v20 = vpop.f32.mrb[13].mxu1  ;;  %9589 = vmatpush3.bf16.msra.mxu1 %v9586_v6 }
 0x1eb   : > { %v1144_v60 = vmul.f32 0.125, %v1113_v20 }
 0x1ec   : > { %v1161_v21 = vadd.f32 %v11308_v34, %v1145_v53 }
 0x1ed   : > { %v1160_v42 = vadd.f32 %v11314_v33, %v1144_v60 }
 0x1ef   : > { %v9590_v16 = vpack.c.bf16 %v1161_v21, %v1160_v42 }
 0x1f1   : > { %v8062_v27 = vpop.f32.mrb[14].mxu1  ;;  %9591 = vmatprep.subr.bf16.mxu1 %v9590_v16 }
 0x1f2   : > { %v1147_v46 = vmul.f32 0.125, %v8062_v27  ;;  %v1123_v2 = vpop.f32.mrb[15].mxu1  ;;  %9593 = vmatpush3.bf16.msra.mxu1 %v9590_v16 }
 0x1f3   : > { %v1146_v25 = vmul.f32 0.125, %v1123_v2 }
 0x1f4   : > { %v1163_v12 = vadd.f32 %v11322_v39, %v1147_v46 }
 0x1f5   : > { %v1162_v55 = vadd.f32 %v11328_v38, %v1146_v25 }
 0x1f7   : > { %v9594_v40 = vpack.c.bf16 %v1163_v12, %v1162_v55 }
 0x1f9   : > { %9595 = vmatprep.subr.bf16.mxu1 %v9594_v40 }
 0x1fa   : > { %9597 = vmatpush3.bf16.msra.mxu1 %v9594_v40 }
 0x1fd   : > { %8152 = vmatmul.mubr.f32.vlgmr.msra.gmra.mrb[16].mxu1 %v11146_v32 }
 0x1fe   : > { %8154 = vmatprep.mubr.f32.mxu1 %v11151_v61 }
 0x201   : > { %8155 = vmatmul.mubr.f32.gmra.mrb[18].mxu1 %v11156_v15 }
 0x202   : > { %8157 = vmatprep.mubr.f32.mxu1 %v11161_v45 }
 0x205   : > { %8158 = vmatmul.mubr.f32.gmra.mrb[20].mxu1 %v11166_v52 }
 0x206   : > { %8160 = vmatprep.mubr.f32.mxu1 %v11171_v58 }
 0x209   : > { %8161 = vmatmul.mubr.f32.gmra.mrb[22].mxu1 %v11176_v31 }
 0x20a   : > { %8163 = vmatprep.mubr.f32.mxu1 %v11181_v1 }
 0x20d   : > { %8164 = vmatmul.mubr.f32.gmra.mrb[24].mxu1 %v11186_v9 }
 0x20e   : > { %8166 = vmatprep.mubr.f32.mxu1 %v11191_v57 }
 0x211   : > { %8167 = vmatmul.mubr.f32.gmra.mrb[26].mxu1 %v11196_v54 }
 0x212   : > { %8169 = vmatprep.mubr.f32.mxu1 %v11201_v50 }
 0x215   : > { %8170 = vmatmul.mubr.f32.gmra.mrb[28].mxu1 %v11206_v56 }
 0x216   : > { %8172 = vmatprep.mubr.f32.mxu1 %v11211_v3 }
 0x219   : > { %8173 = vmatmul.mubr.f32.gmra.mrb[30].mxu1 %v11216_v10 }
 0x21a   : > { %8263 = vmatprep.mubr.f32.mxu1 %v11141_v63 }
 0x290   : > { %v8097_v6 = vpop.f32.mrb[16].mxu0 }
 0x291   : > { %v1310_v0 = vmul.f32 0.14285715, %v8097_v6  ;;  %v1230_v53 = vpop.f32.mrb[17].mxu0 }
 0x292   : > { %v1309_v20 = vmul.f32 0.14285715, %v1230_v53 }
 0x293   : > { %v1326_v60 = vadd.f32 %v11224_v59, %v1310_v0 }
 0x294   : > { %v1325_v21 = vadd.f32 %v11230_v62, %v1309_v20  ;;  %v8100_v42 = vpop.f32.mrb[18].mxu0 }
 0x295   : > { %v1312_v16 = vmul.f32 0.14285715, %v8100_v42  ;;  %v1240_v27 = vpop.f32.mrb[19].mxu0 }
 0x296   : > { %v1311_v46 = vmul.f32 0.14285715, %v1240_v27  ;;  %v9598_v2 = vpack.c.bf16 %v1326_v60, %v1325_v21 }
 0x297   : > { %v1328_v25 = vadd.f32 %v11238_v11, %v1312_v16 }
 0x298   : > { %v1327_v12 = vadd.f32 %v11244_v8, %v1311_v46  ;;  %v8103_v55 = vpop.f32.mrb[20].mxu0  ;;  %9599 = vmatprep.subr.bf16.mxu0 %v9598_v2 }
 0x299   : > { %v1314_v40 = vmul.f32 0.14285715, %v8103_v55  ;;  %v1250_v36 = vpop.f32.mrb[21].mxu0  ;;  %9601 = vmatpush3.bf16.msra.mxu0 %v9598_v2 }
 0x29a   : > { %v1313_v6 = vmul.f32 0.14285715, %v1250_v36  ;;  %v9602_v53 = vpack.c.bf16 %v1328_v25, %v1327_v12 }
 0x29b   : > { %v1330_v0 = vadd.f32 %v11252_v14, %v1314_v40 }
 0x29c   : > { %v1329_v20 = vadd.f32 %v11258_v13, %v1313_v6  ;;  %v8106_v63 = vpop.f32.mrb[22].mxu0  ;;  %9603 = vmatprep.subr.bf16.mxu0 %v9602_v53 }
 0x29d   : > { %v1316_v42 = vmul.f32 0.14285715, %v8106_v63  ;;  %v1260_v27 = vpop.f32.mrb[23].mxu0  ;;  %9605 = vmatpush3.bf16.msra.mxu0 %v9602_v53 }
 0x29e   : > { %v1315_v60 = vmul.f32 0.14285715, %v1260_v27  ;;  %v9606_v21 = vpack.c.bf16 %v1330_v0, %v1329_v20 }
 0x29f   : > { %v1332_v16 = vadd.f32 %v11266_v18, %v1316_v42 }
 0x2a0   : > { %v1331_v46 = vadd.f32 %v11272_v17, %v1315_v60  ;;  %v8109_v55 = vpop.f32.mrb[24].mxu0  ;;  %9607 = vmatprep.subr.bf16.mxu0 %v9606_v21 }
 0x2a1   : > { %v1318_v2 = vmul.f32 0.14285715, %v8109_v55  ;;  %v1270_v36 = vpop.f32.mrb[25].mxu0  ;;  %9609 = vmatpush3.bf16.msra.mxu0 %v9606_v21 }
 0x2a2   : > { %v1317_v25 = vmul.f32 0.14285715, %v1270_v36  ;;  %v9610_v12 = vpack.c.bf16 %v1332_v16, %v1331_v46 }
 0x2a3   : > { %v1334_v40 = vadd.f32 %v11280_v24, %v1318_v2 }
 0x2a4   : > { %v1333_v6 = vadd.f32 %v11286_v23, %v1317_v25  ;;  %v8112_v63 = vpop.f32.mrb[26].mxu0  ;;  %9611 = vmatprep.subr.bf16.mxu0 %v9610_v12 }
 0x2a5   : > { %v1320_v53 = vmul.f32 0.14285715, %v8112_v63  ;;  %v1280_v27 = vpop.f32.mrb[27].mxu0  ;;  %9613 = vmatpush3.bf16.msra.mxu0 %v9610_v12 }
 0x2a6   : > { %v1319_v0 = vmul.f32 0.14285715, %v1280_v27  ;;  %v9614_v20 = vpack.c.bf16 %v1334_v40, %v1333_v6 }
 0x2a7   : > { %v1336_v42 = vadd.f32 %v11294_v29, %v1320_v53 }
 0x2a8   : > { %v1335_v60 = vadd.f32 %v11300_v28, %v1319_v0  ;;  %v8115_v55 = vpop.f32.mrb[28].mxu0  ;;  %9615 = vmatprep.subr.bf16.mxu0 %v9614_v20 }
 0x2a9   : > { %v1322_v21 = vmul.f32 0.14285715, %v8115_v55  ;;  %v1290_v36 = vpop.f32.mrb[29].mxu0  ;;  %9617 = vmatpush3.bf16.msra.mxu0 %v9614_v20 }
 0x2aa   : > { %v1321_v16 = vmul.f32 0.14285715, %v1290_v36  ;;  %v9618_v46 = vpack.c.bf16 %v1336_v42, %v1335_v60 }
 0x2ab   : > { %v1338_v2 = vadd.f32 %v11308_v34, %v1322_v21 }
 0x2ac   : > { %v1337_v25 = vadd.f32 %v11314_v33, %v1321_v16  ;;  %v8118_v63 = vpop.f32.mrb[30].mxu0  ;;  %9619 = vmatprep.subr.bf16.mxu0 %v9618_v46 }
 0x2ad   : > { %v1324_v12 = vmul.f32 0.14285715, %v8118_v63  ;;  %v1300_v27 = vpop.f32.mrb[31].mxu0  ;;  %9621 = vmatpush3.bf16.msra.mxu0 %v9618_v46 }
 0x2ae   : > { %v1323_v40 = vmul.f32 0.14285715, %v1300_v27  ;;  %v9622_v6 = vpack.c.bf16 %v1338_v2, %v1337_v25 }
 0x2af   : > { %v1340_v53 = vadd.f32 %v11322_v39, %v1324_v12 }
 0x2b0   : > { %v1339_v0 = vadd.f32 %v11328_v38, %v1323_v40  ;;  %9623 = vmatprep.subr.bf16.mxu0 %v9622_v6 }
 0x2b1   : > { %9625 = vmatpush3.bf16.msra.mxu0 %v9622_v6 }
 0x2b2   : > { %v9626_v20 = vpack.c.bf16 %v1340_v53, %v1339_v0 }
 0x2b4   : > { %9627 = vmatprep.subr.bf16.mxu0 %v9626_v20 }
 0x2b5   : > { %9629 = vmatpush3.bf16.msra.mxu0 %v9626_v20 }
 0x2b8   : > { %8208 = vmatmul.mubr.f32.vlgmr.msra.gmra.mrb[32].mxu0 %v12075_v43 }
 0x2b9   : > { %8210 = vmatprep.mubr.f32.mxu0 %v12076_v49 }
 0x2bc   : > { %8211 = vmatmul.mubr.f32.gmra.mrb[34].mxu0 %v12077_v37 }
 0x2bd   : > { %8213 = vmatprep.mubr.f32.mxu0 %v12078_v7 }
 0x2c0   : > { %8214 = vmatmul.mubr.f32.gmra.mrb[36].mxu0 %v12079_v41 }
 0x2c1   : > { %8216 = vmatprep.mubr.f32.mxu0 %v12080_v48 }
 0x2c4   : > { %8217 = vmatmul.mubr.f32.gmra.mrb[38].mxu0 %v12081_v35 }
 0x2c5   : > { %8219 = vmatprep.mubr.f32.mxu0 %v12082_v4 }
 0x2c8   : > { %8220 = vmatmul.mubr.f32.gmra.mrb[40].mxu0 %v12083_v22 }
 0x2c9   : > { %8222 = vmatprep.mubr.f32.mxu0 %v12084_v44 }
 0x2cc   : > { %8223 = vmatmul.mubr.f32.gmra.mrb[42].mxu0 %v12085_v26 }
 0x2cd   : > { %8225 = vmatprep.mubr.f32.mxu0 %v12086_v51 }
 0x2d0   : > { %v8153_v42 = vpop.f32.mrb[16].mxu1  ;;  %8226 = vmatmul.mubr.f32.gmra.mrb[44].mxu0 %v12087_v47 }
 0x2d1   : > { %v1487_v60 = vmul.f32 0.14285715, %v8153_v42  ;;  %v1407_v55 = vpop.f32.mrb[17].mxu1  ;;  %8228 = vmatprep.mubr.f32.mxu0 %v11130_v30 }
 0x2d2   : > { %v1486_v21 = vmul.f32 0.14285715, %v1407_v55 }
 0x2d3   : > { %v1503_v36 = vadd.f32 %v11224_v59, %v1487_v60 }
 0x2d4   : > { %v1502_v16 = vadd.f32 %v11230_v62, %v1486_v21  ;;  %v8156_v46 = vpop.f32.mrb[18].mxu1  ;;  %8229 = vmatmul.mubr.f32.gmra.mrb[46].mxu0 %v11135_v5 }
 0x2d5   : > { %v1489_v2 = vmul.f32 0.14285715, %v8156_v46  ;;  %v1417_v25 = vpop.f32.mrb[19].mxu1  ;;  %8319 = vmatprep.mubr.f32.mxu0 %v12088_v19 }
 0x2d6   : > { %v1488_v63 = vmul.f32 0.14285715, %v1417_v25  ;;  %v9630_v12 = vpack.c.bf16 %v1503_v36, %v1502_v16 }
 0x2d7   : > { %v1505_v27 = vadd.f32 %v11238_v11, %v1489_v2 }
 0x2d8   : > { %v1504_v40 = vadd.f32 %v11244_v8, %v1488_v63  ;;  %v8159_v6 = vpop.f32.mrb[20].mxu1  ;;  %9631 = vmatprep.subr.bf16.mxu1 %v9630_v12 }
 0x2d9   : > { %v1491_v53 = vmul.f32 0.14285715, %v8159_v6  ;;  %v1427_v0 = vpop.f32.mrb[21].mxu1  ;;  %9633 = vmatpush3.bf16.msra.mxu1 %v9630_v12 }
 0x2da   : > { %v1490_v20 = vmul.f32 0.14285715, %v1427_v0  ;;  %v9634_v42 = vpack.c.bf16 %v1505_v27, %v1504_v40 }
 0x2db   : > { %v1507_v60 = vadd.f32 %v11252_v14, %v1491_v53 }
 0x2dc   : > { %v1506_v55 = vadd.f32 %v11258_v13, %v1490_v20  ;;  %v8162_v21 = vpop.f32.mrb[22].mxu1  ;;  %9635 = vmatprep.subr.bf16.mxu1 %v9634_v42 }
 0x2dd   : > { %v1493_v46 = vmul.f32 0.14285715, %v8162_v21  ;;  %v1437_v25 = vpop.f32.mrb[23].mxu1  ;;  %9637 = vmatpush3.bf16.msra.mxu1 %v9634_v42 }
 0x2de   : > { %v1492_v36 = vmul.f32 0.14285715, %v1437_v25  ;;  %v9638_v16 = vpack.c.bf16 %v1507_v60, %v1506_v55 }
 0x2df   : > { %v1509_v2 = vadd.f32 %v11266_v18, %v1493_v46 }
 0x2e0   : > { %v1508_v63 = vadd.f32 %v11272_v17, %v1492_v36  ;;  %v8165_v6 = vpop.f32.mrb[24].mxu1  ;;  %9639 = vmatprep.subr.bf16.mxu1 %v9638_v16 }
 0x2e1   : > { %v1495_v12 = vmul.f32 0.14285715, %v8165_v6  ;;  %v1447_v0 = vpop.f32.mrb[25].mxu1  ;;  %9641 = vmatpush3.bf16.msra.mxu1 %v9638_v16 }
 0x2e2   : > { %v1494_v27 = vmul.f32 0.14285715, %v1447_v0  ;;  %v9642_v40 = vpack.c.bf16 %v1509_v2, %v1508_v63 }
 0x2e3   : > { %v1511_v53 = vadd.f32 %v11280_v24, %v1495_v12 }
 0x2e4   : > { %v1510_v20 = vadd.f32 %v11286_v23, %v1494_v27  ;;  %v8168_v21 = vpop.f32.mrb[26].mxu1  ;;  %9643 = vmatprep.subr.bf16.mxu1 %v9642_v40 }
 0x2e5   : > { %v1497_v42 = vmul.f32 0.14285715, %v8168_v21  ;;  %v1457_v25 = vpop.f32.mrb[27].mxu1  ;;  %9645 = vmatpush3.bf16.msra.mxu1 %v9642_v40 }
 0x2e6   : > { %v1496_v60 = vmul.f32 0.14285715, %v1457_v25  ;;  %v9646_v55 = vpack.c.bf16 %v1511_v53, %v1510_v20 }
 0x2e7   : > { %v1513_v46 = vadd.f32 %v11294_v29, %v1497_v42 }
 0x2e8   : > { %v1512_v36 = vadd.f32 %v11300_v28, %v1496_v60  ;;  %v8171_v6 = vpop.f32.mrb[28].mxu1  ;;  %9647 = vmatprep.subr.bf16.mxu1 %v9646_v55 }
 0x2e9   : > { %v1499_v16 = vmul.f32 0.14285715, %v8171_v6  ;;  %v1467_v0 = vpop.f32.mrb[29].mxu1  ;;  %9649 = vmatpush3.bf16.msra.mxu1 %v9646_v55 }
 0x2ea   : > { %v1498_v2 = vmul.f32 0.14285715, %v1467_v0  ;;  %v9650_v63 = vpack.c.bf16 %v1513_v46, %v1512_v36  ;;  %v12089_v46 = vld [vmem:[#allocation19_spill] sm:$0xff] }
 0x2eb   : > { %v1515_v12 = vadd.f32 %v11308_v34, %v1499_v16 }
 0x2ec   : > { %v1514_v27 = vadd.f32 %v11314_v33, %v1498_v2  ;;  %v8174_v21 = vpop.f32.mrb[30].mxu1  ;;  %9651 = vmatprep.subr.bf16.mxu1 %v9650_v63 }
 0x2ed   : > { %v1501_v40 = vmul.f32 0.14285715, %v8174_v21  ;;  %v1477_v25 = vpop.f32.mrb[31].mxu1  ;;  %9653 = vmatpush3.bf16.msra.mxu1 %v9650_v63 }
 0x2ee   : > { %v1500_v53 = vmul.f32 0.14285715, %v1477_v25  ;;  %v9654_v20 = vpack.c.bf16 %v1515_v12, %v1514_v27 }
 0x2ef   : > { %v1517_v42 = vadd.f32 %v11322_v39, %v1501_v40 }
 0x2f0   : > { %v1516_v60 = vadd.f32 %v11328_v38, %v1500_v53  ;;  %9655 = vmatprep.subr.bf16.mxu1 %v9654_v20 }
 0x2f1   : > { %9657 = vmatpush3.bf16.msra.mxu1 %v9654_v20 }
 0x2f2   : > { %v9658_v55 = vpack.c.bf16 %v1517_v42, %v1516_v60 }
 0x2f4   : > { %9659 = vmatprep.subr.bf16.mxu1 %v9658_v55 }
 0x2f5   : > { %9661 = vmatpush3.bf16.msra.mxu1 %v9658_v55 }
 0x2f8   : > { %8264 = vmatmul.mubr.f32.vlgmr.msra.gmra.mrb[32].mxu1 %v11146_v32 }
 0x2f9   : > { %8266 = vmatprep.mubr.f32.mxu1 %v11151_v61 }
 0x2fc   : > { %8267 = vmatmul.mubr.f32.gmra.mrb[34].mxu1 %v11156_v15 }
 0x2fd   : > { %8269 = vmatprep.mubr.f32.mxu1 %v11161_v45 }
 0x300   : > { %8270 = vmatmul.mubr.f32.gmra.mrb[36].mxu1 %v11166_v52 }
 0x301   : > { %8272 = vmatprep.mubr.f32.mxu1 %v11171_v58 }
 0x304   : > { %8273 = vmatmul.mubr.f32.gmra.mrb[38].mxu1 %v11176_v31 }
 0x305   : > { %8275 = vmatprep.mubr.f32.mxu1 %v11181_v1 }
 0x308   : > { %8276 = vmatmul.mubr.f32.gmra.mrb[40].mxu1 %v11186_v9 }
 0x309   : > { %8278 = vmatprep.mubr.f32.mxu1 %v11191_v57 }
 0x30c   : > { %8279 = vmatmul.mubr.f32.gmra.mrb[42].mxu1 %v11196_v54 }
 0x30d   : > { %8281 = vmatprep.mubr.f32.mxu1 %v11201_v50 }
 0x310   : > { %8282 = vmatmul.mubr.f32.gmra.mrb[44].mxu1 %v11206_v56 }
 0x311   : > { %8284 = vmatprep.mubr.f32.mxu1 %v11211_v3 }
 0x314   : > { %8285 = vmatmul.mubr.f32.gmra.mrb[46].mxu1 %v11216_v10 }
 0x315   : > { %8375 = vmatprep.mubr.f32.mxu1 %v12089_v46 }
 0x38b   : > { %v8209_v36 = vpop.f32.mrb[32].mxu0 }
 0x38c   : > { %v1664_v6 = vmul.f32 0.16666667, %v8209_v36  ;;  %v1584_v16 = vpop.f32.mrb[33].mxu0 }
 0x38d   : > { %v1663_v0 = vmul.f32 0.16666667, %v1584_v16 }
 0x38e   : > { %v1680_v2 = vadd.f32 %v11224_v59, %v1664_v6 }
 0x38f   : > { %v1679_v63 = vadd.f32 %v11230_v62, %v1663_v0  ;;  %v8212_v12 = vpop.f32.mrb[34].mxu0 }
 0x390   : > { %v1666_v27 = vmul.f32 0.16666667, %v8212_v12  ;;  %v1594_v21 = vpop.f32.mrb[35].mxu0 }
 0x391   : > { %v1665_v40 = vmul.f32 0.16666667, %v1594_v21  ;;  %v9662_v25 = vpack.c.bf16 %v1680_v2, %v1679_v63 }
 0x392   : > { %v1682_v53 = vadd.f32 %v11238_v11, %v1666_v27 }
 0x393   : > { %v1681_v20 = vadd.f32 %v11244_v8, %v1665_v40  ;;  %v8215_v42 = vpop.f32.mrb[36].mxu0  ;;  %9663 = vmatprep.subr.bf16.mxu0 %v9662_v25 }
 0x394   : > { %v1668_v60 = vmul.f32 0.16666667, %v8215_v42  ;;  %v1604_v55 = vpop.f32.mrb[37].mxu0  ;;  %9665 = vmatpush3.bf16.msra.mxu0 %v9662_v25 }
 0x395   : > { %v1667_v36 = vmul.f32 0.16666667, %v1604_v55  ;;  %v9666_v16 = vpack.c.bf16 %v1682_v53, %v1681_v20 }
 0x396   : > { %v1684_v6 = vadd.f32 %v11252_v14, %v1668_v60 }
 0x397   : > { %v1683_v0 = vadd.f32 %v11258_v13, %v1667_v36  ;;  %v8218_v46 = vpop.f32.mrb[38].mxu0  ;;  %9667 = vmatprep.subr.bf16.mxu0 %v9666_v16 }
 0x398   : > { %v1670_v12 = vmul.f32 0.16666667, %v8218_v46  ;;  %v1614_v21 = vpop.f32.mrb[39].mxu0  ;;  %9669 = vmatpush3.bf16.msra.mxu0 %v9666_v16 }
 0x399   : > { %v1669_v2 = vmul.f32 0.16666667, %v1614_v21  ;;  %v9670_v63 = vpack.c.bf16 %v1684_v6, %v1683_v0 }
 0x39a   : > { %v1686_v27 = vadd.f32 %v11266_v18, %v1670_v12 }
 0x39b   : > { %v1685_v40 = vadd.f32 %v11272_v17, %v1669_v2  ;;  %v8221_v42 = vpop.f32.mrb[40].mxu0  ;;  %9671 = vmatprep.subr.bf16.mxu0 %v9670_v63 }
 0x39c   : > { %v1672_v25 = vmul.f32 0.16666667, %v8221_v42  ;;  %v1624_v55 = vpop.f32.mrb[41].mxu0  ;;  %9673 = vmatpush3.bf16.msra.mxu0 %v9670_v63 }
 0x39d   : > { %v1671_v53 = vmul.f32 0.16666667, %v1624_v55  ;;  %v9674_v20 = vpack.c.bf16 %v1686_v27, %v1685_v40 }
 0x39e   : > { %v1688_v60 = vadd.f32 %v11280_v24, %v1672_v25 }
 0x39f   : > { %v1687_v36 = vadd.f32 %v11286_v23, %v1671_v53  ;;  %v8224_v46 = vpop.f32.mrb[42].mxu0  ;;  %9675 = vmatprep.subr.bf16.mxu0 %v9674_v20 }
 0x3a0   : > { %v1674_v16 = vmul.f32 0.16666667, %v8224_v46  ;;  %v1634_v21 = vpop.f32.mrb[43].mxu0  ;;  %9677 = vmatpush3.bf16.msra.mxu0 %v9674_v20 }
 0x3a1   : > { %v1673_v6 = vmul.f32 0.16666667, %v1634_v21  ;;  %v9678_v0 = vpack.c.bf16 %v1688_v60, %v1687_v36 }
 0x3a2   : > { %v1690_v12 = vadd.f32 %v11294_v29, %v1674_v16 }
 0x3a3   : > { %v1689_v2 = vadd.f32 %v11300_v28, %v1673_v6  ;;  %v8227_v42 = vpop.f32.mrb[44].mxu0  ;;  %9679 = vmatprep.subr.bf16.mxu0 %v9678_v0 }
 0x3a4   : > { %v1676_v63 = vmul.f32 0.16666667, %v8227_v42  ;;  %v1644_v55 = vpop.f32.mrb[45].mxu0  ;;  %9681 = vmatpush3.bf16.msra.mxu0 %v9678_v0 }
 0x3a5   : > { %v1675_v27 = vmul.f32 0.16666667, %v1644_v55  ;;  %v9682_v40 = vpack.c.bf16 %v1690_v12, %v1689_v2 }
 0x3a6   : > { %v1692_v25 = vadd.f32 %v11308_v34, %v1676_v63 }
 0x3a7   : > { %v1691_v53 = vadd.f32 %v11314_v33, %v1675_v27  ;;  %v8230_v46 = vpop.f32.mrb[46].mxu0  ;;  %9683 = vmatprep.subr.bf16.mxu0 %v9682_v40 }
 0x3a8   : > { %v1678_v20 = vmul.f32 0.16666667, %v8230_v46  ;;  %v1654_v21 = vpop.f32.mrb[47].mxu0  ;;  %9685 = vmatpush3.bf16.msra.mxu0 %v9682_v40 }
 0x3a9   : > { %v1677_v60 = vmul.f32 0.16666667, %v1654_v21  ;;  %v9686_v36 = vpack.c.bf16 %v1692_v25, %v1691_v53 }
 0x3aa   : > { %v1694_v16 = vadd.f32 %v11322_v39, %v1678_v20 }
 0x3ab   : > { %v1693_v6 = vadd.f32 %v11328_v38, %v1677_v60  ;;  %9687 = vmatprep.subr.bf16.mxu0 %v9686_v36 }
 0x3ac   : > { %9689 = vmatpush3.bf16.msra.mxu0 %v9686_v36 }
 0x3ad   : > { %v9690_v0 = vpack.c.bf16 %v1694_v16, %v1693_v6 }
 0x3af   : > { %9691 = vmatprep.subr.bf16.mxu0 %v9690_v0 }
 0x3b0   : > { %9693 = vmatpush3.bf16.msra.mxu0 %v9690_v0 }
 0x3b3   : > { %8320 = vmatmul.mubr.f32.vlgmr.msra.gmra.mrb[48].mxu0 %v12075_v43 }
 0x3b4   : > { %8322 = vmatprep.mubr.f32.mxu0 %v12076_v49 }
 0x3b7   : > { %8323 = vmatmul.mubr.f32.gmra.mrb[50].mxu0 %v12077_v37 }
 0x3b8   : > { %8325 = vmatprep.mubr.f32.mxu0 %v12078_v7 }
 0x3bb   : > { %8326 = vmatmul.mubr.f32.gmra.mrb[52].mxu0 %v12079_v41 }
 0x3bc   : > { %8328 = vmatprep.mubr.f32.mxu0 %v12080_v48 }
 0x3bf   : > { %8329 = vmatmul.mubr.f32.gmra.mrb[54].mxu0 %v12081_v35 }
 0x3c0   : > { %8331 = vmatprep.mubr.f32.mxu0 %v12082_v4 }
 0x3c3   : > { %8332 = vmatmul.mubr.f32.gmra.mrb[56].mxu0 %v12083_v22 }
 0x3c4   : > { %8334 = vmatprep.mubr.f32.mxu0 %v12084_v44 }
 0x3c7   : > { %8335 = vmatmul.mubr.f32.gmra.mrb[58].mxu0 %v12085_v26 }
 0x3c8   : > { %8337 = vmatprep.mubr.f32.mxu0 %v12086_v51 }
 0x3cb   : > { %v8265_v12 = vpop.f32.mrb[32].mxu1  ;;  %8338 = vmatmul.mubr.f32.gmra.mrb[60].mxu0 %v12087_v47 }
 0x3cc   : > { %v1841_v2 = vmul.f32 0.16666667, %v8265_v12  ;;  %v1761_v42 = vpop.f32.mrb[33].mxu1  ;;  %8340 = vmatprep.mubr.f32.mxu0 %v11130_v30 }
 0x3cd   : > { %v1840_v63 = vmul.f32 0.16666667, %v1761_v42 }
 0x3ce   : > { %v1857_v55 = vadd.f32 %v11224_v59, %v1841_v2 }
 0x3cf   : > { %v1856_v27 = vadd.f32 %v11230_v62, %v1840_v63  ;;  %v8268_v40 = vpop.f32.mrb[34].mxu1  ;;  %8341 = vmatmul.mubr.f32.gmra.mrb[62].mxu0 %v11135_v5 }
 0x3d0   : > { %v1843_v25 = vmul.f32 0.16666667, %v8268_v40  ;;  %v1771_v53 = vpop.f32.mrb[35].mxu1  ;;  %8431 = vmatprep.mubr.f32.mxu0 %v12088_v19 }
 0x3d1   : > { %v1842_v46 = vmul.f32 0.16666667, %v1771_v53  ;;  %v9694_v20 = vpack.c.bf16 %v1857_v55, %v1856_v27 }
 0x3d2   : > { %v1859_v21 = vadd.f32 %v11238_v11, %v1843_v25 }
 0x3d3   : > { %v1858_v60 = vadd.f32 %v11244_v8, %v1842_v46  ;;  %v8271_v36 = vpop.f32.mrb[36].mxu1  ;;  %9695 = vmatprep.subr.bf16.mxu1 %v9694_v20 }
 0x3d4   : > { %v1845_v16 = vmul.f32 0.16666667, %v8271_v36  ;;  %v1781_v6 = vpop.f32.mrb[37].mxu1  ;;  %9697 = vmatpush3.bf16.msra.mxu1 %v9694_v20 }
 0x3d5   : > { %v1844_v0 = vmul.f32 0.16666667, %v1781_v6  ;;  %v9698_v12 = vpack.c.bf16 %v1859_v21, %v1858_v60 }
 0x3d6   : > { %v1861_v2 = vadd.f32 %v11252_v14, %v1845_v16 }
 0x3d7   : > { %v1860_v42 = vadd.f32 %v11258_v13, %v1844_v0  ;;  %v8274_v63 = vpop.f32.mrb[38].mxu1  ;;  %9699 = vmatprep.subr.bf16.mxu1 %v9698_v12 }
 0x3d8   : > { %v1847_v40 = vmul.f32 0.16666667, %v8274_v63  ;;  %v1791_v53 = vpop.f32.mrb[39].mxu1  ;;  %9701 = vmatpush3.bf16.msra.mxu1 %v9698_v12 }
 0x3d9   : > { %v1846_v55 = vmul.f32 0.16666667, %v1791_v53  ;;  %v9702_v27 = vpack.c.bf16 %v1861_v2, %v1860_v42 }
 0x3da   : > { %v1863_v25 = vadd.f32 %v11266_v18, %v1847_v40 }
 0x3db   : > { %v1862_v46 = vadd.f32 %v11272_v17, %v1846_v55  ;;  %v8277_v36 = vpop.f32.mrb[40].mxu1  ;;  %9703 = vmatprep.subr.bf16.mxu1 %v9702_v27 }
 0x3dc   : > { %v1849_v20 = vmul.f32 0.16666667, %v8277_v36  ;;  %v1801_v6 = vpop.f32.mrb[41].mxu1  ;;  %9705 = vmatpush3.bf16.msra.mxu1 %v9702_v27 }
 0x3dd   : > { %v1848_v21 = vmul.f32 0.16666667, %v1801_v6  ;;  %v9706_v60 = vpack.c.bf16 %v1863_v25, %v1862_v46 }
 0x3de   : > { %v1865_v16 = vadd.f32 %v11280_v24, %v1849_v20 }
 0x3df   : > { %v1864_v0 = vadd.f32 %v11286_v23, %v1848_v21  ;;  %v8280_v63 = vpop.f32.mrb[42].mxu1  ;;  %9707 = vmatprep.subr.bf16.mxu1 %v9706_v60 }
 0x3e0   : > { %v1851_v12 = vmul.f32 0.16666667, %v8280_v63  ;;  %v1811_v53 = vpop.f32.mrb[43].mxu1  ;;  %9709 = vmatpush3.bf16.msra.mxu1 %v9706_v60 }
 0x3e1   : > { %v1850_v2 = vmul.f32 0.16666667, %v1811_v53  ;;  %v9710_v42 = vpack.c.bf16 %v1865_v16, %v1864_v0 }
 0x3e2   : > { %v1867_v40 = vadd.f32 %v11294_v29, %v1851_v12 }
 0x3e3   : > { %v1866_v55 = vadd.f32 %v11300_v28, %v1850_v2  ;;  %v8283_v36 = vpop.f32.mrb[44].mxu1  ;;  %9711 = vmatprep.subr.bf16.mxu1 %v9710_v42 }
 0x3e4   : > { %v1853_v27 = vmul.f32 0.16666667, %v8283_v36  ;;  %v1821_v6 = vpop.f32.mrb[45].mxu1  ;;  %9713 = vmatpush3.bf16.msra.mxu1 %v9710_v42 }
 0x3e5   : > { %v1852_v25 = vmul.f32 0.16666667, %v1821_v6  ;;  %v9714_v46 = vpack.c.bf16 %v1867_v40, %v1866_v55  ;;  %v12090_v40 = vld [vmem:[#allocation19_spill] sm:$0xff] }
 0x3e6   : > { %v1869_v20 = vadd.f32 %v11308_v34, %v1853_v27 }
 0x3e7   : > { %v1868_v21 = vadd.f32 %v11314_v33, %v1852_v25  ;;  %v8286_v63 = vpop.f32.mrb[46].mxu1  ;;  %9715 = vmatprep.subr.bf16.mxu1 %v9714_v46 }
 0x3e8   : > { %v1855_v60 = vmul.f32 0.16666667, %v8286_v63  ;;  %v1831_v53 = vpop.f32.mrb[47].mxu1  ;;  %9717 = vmatpush3.bf16.msra.mxu1 %v9714_v46 }
 0x3e9   : > { %v1854_v16 = vmul.f32 0.16666667, %v1831_v53  ;;  %v9718_v0 = vpack.c.bf16 %v1869_v20, %v1868_v21 }
 0x3ea   : > { %v1871_v12 = vadd.f32 %v11322_v39, %v1855_v60 }
 0x3eb   : > { %v1870_v2 = vadd.f32 %v11328_v38, %v1854_v16  ;;  %9719 = vmatprep.subr.bf16.mxu1 %v9718_v0 }
 0x3ec   : > { %9721 = vmatpush3.bf16.msra.mxu1 %v9718_v0 }
 0x3ed   : > { %v9722_v42 = vpack.c.bf16 %v1871_v12, %v1870_v2 }
 0x3ef   : > { %9723 = vmatprep.subr.bf16.mxu1 %v9722_v42 }
 0x3f0   : > { %9725 = vmatpush3.bf16.msra.mxu1 %v9722_v42 }
 0x3f3   : > { %8376 = vmatmul.mubr.f32.vlgmr.msra.gmra.mrb[48].mxu1 %v11146_v32 }
 0x3f4   : > { %8378 = vmatprep.mubr.f32.mxu1 %v11151_v61 }
 0x3f7   : > { %8379 = vmatmul.mubr.f32.gmra.mrb[50].mxu1 %v11156_v15 }
 0x3f8   : > { %8381 = vmatprep.mubr.f32.mxu1 %v11161_v45 }
 0x3fb   : > { %8382 = vmatmul.mubr.f32.gmra.mrb[52].mxu1 %v11166_v52 }
 0x3fc   : > { %8384 = vmatprep.mubr.f32.mxu1 %v11171_v58 }
 0x3ff   : > { %8385 = vmatmul.mubr.f32.gmra.mrb[54].mxu1 %v11176_v31 }
 0x400   : > { %8387 = vmatprep.mubr.f32.mxu1 %v11181_v1 }
 0x403   : > { %8388 = vmatmul.mubr.f32.gmra.mrb[56].mxu1 %v11186_v9 }
 0x404   : > { %8390 = vmatprep.mubr.f32.mxu1 %v11191_v57 }
 0x407   : > { %8391 = vmatmul.mubr.f32.gmra.mrb[58].mxu1 %v11196_v54 }
 0x408   : > { %8393 = vmatprep.mubr.f32.mxu1 %v11201_v50 }
 0x40b   : > { %8394 = vmatmul.mubr.f32.gmra.mrb[60].mxu1 %v11206_v56 }
 0x40c   : > { %8396 = vmatprep.mubr.f32.mxu1 %v11211_v3 }
 0x40f   : > { %8397 = vmatmul.mubr.f32.gmra.mrb[62].mxu1 %v11216_v10 }
 0x410   : > { %8487 = vmatprep.mubr.f32.mxu1 %v12090_v40 }
 0x486   : > { %v8321_v55 = vpop.f32.mrb[48].mxu0 }
 0x487   : > { %v2018_v36 = vmul.f32 0.2, %v8321_v55  ;;  %v1938_v27 = vpop.f32.mrb[49].mxu0 }
 0x488   : > { %v2017_v6 = vmul.f32 0.2, %v1938_v27 }
 0x489   : > { %v2034_v25 = vadd.f32 %v11224_v59, %v2018_v36 }
 0x48a   : > { %v2033_v46 = vadd.f32 %v11230_v62, %v2017_v6  ;;  %v8324_v20 = vpop.f32.mrb[50].mxu0 }
 0x48b   : > { %v2020_v21 = vmul.f32 0.2, %v8324_v20  ;;  %v1948_v63 = vpop.f32.mrb[51].mxu0 }
 0x48c   : > { %v2019_v60 = vmul.f32 0.2, %v1948_v63  ;;  %v9726_v53 = vpack.c.bf16 %v2034_v25, %v2033_v46 }
 0x48d   : > { %v2036_v16 = vadd.f32 %v11238_v11, %v2020_v21 }
 0x48e   : > { %v2035_v0 = vadd.f32 %v11244_v8, %v2019_v60  ;;  %v8327_v12 = vpop.f32.mrb[52].mxu0  ;;  %9727 = vmatprep.subr.bf16.mxu0 %v9726_v53 }
 0x48f   : > { %v2022_v2 = vmul.f32 0.2, %v8327_v12  ;;  %v1958_v42 = vpop.f32.mrb[53].mxu0  ;;  %9729 = vmatpush3.bf16.msra.mxu0 %v9726_v53 }
 0x490   : > { %v2021_v55 = vmul.f32 0.2, %v1958_v42  ;;  %v9730_v27 = vpack.c.bf16 %v2036_v16, %v2035_v0 }
 0x491   : > { %v2038_v36 = vadd.f32 %v11252_v14, %v2022_v2 }
 0x492   : > { %v2037_v6 = vadd.f32 %v11258_v13, %v2021_v55  ;;  %v8330_v40 = vpop.f32.mrb[54].mxu0  ;;  %9731 = vmatprep.subr.bf16.mxu0 %v9730_v27 }
 0x493   : > { %v2024_v20 = vmul.f32 0.2, %v8330_v40  ;;  %v1968_v63 = vpop.f32.mrb[55].mxu0  ;;  %9733 = vmatpush3.bf16.msra.mxu0 %v9730_v27 }
 0x494   : > { %v2023_v25 = vmul.f32 0.2, %v1968_v63  ;;  %v9734_v46 = vpack.c.bf16 %v2038_v36, %v2037_v6 }
 0x495   : > { %v2040_v21 = vadd.f32 %v11266_v18, %v2024_v20 }
 0x496   : > { %v2039_v60 = vadd.f32 %v11272_v17, %v2023_v25  ;;  %v8333_v12 = vpop.f32.mrb[56].mxu0  ;;  %9735 = vmatprep.subr.bf16.mxu0 %v9734_v46 }
 0x497   : > { %v2026_v53 = vmul.f32 0.2, %v8333_v12  ;;  %v1978_v42 = vpop.f32.mrb[57].mxu0  ;;  %9737 = vmatpush3.bf16.msra.mxu0 %v9734_v46 }
 0x498   : > { %v2025_v16 = vmul.f32 0.2, %v1978_v42  ;;  %v9738_v0 = vpack.c.bf16 %v2040_v21, %v2039_v60 }
 0x499   : > { %v2042_v2 = vadd.f32 %v11280_v24, %v2026_v53 }
 0x49a   : > { %v2041_v55 = vadd.f32 %v11286_v23, %v2025_v16  ;;  %v8336_v40 = vpop.f32.mrb[58].mxu0  ;;  %9739 = vmatprep.subr.bf16.mxu0 %v9738_v0 }
 0x49b   : > { %v2028_v27 = vmul.f32 0.2, %v8336_v40  ;;  %v1988_v63 = vpop.f32.mrb[59].mxu0  ;;  %9741 = vmatpush3.bf16.msra.mxu0 %v9738_v0 }
 0x49c   : > { %v2027_v36 = vmul.f32 0.2, %v1988_v63  ;;  %v9742_v6 = vpack.c.bf16 %v2042_v2, %v2041_v55 }
 0x49d   : > { %v2044_v20 = vadd.f32 %v11294_v29, %v2028_v27 }
 0x49e   : > { %v2043_v25 = vadd.f32 %v11300_v28, %v2027_v36  ;;  %v8339_v12 = vpop.f32.mrb[60].mxu0  ;;  %9743 = vmatprep.subr.bf16.mxu0 %v9742_v6 }
 0x49f   : > { %v2030_v46 = vmul.f32 0.2, %v8339_v12  ;;  %v1998_v42 = vpop.f32.mrb[61].mxu0  ;;  %9745 = vmatpush3.bf16.msra.mxu0 %v9742_v6 }
 0x4a0   : > { %v2029_v21 = vmul.f32 0.2, %v1998_v42  ;;  %v9746_v60 = vpack.c.bf16 %v2044_v20, %v2043_v25 }
 0x4a1   : > { %v2046_v53 = vadd.f32 %v11308_v34, %v2030_v46 }
 0x4a2   : > { %v2045_v16 = vadd.f32 %v11314_v33, %v2029_v21  ;;  %v8342_v40 = vpop.f32.mrb[62].mxu0  ;;  %9747 = vmatprep.subr.bf16.mxu0 %v9746_v60 }
 0x4a3   : > { %v2032_v0 = vmul.f32 0.2, %v8342_v40  ;;  %v2008_v63 = vpop.f32.mrb[63].mxu0  ;;  %9749 = vmatpush3.bf16.msra.mxu0 %v9746_v60 }
 0x4a4   : > { %v2031_v2 = vmul.f32 0.2, %v2008_v63  ;;  %v9750_v55 = vpack.c.bf16 %v2046_v53, %v2045_v16 }
 0x4a5   : > { %v2048_v27 = vadd.f32 %v11322_v39, %v2032_v0 }
 0x4a6   : > { %v2047_v36 = vadd.f32 %v11328_v38, %v2031_v2  ;;  %9751 = vmatprep.subr.bf16.mxu0 %v9750_v55 }
 0x4a7   : > { %9753 = vmatpush3.bf16.msra.mxu0 %v9750_v55 }
 0x4a8   : > { %v9754_v6 = vpack.c.bf16 %v2048_v27, %v2047_v36 }
 0x4aa   : > { %9755 = vmatprep.subr.bf16.mxu0 %v9754_v6 }
 0x4ab   : > { %9757 = vmatpush3.bf16.msra.mxu0 %v9754_v6 }
 0x4ae   : > { %8432 = vmatmul.mubr.f32.vlgmr.msra.gmra.mrb[64].mxu0 %v12075_v43 }
 0x4af   : > { %8434 = vmatprep.mubr.f32.mxu0 %v12076_v49 }
 0x4b2   : > { %8435 = vmatmul.mubr.f32.gmra.mrb[66].mxu0 %v12077_v37 }
 0x4b3   : > { %8437 = vmatprep.mubr.f32.mxu0 %v12078_v7 }
 0x4b6   : > { %8438 = vmatmul.mubr.f32.gmra.mrb[68].mxu0 %v12079_v41 }
 0x4b7   : > { %8440 = vmatprep.mubr.f32.mxu0 %v12080_v48 }
 0x4ba   : > { %8441 = vmatmul.mubr.f32.gmra.mrb[70].mxu0 %v12081_v35 }
 0x4bb   : > { %8443 = vmatprep.mubr.f32.mxu0 %v12082_v4 }
 0x4be   : > { %8444 = vmatmul.mubr.f32.gmra.mrb[72].mxu0 %v12083_v22 }
 0x4bf   : > { %8446 = vmatprep.mubr.f32.mxu0 %v12084_v44 }
 0x4c2   : > { %8447 = vmatmul.mubr.f32.gmra.mrb[74].mxu0 %v12085_v26 }
 0x4c3   : > { %8449 = vmatprep.mubr.f32.mxu0 %v12086_v51 }
 0x4c6   : > { %v8377_v20 = vpop.f32.mrb[48].mxu1  ;;  %8450 = vmatmul.mubr.f32.gmra.mrb[76].mxu0 %v12087_v47 }
 0x4c7   : > { %v2195_v25 = vmul.f32 0.2, %v8377_v20  ;;  %v2115_v12 = vpop.f32.mrb[49].mxu1  ;;  %8452 = vmatprep.mubr.f32.mxu0 %v11130_v30 }
 0x4c8   : > { %v2194_v46 = vmul.f32 0.2, %v2115_v12 }
 0x4c9   : > { %v2211_v42 = vadd.f32 %v11224_v59, %v2195_v25 }
 0x4ca   : > { %v2210_v21 = vadd.f32 %v11230_v62, %v2194_v46  ;;  %v8380_v60 = vpop.f32.mrb[50].mxu1  ;;  %8453 = vmatmul.mubr.f32.gmra.mrb[78].mxu0 %v11135_v5 }
 0x4cb   : > { %v2197_v53 = vmul.f32 0.2, %v8380_v60  ;;  %v2125_v16 = vpop.f32.mrb[51].mxu1  ;;  %8543 = vmatprep.mubr.f32.mxu0 %v12088_v19 }
 0x4cc   : > { %v2196_v40 = vmul.f32 0.2, %v2125_v16  ;;  %v9758_v0 = vpack.c.bf16 %v2211_v42, %v2210_v21 }
 0x4cd   : > { %v2213_v63 = vadd.f32 %v11238_v11, %v2197_v53 }
 0x4ce   : > { %v2212_v2 = vadd.f32 %v11244_v8, %v2196_v40  ;;  %v8383_v55 = vpop.f32.mrb[52].mxu1  ;;  %9759 = vmatprep.subr.bf16.mxu1 %v9758_v0 }
 0x4cf   : > { %v2199_v27 = vmul.f32 0.2, %v8383_v55  ;;  %v2135_v36 = vpop.f32.mrb[53].mxu1  ;;  %9761 = vmatpush3.bf16.msra.mxu1 %v9758_v0 }
 0x4d0   : > { %v2198_v6 = vmul.f32 0.2, %v2135_v36  ;;  %v9762_v20 = vpack.c.bf16 %v2213_v63, %v2212_v2 }
 0x4d1   : > { %v2215_v25 = vadd.f32 %v11252_v14, %v2199_v27 }
 0x4d2   : > { %v2214_v12 = vadd.f32 %v11258_v13, %v2198_v6  ;;  %v8386_v46 = vpop.f32.mrb[54].mxu1  ;;  %9763 = vmatprep.subr.bf16.mxu1 %v9762_v20 }
 0x4d3   : > { %v2201_v60 = vmul.f32 0.2, %v8386_v46  ;;  %v2145_v16 = vpop.f32.mrb[55].mxu1  ;;  %9765 = vmatpush3.bf16.msra.mxu1 %v9762_v20 }
 0x4d4   : > { %v2200_v42 = vmul.f32 0.2, %v2145_v16  ;;  %v9766_v21 = vpack.c.bf16 %v2215_v25, %v2214_v12 }
 0x4d5   : > { %v2217_v53 = vadd.f32 %v11266_v18, %v2201_v60 }
 0x4d6   : > { %v2216_v40 = vadd.f32 %v11272_v17, %v2200_v42  ;;  %v8389_v55 = vpop.f32.mrb[56].mxu1  ;;  %9767 = vmatprep.subr.bf16.mxu1 %v9766_v21 }
 0x4d7   : > { %v2203_v0 = vmul.f32 0.2, %v8389_v55  ;;  %v2155_v36 = vpop.f32.mrb[57].mxu1  ;;  %9769 = vmatpush3.bf16.msra.mxu1 %v9766_v21 }
 0x4d8   : > { %v2202_v63 = vmul.f32 0.2, %v2155_v36  ;;  %v9770_v2 = vpack.c.bf16 %v2217_v53, %v2216_v40 }
 0x4d9   : > { %v2219_v27 = vadd.f32 %v11280_v24, %v2203_v0 }
 0x4da   : > { %v2218_v6 = vadd.f32 %v11286_v23, %v2202_v63  ;;  %v8392_v46 = vpop.f32.mrb[58].mxu1  ;;  %9771 = vmatprep.subr.bf16.mxu1 %v9770_v2 }
 0x4db   : > { %v2205_v20 = vmul.f32 0.2, %v8392_v46  ;;  %v2165_v16 = vpop.f32.mrb[59].mxu1  ;;  %9773 = vmatpush3.bf16.msra.mxu1 %v9770_v2 }
 0x4dc   : > { %v2204_v25 = vmul.f32 0.2, %v2165_v16  ;;  %v9774_v12 = vpack.c.bf16 %v2219_v27, %v2218_v6 }
 0x4dd   : > { %v2221_v60 = vadd.f32 %v11294_v29, %v2205_v20 }
 0x4de   : > { %v2220_v42 = vadd.f32 %v11300_v28, %v2204_v25  ;;  %v8395_v55 = vpop.f32.mrb[60].mxu1  ;;  %9775 = vmatprep.subr.bf16.mxu1 %v9774_v12 }
 0x4df   : > { %v2207_v21 = vmul.f32 0.2, %v8395_v55  ;;  %v2175_v36 = vpop.f32.mrb[61].mxu1  ;;  %9777 = vmatpush3.bf16.msra.mxu1 %v9774_v12 }
 0x4e0   : > { %v2206_v53 = vmul.f32 0.2, %v2175_v36  ;;  %v9778_v40 = vpack.c.bf16 %v2221_v60, %v2220_v42  ;;  %v12091_v60 = vld [vmem:[#allocation19_spill] sm:$0xff] }
 0x4e1   : > { %v2223_v0 = vadd.f32 %v11308_v34, %v2207_v21 }
 0x4e2   : > { %v2222_v63 = vadd.f32 %v11314_v33, %v2206_v53  ;;  %v8398_v46 = vpop.f32.mrb[62].mxu1  ;;  %9779 = vmatprep.subr.bf16.mxu1 %v9778_v40 }
 0x4e3   : > { %v2209_v2 = vmul.f32 0.2, %v8398_v46  ;;  %v2185_v16 = vpop.f32.mrb[63].mxu1  ;;  %9781 = vmatpush3.bf16.msra.mxu1 %v9778_v40 }
 0x4e4   : > { %v2208_v27 = vmul.f32 0.2, %v2185_v16  ;;  %v9782_v6 = vpack.c.bf16 %v2223_v0, %v2222_v63 }
 0x4e5   : > { %v2225_v20 = vadd.f32 %v11322_v39, %v2209_v2 }
 0x4e6   : > { %v2224_v25 = vadd.f32 %v11328_v38, %v2208_v27  ;;  %9783 = vmatprep.subr.bf16.mxu1 %v9782_v6 }
 0x4e7   : > { %9785 = vmatpush3.bf16.msra.mxu1 %v9782_v6 }
 0x4e8   : > { %v9786_v12 = vpack.c.bf16 %v2225_v20, %v2224_v25 }
 0x4ea   : > { %9787 = vmatprep.subr.bf16.mxu1 %v9786_v12 }
 0x4eb   : > { %9789 = vmatpush3.bf16.msra.mxu1 %v9786_v12 }
 0x4ee   : > { %8488 = vmatmul.mubr.f32.vlgmr.msra.gmra.mrb[64].mxu1 %v11146_v32 }
 0x4ef   : > { %8490 = vmatprep.mubr.f32.mxu1 %v11151_v61 }
 0x4f2   : > { %8491 = vmatmul.mubr.f32.gmra.mrb[66].mxu1 %v11156_v15 }
 0x4f3   : > { %8493 = vmatprep.mubr.f32.mxu1 %v11161_v45 }
 0x4f6   : > { %8494 = vmatmul.mubr.f32.gmra.mrb[68].mxu1 %v11166_v52 }
 0x4f7   : > { %8496 = vmatprep.mubr.f32.mxu1 %v11171_v58 }
 0x4fa   : > { %8497 = vmatmul.mubr.f32.gmra.mrb[70].mxu1 %v11176_v31 }
 0x4fb   : > { %8499 = vmatprep.mubr.f32.mxu1 %v11181_v1 }
 0x4fe   : > { %8500 = vmatmul.mubr.f32.gmra.mrb[72].mxu1 %v11186_v9 }
 0x4ff   : > { %8502 = vmatprep.mubr.f32.mxu1 %v11191_v57 }
 0x502   : > { %8503 = vmatmul.mubr.f32.gmra.mrb[74].mxu1 %v11196_v54 }
 0x503   : > { %8505 = vmatprep.mubr.f32.mxu1 %v11201_v50 }
 0x506   : > { %8506 = vmatmul.mubr.f32.gmra.mrb[76].mxu1 %v11206_v56 }
 0x507   : > { %8508 = vmatprep.mubr.f32.mxu1 %v11211_v3 }
 0x50a   : > { %8509 = vmatmul.mubr.f32.gmra.mrb[78].mxu1 %v11216_v10 }
 0x50b   : > { %8599 = vmatprep.mubr.f32.mxu1 %v12091_v60 }
 0x581   : > { %v8433_v42 = vpop.f32.mrb[64].mxu0 }
 0x582   : > { %v2372_v55 = vmul.f32 0.25, %v8433_v42  ;;  %v2292_v21 = vpop.f32.mrb[65].mxu0 }
 0x583   : > { %v2371_v36 = vmul.f32 0.25, %v2292_v21 }
 0x584   : > { %v2388_v53 = vadd.f32 %v11224_v59, %v2372_v55 }
 0x585   : > { %v2387_v40 = vadd.f32 %v11230_v62, %v2371_v36  ;;  %v8436_v0 = vpop.f32.mrb[66].mxu0 }
 0x586   : > { %v2374_v63 = vmul.f32 0.25, %v8436_v0  ;;  %v2302_v46 = vpop.f32.mrb[67].mxu0 }
 0x587   : > { %v2373_v2 = vmul.f32 0.25, %v2302_v46  ;;  %v9790_v16 = vpack.c.bf16 %v2388_v53, %v2387_v40 }
 0x588   : > { %v2390_v27 = vadd.f32 %v11238_v11, %v2374_v63 }
 0x589   : > { %v2389_v6 = vadd.f32 %v11244_v8, %v2373_v2  ;;  %v8439_v20 = vpop.f32.mrb[68].mxu0  ;;  %9791 = vmatprep.subr.bf16.mxu0 %v9790_v16 }
 0x58a   : > { %v2376_v25 = vmul.f32 0.25, %v8439_v20  ;;  %v2312_v12 = vpop.f32.mrb[69].mxu0  ;;  %9793 = vmatpush3.bf16.msra.mxu0 %v9790_v16 }
 0x58b   : > { %v2375_v42 = vmul.f32 0.25, %v2312_v12  ;;  %v9794_v21 = vpack.c.bf16 %v2390_v27, %v2389_v6 }
 0x58c   : > { %v2392_v55 = vadd.f32 %v11252_v14, %v2376_v25 }
 0x58d   : > { %v2391_v36 = vadd.f32 %v11258_v13, %v2375_v42  ;;  %v8442_v60 = vpop.f32.mrb[70].mxu0  ;;  %9795 = vmatprep.subr.bf16.mxu0 %v9794_v21 }
 0x58e   : > { %v2378_v0 = vmul.f32 0.25, %v8442_v60  ;;  %v2322_v46 = vpop.f32.mrb[71].mxu0  ;;  %9797 = vmatpush3.bf16.msra.mxu0 %v9794_v21 }
 0x58f   : > { %v2377_v53 = vmul.f32 0.25, %v2322_v46  ;;  %v9798_v40 = vpack.c.bf16 %v2392_v55, %v2391_v36 }
 0x590   : > { %v2394_v63 = vadd.f32 %v11266_v18, %v2378_v0 }
 0x591   : > { %v2393_v2 = vadd.f32 %v11272_v17, %v2377_v53  ;;  %v8445_v20 = vpop.f32.mrb[72].mxu0  ;;  %9799 = vmatprep.subr.bf16.mxu0 %v9798_v40 }
 0x592   : > { %v2380_v16 = vmul.f32 0.25, %v8445_v20  ;;  %v2332_v12 = vpop.f32.mrb[73].mxu0  ;;  %9801 = vmatpush3.bf16.msra.mxu0 %v9798_v40 }
 0x593   : > { %v2379_v27 = vmul.f32 0.25, %v2332_v12  ;;  %v9802_v6 = vpack.c.bf16 %v2394_v63, %v2393_v2 }
 0x594   : > { %v2396_v25 = vadd.f32 %v11280_v24, %v2380_v16 }
 0x595   : > { %v2395_v42 = vadd.f32 %v11286_v23, %v2379_v27  ;;  %v8448_v60 = vpop.f32.mrb[74].mxu0  ;;  %9803 = vmatprep.subr.bf16.mxu0 %v9802_v6 }
 0x596   : > { %v2382_v21 = vmul.f32 0.25, %v8448_v60  ;;  %v2342_v46 = vpop.f32.mrb[75].mxu0  ;;  %9805 = vmatpush3.bf16.msra.mxu0 %v9802_v6 }
 0x597   : > { %v2381_v55 = vmul.f32 0.25, %v2342_v46  ;;  %v9806_v36 = vpack.c.bf16 %v2396_v25, %v2395_v42 }
 0x598   : > { %v2398_v0 = vadd.f32 %v11294_v29, %v2382_v21 }
 0x599   : > { %v2397_v53 = vadd.f32 %v11300_v28, %v2381_v55  ;;  %v8451_v20 = vpop.f32.mrb[76].mxu0  ;;  %9807 = vmatprep.subr.bf16.mxu0 %v9806_v36 }
 0x59a   : > { %v2384_v40 = vmul.f32 0.25, %v8451_v20  ;;  %v2352_v12 = vpop.f32.mrb[77].mxu0  ;;  %9809 = vmatpush3.bf16.msra.mxu0 %v9806_v36 }
 0x59b   : > { %v2383_v63 = vmul.f32 0.25, %v2352_v12  ;;  %v9810_v2 = vpack.c.bf16 %v2398_v0, %v2397_v53 }
 0x59c   : > { %v2400_v16 = vadd.f32 %v11308_v34, %v2384_v40 }
 0x59d   : > { %v2399_v27 = vadd.f32 %v11314_v33, %v2383_v63  ;;  %v8454_v60 = vpop.f32.mrb[78].mxu0  ;;  %9811 = vmatprep.subr.bf16.mxu0 %v9810_v2 }
 0x59e   : > { %v2386_v6 = vmul.f32 0.25, %v8454_v60  ;;  %v2362_v46 = vpop.f32.mrb[79].mxu0  ;;  %9813 = vmatpush3.bf16.msra.mxu0 %v9810_v2 }
 0x59f   : > { %v2385_v25 = vmul.f32 0.25, %v2362_v46  ;;  %v9814_v42 = vpack.c.bf16 %v2400_v16, %v2399_v27 }
 0x5a0   : > { %v2402_v21 = vadd.f32 %v11322_v39, %v2386_v6 }
 0x5a1   : > { %v2401_v55 = vadd.f32 %v11328_v38, %v2385_v25  ;;  %9815 = vmatprep.subr.bf16.mxu0 %v9814_v42 }
 0x5a2   : > { %9817 = vmatpush3.bf16.msra.mxu0 %v9814_v42 }
 0x5a3   : > { %v9818_v36 = vpack.c.bf16 %v2402_v21, %v2401_v55 }
 0x5a5   : > { %9819 = vmatprep.subr.bf16.mxu0 %v9818_v36 }
 0x5a6   : > { %9821 = vmatpush3.bf16.msra.mxu0 %v9818_v36 }
 0x5a9   : > { %8544 = vmatmul.mubr.f32.vlgmr.msra.gmra.mrb[80].mxu0 %v12075_v43 }
 0x5aa   : > { %8546 = vmatprep.mubr.f32.mxu0 %v12076_v49 }
 0x5ad   : > { %8547 = vmatmul.mubr.f32.gmra.mrb[82].mxu0 %v12077_v37 }
 0x5ae   : > { %8549 = vmatprep.mubr.f32.mxu0 %v12078_v7 }
 0x5b1   : > { %8550 = vmatmul.mubr.f32.gmra.mrb[84].mxu0 %v12079_v41 }
 0x5b2   : > { %8552 = vmatprep.mubr.f32.mxu0 %v12080_v48 }
 0x5b5   : > { %8553 = vmatmul.mubr.f32.gmra.mrb[86].mxu0 %v12081_v35 }
 0x5b6   : > { %8555 = vmatprep.mubr.f32.mxu0 %v12082_v4 }
 0x5b9   : > { %8556 = vmatmul.mubr.f32.gmra.mrb[88].mxu0 %v12083_v22 }
 0x5ba   : > { %8558 = vmatprep.mubr.f32.mxu0 %v12084_v44 }
 0x5bd   : > { %8559 = vmatmul.mubr.f32.gmra.mrb[90].mxu0 %v12085_v26 }
 0x5be   : > { %8561 = vmatprep.mubr.f32.mxu0 %v12086_v51 }
 0x5c1   : > { %v8489_v0 = vpop.f32.mrb[64].mxu1  ;;  %8562 = vmatmul.mubr.f32.gmra.mrb[92].mxu0 %v12087_v47 }
 0x5c2   : > { %v2549_v53 = vmul.f32 0.25, %v8489_v0  ;;  %v2469_v20 = vpop.f32.mrb[65].mxu1  ;;  %8564 = vmatprep.mubr.f32.mxu0 %v11130_v30 }
 0x5c3   : > { %v2548_v40 = vmul.f32 0.25, %v2469_v20 }
 0x5c4   : > { %v2565_v12 = vadd.f32 %v11224_v59, %v2549_v53 }
 0x5c5   : > { %v2564_v63 = vadd.f32 %v11230_v62, %v2548_v40  ;;  %v8492_v2 = vpop.f32.mrb[66].mxu1  ;;  %8565 = vmatmul.mubr.f32.gmra.mrb[94].mxu0 %v11135_v5 }
 0x5c6   : > { %v2551_v16 = vmul.f32 0.25, %v8492_v2  ;;  %v2479_v27 = vpop.f32.mrb[67].mxu1  ;;  %8655 = vmatprep.mubr.f32.mxu0 %v12088_v19 }
 0x5c7   : > { %v2550_v60 = vmul.f32 0.25, %v2479_v27  ;;  %v9822_v6 = vpack.c.bf16 %v2565_v12, %v2564_v63 }
 0x5c8   : > { %v2567_v46 = vadd.f32 %v11238_v11, %v2551_v16 }
 0x5c9   : > { %v2566_v25 = vadd.f32 %v11244_v8, %v2550_v60  ;;  %v8495_v42 = vpop.f32.mrb[68].mxu1  ;;  %9823 = vmatprep.subr.bf16.mxu1 %v9822_v6 }
 0x5ca   : > { %v2553_v21 = vmul.f32 0.25, %v8495_v42  ;;  %v2489_v55 = vpop.f32.mrb[69].mxu1  ;;  %9825 = vmatpush3.bf16.msra.mxu1 %v9822_v6 }
 0x5cb   : > { %v2552_v36 = vmul.f32 0.25, %v2489_v55  ;;  %v9826_v0 = vpack.c.bf16 %v2567_v46, %v2566_v25 }
 0x5cc   : > { %v2569_v53 = vadd.f32 %v11252_v14, %v2553_v21 }
 0x5cd   : > { %v2568_v20 = vadd.f32 %v11258_v13, %v2552_v36  ;;  %v8498_v40 = vpop.f32.mrb[70].mxu1  ;;  %9827 = vmatprep.subr.bf16.mxu1 %v9826_v0 }
 0x5ce   : > { %v2555_v2 = vmul.f32 0.25, %v8498_v40  ;;  %v2499_v27 = vpop.f32.mrb[71].mxu1  ;;  %9829 = vmatpush3.bf16.msra.mxu1 %v9826_v0 }
 0x5cf   : > { %v2554_v12 = vmul.f32 0.25, %v2499_v27  ;;  %v9830_v63 = vpack.c.bf16 %v2569_v53, %v2568_v20 }
 0x5d0   : > { %v2571_v16 = vadd.f32 %v11266_v18, %v2555_v2 }
 0x5d1   : > { %v2570_v60 = vadd.f32 %v11272_v17, %v2554_v12  ;;  %v8501_v42 = vpop.f32.mrb[72].mxu1  ;;  %9831 = vmatprep.subr.bf16.mxu1 %v9830_v63 }
 0x5d2   : > { %v2557_v6 = vmul.f32 0.25, %v8501_v42  ;;  %v2509_v55 = vpop.f32.mrb[73].mxu1  ;;  %9833 = vmatpush3.bf16.msra.mxu1 %v9830_v63 }
 0x5d3   : > { %v2556_v46 = vmul.f32 0.25, %v2509_v55  ;;  %v9834_v25 = vpack.c.bf16 %v2571_v16, %v2570_v60 }
 0x5d4   : > { %v2573_v21 = vadd.f32 %v11280_v24, %v2557_v6 }
 0x5d5   : > { %v2572_v36 = vadd.f32 %v11286_v23, %v2556_v46  ;;  %v8504_v40 = vpop.f32.mrb[74].mxu1  ;;  %9835 = vmatprep.subr.bf16.mxu1 %v9834_v25 }
 0x5d6   : > { %v2559_v0 = vmul.f32 0.25, %v8504_v40  ;;  %v2519_v27 = vpop.f32.mrb[75].mxu1  ;;  %9837 = vmatpush3.bf16.msra.mxu1 %v9834_v25 }
 0x5d7   : > { %v2558_v53 = vmul.f32 0.25, %v2519_v27  ;;  %v9838_v20 = vpack.c.bf16 %v2573_v21, %v2572_v36 }
 0x5d8   : > { %v2575_v2 = vadd.f32 %v11294_v29, %v2559_v0 }
 0x5d9   : > { %v2574_v12 = vadd.f32 %v11300_v28, %v2558_v53  ;;  %v8507_v42 = vpop.f32.mrb[76].mxu1  ;;  %9839 = vmatprep.subr.bf16.mxu1 %v9838_v20 }
 0x5da   : > { %v2561_v63 = vmul.f32 0.25, %v8507_v42  ;;  %v2529_v55 = vpop.f32.mrb[77].mxu1  ;;  %9841 = vmatpush3.bf16.msra.mxu1 %v9838_v20 }
 0x5db   : > { %v2560_v16 = vmul.f32 0.25, %v2529_v55  ;;  %v9842_v60 = vpack.c.bf16 %v2575_v2, %v2574_v12  ;;  %v12092_v2 = vld [vmem:[#allocation19_spill] sm:$0xff] }
 0x5dc   : > { %v2577_v6 = vadd.f32 %v11308_v34, %v2561_v63 }
 0x5dd   : > { %v2576_v46 = vadd.f32 %v11314_v33, %v2560_v16  ;;  %v8510_v40 = vpop.f32.mrb[78].mxu1  ;;  %9843 = vmatprep.subr.bf16.mxu1 %v9842_v60 }
 0x5de   : > { %v2563_v25 = vmul.f32 0.25, %v8510_v40  ;;  %v2539_v27 = vpop.f32.mrb[79].mxu1  ;;  %9845 = vmatpush3.bf16.msra.mxu1 %v9842_v60 }
 0x5df   : > { %v2562_v21 = vmul.f32 0.25, %v2539_v27  ;;  %v9846_v36 = vpack.c.bf16 %v2577_v6, %v2576_v46 }
 0x5e0   : > { %v2579_v0 = vadd.f32 %v11322_v39, %v2563_v25 }
 0x5e1   : > { %v2578_v53 = vadd.f32 %v11328_v38, %v2562_v21  ;;  %9847 = vmatprep.subr.bf16.mxu1 %v9846_v36 }
 0x5e2   : > { %9849 = vmatpush3.bf16.msra.mxu1 %v9846_v36 }
 0x5e3   : > { %v9850_v20 = vpack.c.bf16 %v2579_v0, %v2578_v53 }
 0x5e5   : > { %9851 = vmatprep.subr.bf16.mxu1 %v9850_v20 }
 0x5e6   : > { %9853 = vmatpush3.bf16.msra.mxu1 %v9850_v20 }
 0x5e9   : > { %8600 = vmatmul.mubr.f32.vlgmr.msra.gmra.mrb[80].mxu1 %v11146_v32 }
 0x5ea   : > { %8602 = vmatprep.mubr.f32.mxu1 %v11151_v61 }
 0x5ed   : > { %8603 = vmatmul.mubr.f32.gmra.mrb[82].mxu1 %v11156_v15 }
 0x5ee   : > { %8605 = vmatprep.mubr.f32.mxu1 %v11161_v45 }
 0x5f1   : > { %8606 = vmatmul.mubr.f32.gmra.mrb[84].mxu1 %v11166_v52 }
 0x5f2   : > { %8608 = vmatprep.mubr.f32.mxu1 %v11171_v58 }
 0x5f5   : > { %8609 = vmatmul.mubr.f32.gmra.mrb[86].mxu1 %v11176_v31 }
 0x5f6   : > { %8611 = vmatprep.mubr.f32.mxu1 %v11181_v1 }
 0x5f9   : > { %8612 = vmatmul.mubr.f32.gmra.mrb[88].mxu1 %v11186_v9 }
 0x5fa   : > { %8614 = vmatprep.mubr.f32.mxu1 %v11191_v57 }
 0x5fd   : > { %8615 = vmatmul.mubr.f32.gmra.mrb[90].mxu1 %v11196_v54 }
 0x5fe   : > { %8617 = vmatprep.mubr.f32.mxu1 %v11201_v50 }
 0x601   : > { %8618 = vmatmul.mubr.f32.gmra.mrb[92].mxu1 %v11206_v56 }
 0x602   : > { %8620 = vmatprep.mubr.f32.mxu1 %v11211_v3 }
 0x605   : > { %8621 = vmatmul.mubr.f32.gmra.mrb[94].mxu1 %v11216_v10 }
 0x606   : > { %8711 = vmatprep.mubr.f32.mxu1 %v12092_v2 }
 0x67c   : > { %v8545_v12 = vpop.f32.mrb[80].mxu0 }
 0x67d   : > { %v2726_v42 = vmul.f32 0.33333334, %v8545_v12  ;;  %v2646_v63 = vpop.f32.mrb[81].mxu0 }
 0x67e   : > { %v2725_v55 = vmul.f32 0.33333334, %v2646_v63 }
 0x67f   : > { %v2742_v16 = vadd.f32 %v11224_v59, %v2726_v42 }
 0x680   : > { %v2741_v60 = vadd.f32 %v11230_v62, %v2725_v55  ;;  %v8548_v6 = vpop.f32.mrb[82].mxu0 }
 0x681   : > { %v2728_v46 = vmul.f32 0.33333334, %v8548_v6  ;;  %v2656_v40 = vpop.f32.mrb[83].mxu0 }
 0x682   : > { %v2727_v25 = vmul.f32 0.33333334, %v2656_v40  ;;  %v9854_v27 = vpack.c.bf16 %v2742_v16, %v2741_v60 }
 0x683   : > { %v2744_v21 = vadd.f32 %v11238_v11, %v2728_v46 }
 0x684   : > { %v2743_v36 = vadd.f32 %v11244_v8, %v2727_v25  ;;  %v8551_v0 = vpop.f32.mrb[84].mxu0  ;;  %9855 = vmatprep.subr.bf16.mxu0 %v9854_v27 }
 0x685   : > { %v2730_v53 = vmul.f32 0.33333334, %v8551_v0  ;;  %v2666_v20 = vpop.f32.mrb[85].mxu0  ;;  %9857 = vmatpush3.bf16.msra.mxu0 %v9854_v27 }
 0x686   : > { %v2729_v12 = vmul.f32 0.33333334, %v2666_v20  ;;  %v9858_v63 = vpack.c.bf16 %v2744_v21, %v2743_v36 }
 0x687   : > { %v2746_v42 = vadd.f32 %v11252_v14, %v2730_v53 }
 0x688   : > { %v2745_v55 = vadd.f32 %v11258_v13, %v2729_v12  ;;  %v8554_v2 = vpop.f32.mrb[86].mxu0  ;;  %9859 = vmatprep.subr.bf16.mxu0 %v9858_v63 }
 0x689   : > { %v2732_v6 = vmul.f32 0.33333334, %v8554_v2  ;;  %v2676_v40 = vpop.f32.mrb[87].mxu0  ;;  %9861 = vmatpush3.bf16.msra.mxu0 %v9858_v63 }
 0x68a   : > { %v2731_v16 = vmul.f32 0.33333334, %v2676_v40  ;;  %v9862_v60 = vpack.c.bf16 %v2746_v42, %v2745_v55 }
 0x68b   : > { %v2748_v46 = vadd.f32 %v11266_v18, %v2732_v6 }
 0x68c   : > { %v2747_v25 = vadd.f32 %v11272_v17, %v2731_v16  ;;  %v8557_v0 = vpop.f32.mrb[88].mxu0  ;;  %9863 = vmatprep.subr.bf16.mxu0 %v9862_v60 }
 0x68d   : > { %v2734_v27 = vmul.f32 0.33333334, %v8557_v0  ;;  %v2686_v20 = vpop.f32.mrb[89].mxu0  ;;  %9865 = vmatpush3.bf16.msra.mxu0 %v9862_v60 }
 0x68e   : > { %v2733_v21 = vmul.f32 0.33333334, %v2686_v20  ;;  %v9866_v36 = vpack.c.bf16 %v2748_v46, %v2747_v25 }
 0x68f   : > { %v2750_v53 = vadd.f32 %v11280_v24, %v2734_v27 }
 0x690   : > { %v2749_v12 = vadd.f32 %v11286_v23, %v2733_v21  ;;  %v8560_v2 = vpop.f32.mrb[90].mxu0  ;;  %9867 = vmatprep.subr.bf16.mxu0 %v9866_v36 }
 0x691   : > { %v2736_v63 = vmul.f32 0.33333334, %v8560_v2  ;;  %v2696_v40 = vpop.f32.mrb[91].mxu0  ;;  %9869 = vmatpush3.bf16.msra.mxu0 %v9866_v36 }
 0x692   : > { %v2735_v42 = vmul.f32 0.33333334, %v2696_v40  ;;  %v9870_v55 = vpack.c.bf16 %v2750_v53, %v2749_v12 }
 0x693   : > { %v2752_v6 = vadd.f32 %v11294_v29, %v2736_v63 }
 0x694   : > { %v2751_v16 = vadd.f32 %v11300_v28, %v2735_v42  ;;  %v8563_v0 = vpop.f32.mrb[92].mxu0  ;;  %9871 = vmatprep.subr.bf16.mxu0 %v9870_v55 }
 0x695   : > { %v2738_v60 = vmul.f32 0.33333334, %v8563_v0  ;;  %v2706_v20 = vpop.f32.mrb[93].mxu0  ;;  %9873 = vmatpush3.bf16.msra.mxu0 %v9870_v55 }
 0x696   : > { %v2737_v46 = vmul.f32 0.33333334, %v2706_v20  ;;  %v9874_v25 = vpack.c.bf16 %v2752_v6, %v2751_v16 }
 0x697   : > { %v2754_v27 = vadd.f32 %v11308_v34, %v2738_v60 }
 0x698   : > { %v2753_v21 = vadd.f32 %v11314_v33, %v2737_v46  ;;  %v8566_v2 = vpop.f32.mrb[94].mxu0  ;;  %9875 = vmatprep.subr.bf16.mxu0 %v9874_v25 }
 0x699   : > { %v2740_v36 = vmul.f32 0.33333334, %v8566_v2  ;;  %v2716_v40 = vpop.f32.mrb[95].mxu0  ;;  %9877 = vmatpush3.bf16.msra.mxu0 %v9874_v25 }
 0x69a   : > { %v2739_v53 = vmul.f32 0.33333334, %v2716_v40  ;;  %v9878_v12 = vpack.c.bf16 %v2754_v27, %v2753_v21 }
 0x69b   : > { %v2756_v63 = vadd.f32 %v11322_v39, %v2740_v36 }
 0x69c   : > { %v2755_v42 = vadd.f32 %v11328_v38, %v2739_v53  ;;  %9879 = vmatprep.subr.bf16.mxu0 %v9878_v12 }
 0x69d   : > { %9881 = vmatpush3.bf16.msra.mxu0 %v9878_v12 }
 0x69e   : > { %v9882_v55 = vpack.c.bf16 %v2756_v63, %v2755_v42 }
 0x6a0   : > { %9883 = vmatprep.subr.bf16.mxu0 %v9882_v55 }
 0x6a1   : > { %9885 = vmatpush3.bf16.msra.mxu0 %v9882_v55 }
 0x6a4   : > { %8656 = vmatmul.mubr.f32.vlgmr.msra.gmra.mrb[96].mxu0 %v12075_v43 }
 0x6a5   : > { %8658 = vmatprep.mubr.f32.mxu0 %v12076_v49 }
 0x6a8   : > { %8659 = vmatmul.mubr.f32.gmra.mrb[98].mxu0 %v12077_v37 }
 0x6a9   : > { %8661 = vmatprep.mubr.f32.mxu0 %v12078_v7 }
 0x6ac   : > { %8662 = vmatmul.mubr.f32.gmra.mrb[100].mxu0 %v12079_v41 }
 0x6ad   : > { %8664 = vmatprep.mubr.f32.mxu0 %v12080_v48 }
 0x6b0   : > { %8665 = vmatmul.mubr.f32.gmra.mrb[102].mxu0 %v12081_v35 }
 0x6b1   : > { %8667 = vmatprep.mubr.f32.mxu0 %v12082_v4 }
 0x6b4   : > { %8668 = vmatmul.mubr.f32.gmra.mrb[104].mxu0 %v12083_v22 }
 0x6b5   : > { %8670 = vmatprep.mubr.f32.mxu0 %v12084_v44 }
 0x6b8   : > { %8671 = vmatmul.mubr.f32.gmra.mrb[106].mxu0 %v12085_v26 }
 0x6b9   : > { %8673 = vmatprep.mubr.f32.mxu0 %v12086_v51 }
 0x6bc   : > { %v8601_v6 = vpop.f32.mrb[80].mxu1  ;;  %8674 = vmatmul.mubr.f32.gmra.mrb[108].mxu0 %v12087_v47 }
 0x6bd   : > { %v2903_v16 = vmul.f32 0.33333334, %v8601_v6  ;;  %v2823_v0 = vpop.f32.mrb[81].mxu1  ;;  %8676 = vmatprep.mubr.f32.mxu0 %v11130_v30 }
 0x6be   : > { %v2902_v60 = vmul.f32 0.33333334, %v2823_v0 }
 0x6bf   : > { %v2919_v20 = vadd.f32 %v11224_v59, %v2903_v16 }
 0x6c0   : > { %v2918_v46 = vadd.f32 %v11230_v62, %v2902_v60  ;;  %v8604_v25 = vpop.f32.mrb[82].mxu1  ;;  %8677 = vmatmul.mubr.f32.gmra.mrb[110].mxu0 %v11135_v5 }
 0x6c1   : > { %v2905_v27 = vmul.f32 0.33333334, %v8604_v25  ;;  %v2833_v21 = vpop.f32.mrb[83].mxu1  ;;  %8767 = vmatprep.mubr.f32.mxu0 %v12088_v19 }
 0x6c2   : > { %v2904_v2 = vmul.f32 0.33333334, %v2833_v21  ;;  %v9886_v36 = vpack.c.bf16 %v2919_v20, %v2918_v46 }
 0x6c3   : > { %v2921_v40 = vadd.f32 %v11238_v11, %v2905_v27 }
 0x6c4   : > { %v2920_v53 = vadd.f32 %v11244_v8, %v2904_v2  ;;  %v8607_v12 = vpop.f32.mrb[84].mxu1  ;;  %9887 = vmatprep.subr.bf16.mxu1 %v9886_v36 }
 0x6c5   : > { %v2907_v63 = vmul.f32 0.33333334, %v8607_v12  ;;  %v2843_v42 = vpop.f32.mrb[85].mxu1  ;;  %9889 = vmatpush3.bf16.msra.mxu1 %v9886_v36 }
 0x6c6   : > { %v2906_v55 = vmul.f32 0.33333334, %v2843_v42  ;;  %v9890_v6 = vpack.c.bf16 %v2921_v40, %v2920_v53 }
 0x6c7   : > { %v2923_v16 = vadd.f32 %v11252_v14, %v2907_v63 }
 0x6c8   : > { %v2922_v0 = vadd.f32 %v11258_v13, %v2906_v55  ;;  %v8610_v60 = vpop.f32.mrb[86].mxu1  ;;  %9891 = vmatprep.subr.bf16.mxu1 %v9890_v6 }
 0x6c9   : > { %v2909_v19 = vmul.f32 0.33333334, %v8610_v60  ;;  %v2853_v25 = vpop.f32.mrb[87].mxu1  ;;  %9893 = vmatpush3.bf16.msra.mxu1 %v9890_v6 }
 0x6ca   : > { %v2908_v20 = vmul.f32 0.33333334, %v2853_v25  ;;  %v9894_v46 = vpack.c.bf16 %v2923_v16, %v2922_v0 }
 0x6cb   : > { %v2925_v27 = vadd.f32 %v11266_v18, %v2909_v19 }
 0x6cc   : > { %v2924_v21 = vadd.f32 %v11272_v17, %v2908_v20  ;;  %v8613_v2 = vpop.f32.mrb[88].mxu1  ;;  %9895 = vmatprep.subr.bf16.mxu1 %v9894_v46 }
 0x6cd   : > { %v2911_v36 = vmul.f32 0.33333334, %v8613_v2  ;;  %v2863_v12 = vpop.f32.mrb[89].mxu1  ;;  %9897 = vmatpush3.bf16.msra.mxu1 %v9894_v46 }
 0x6ce   : > { %v2910_v40 = vmul.f32 0.33333334, %v2863_v12  ;;  %v9898_v53 = vpack.c.bf16 %v2925_v27, %v2924_v21 }
 0x6cf   : > { %v2927_v63 = vadd.f32 %v11280_v24, %v2911_v36 }
 0x6d0   : > { %v2926_v42 = vadd.f32 %v11286_v23, %v2910_v40  ;;  %v8616_v55 = vpop.f32.mrb[90].mxu1  ;;  %9899 = vmatprep.subr.bf16.mxu1 %v9898_v53 }
 0x6d1   : > { %v2913_v6 = vmul.f32 0.33333334, %v8616_v55  ;;  %v2873_v60 = vpop.f32.mrb[91].mxu1  ;;  %9901 = vmatpush3.bf16.msra.mxu1 %v9898_v53 }
 0x6d2   : > { %v2912_v16 = vmul.f32 0.33333334, %v2873_v60  ;;  %v9902_v0 = vpack.c.bf16 %v2927_v63, %v2926_v42 }
 0x6d3   : > { %v2929_v19 = vadd.f32 %v11294_v29, %v2913_v6 }
 0x6d4   : > { %v2928_v25 = vadd.f32 %v11300_v28, %v2912_v16  ;;  %v8619_v20 = vpop.f32.mrb[92].mxu1  ;;  %9903 = vmatprep.subr.bf16.mxu1 %v9902_v0 }
 0x6d5   : > { %v2915_v46 = vmul.f32 0.33333334, %v8619_v20  ;;  %v2883_v2 = vpop.f32.mrb[93].mxu1  ;;  %9905 = vmatpush3.bf16.msra.mxu1 %v9902_v0  ;;  %v12093_v0 = vld [vmem:[#allocation19_spill] sm:$0xff] }
 0x6d6   : > { %v2914_v27 = vmul.f32 0.33333334, %v2883_v2  ;;  %v9906_v21 = vpack.c.bf16 %v2929_v19, %v2928_v25 }
 0x6d7   : > { %v2931_v36 = vadd.f32 %v11308_v34, %v2915_v46 }
 0x6d8   : > { %v2930_v12 = vadd.f32 %v11314_v33, %v2914_v27  ;;  %v8622_v40 = vpop.f32.mrb[94].mxu1  ;;  %9907 = vmatprep.subr.bf16.mxu1 %v9906_v21 }
 0x6d9   : > { %v2917_v53 = vmul.f32 0.33333334, %v8622_v40  ;;  %v2893_v55 = vpop.f32.mrb[95].mxu1  ;;  %9909 = vmatpush3.bf16.msra.mxu1 %v9906_v21 }
 0x6da   : > { %v2916_v63 = vmul.f32 0.33333334, %v2893_v55  ;;  %v9910_v42 = vpack.c.bf16 %v2931_v36, %v2930_v12 }
 0x6db   : > { %v2933_v6 = vadd.f32 %v11322_v39, %v2917_v53 }
 0x6dc   : > { %v2932_v60 = vadd.f32 %v11328_v38, %v2916_v63  ;;  %9911 = vmatprep.subr.bf16.mxu1 %v9910_v42 }
 0x6dd   : > { %9913 = vmatpush3.bf16.msra.mxu1 %v9910_v42 }
 0x6de   : > { %v9914_v16 = vpack.c.bf16 %v2933_v6, %v2932_v60 }
 0x6e0   : > { %9915 = vmatprep.subr.bf16.mxu1 %v9914_v16 }
 0x6e1   : > { %9917 = vmatpush3.bf16.msra.mxu1 %v9914_v16 }
 0x6e4   : > { %8712 = vmatmul.mubr.f32.vlgmr.msra.gmra.mrb[96].mxu1 %v11146_v32 }
 0x6e5   : > { %8714 = vmatprep.mubr.f32.mxu1 %v11151_v61 }
 0x6e8   : > { %8715 = vmatmul.mubr.f32.gmra.mrb[98].mxu1 %v11156_v15 }
 0x6e9   : > { %8717 = vmatprep.mubr.f32.mxu1 %v11161_v45 }
 0x6ec   : > { %8718 = vmatmul.mubr.f32.gmra.mrb[100].mxu1 %v11166_v52 }
 0x6ed   : > { %8720 = vmatprep.mubr.f32.mxu1 %v11171_v58 }
 0x6f0   : > { %8721 = vmatmul.mubr.f32.gmra.mrb[102].mxu1 %v11176_v31 }
 0x6f1   : > { %8723 = vmatprep.mubr.f32.mxu1 %v11181_v1 }
 0x6f4   : > { %8724 = vmatmul.mubr.f32.gmra.mrb[104].mxu1 %v11186_v9 }
 0x6f5   : > { %8726 = vmatprep.mubr.f32.mxu1 %v11191_v57 }
 0x6f8   : > { %8727 = vmatmul.mubr.f32.gmra.mrb[106].mxu1 %v11196_v54 }
 0x6f9   : > { %8729 = vmatprep.mubr.f32.mxu1 %v11201_v50 }
 0x6fc   : > { %8730 = vmatmul.mubr.f32.gmra.mrb[108].mxu1 %v11206_v56 }
 0x6fd   : > { %8732 = vmatprep.mubr.f32.mxu1 %v11211_v3 }
 0x700   : > { %8733 = vmatmul.mubr.f32.gmra.mrb[110].mxu1 %v11216_v10 }
 0x701   : > { %8823 = vmatprep.mubr.f32.mxu1 %v12093_v0 }
 0x777   : > { %v8657_v19 = vpop.f32.mrb[96].mxu0 }
 0x778   : > { %v3080_v25 = vmul.f32 0.5, %v8657_v19  ;;  %v3000_v20 = vpop.f32.mrb[97].mxu0 }
 0x779   : > { %v3079_v46 = vmul.f32 0.5, %v3000_v20 }
 0x77a   : > { %v3096_v2 = vadd.f32 %v11224_v59, %v3080_v25 }
 0x77b   : > { %v3095_v27 = vadd.f32 %v11230_v62, %v3079_v46  ;;  %v8660_v21 = vpop.f32.mrb[98].mxu0 }
 0x77c   : > { %v3082_v36 = vmul.f32 0.5, %v8660_v21  ;;  %v3010_v12 = vpop.f32.mrb[99].mxu0 }
 0x77d   : > { %v3081_v40 = vmul.f32 0.5, %v3010_v12  ;;  %v9918_v53 = vpack.c.bf16 %v3096_v2, %v3095_v27 }
 0x77e   : > { %v3098_v55 = vadd.f32 %v11238_v11, %v3082_v36 }
 0x77f   : > { %v3097_v63 = vadd.f32 %v11244_v8, %v3081_v40  ;;  %v8663_v42 = vpop.f32.mrb[100].mxu0  ;;  %9919 = vmatprep.subr.bf16.mxu0 %v9918_v53 }
 0x780   : > { %v3084_v6 = vmul.f32 0.5, %v8663_v42  ;;  %v3020_v60 = vpop.f32.mrb[101].mxu0  ;;  %9921 = vmatpush3.bf16.msra.mxu0 %v9918_v53 }
 0x781   : > { %v3083_v16 = vmul.f32 0.5, %v3020_v60  ;;  %v9922_v0 = vpack.c.bf16 %v3098_v55, %v3097_v63 }
 0x782   : > { %v3100_v19 = vadd.f32 %v11252_v14, %v3084_v6 }
 0x783   : > { %v3099_v25 = vadd.f32 %v11258_v13, %v3083_v16  ;;  %v8666_v20 = vpop.f32.mrb[102].mxu0  ;;  %9923 = vmatprep.subr.bf16.mxu0 %v9922_v0 }
 0x784   : > { %v3086_v46 = vmul.f32 0.5, %v8666_v20  ;;  %v3030_v21 = vpop.f32.mrb[103].mxu0  ;;  %9925 = vmatpush3.bf16.msra.mxu0 %v9922_v0 }
 0x785   : > { %v3085_v2 = vmul.f32 0.5, %v3030_v21  ;;  %v9926_v27 = vpack.c.bf16 %v3100_v19, %v3099_v25 }
 0x786   : > { %v3102_v36 = vadd.f32 %v11266_v18, %v3086_v46 }
 0x787   : > { %v3101_v12 = vadd.f32 %v11272_v17, %v3085_v2  ;;  %v8669_v40 = vpop.f32.mrb[104].mxu0  ;;  %9927 = vmatprep.subr.bf16.mxu0 %v9926_v27 }
 0x788   : > { %v3088_v53 = vmul.f32 0.5, %v8669_v40  ;;  %v3040_v42 = vpop.f32.mrb[105].mxu0  ;;  %9929 = vmatpush3.bf16.msra.mxu0 %v9926_v27 }
 0x789   : > { %v3087_v55 = vmul.f32 0.5, %v3040_v42  ;;  %v9930_v63 = vpack.c.bf16 %v3102_v36, %v3101_v12 }
 0x78a   : > { %v3104_v6 = vadd.f32 %v11280_v24, %v3088_v53 }
 0x78b   : > { %v3103_v60 = vadd.f32 %v11286_v23, %v3087_v55  ;;  %v8672_v16 = vpop.f32.mrb[106].mxu0  ;;  %9931 = vmatprep.subr.bf16.mxu0 %v9930_v63 }
 0x78c   : > { %v3090_v0 = vmul.f32 0.5, %v8672_v16  ;;  %v3050_v20 = vpop.f32.mrb[107].mxu0  ;;  %9933 = vmatpush3.bf16.msra.mxu0 %v9930_v63 }
 0x78d   : > { %v3089_v19 = vmul.f32 0.5, %v3050_v20  ;;  %v9934_v25 = vpack.c.bf16 %v3104_v6, %v3103_v60 }
 0x78e   : > { %v3106_v46 = vadd.f32 %v11294_v29, %v3090_v0 }
 0x78f   : > { %v3105_v21 = vadd.f32 %v11300_v28, %v3089_v19  ;;  %v8675_v2 = vpop.f32.mrb[108].mxu0  ;;  %9935 = vmatprep.subr.bf16.mxu0 %v9934_v25 }
 0x790   : > { %v3092_v27 = vmul.f32 0.5, %v8675_v2  ;;  %v3060_v40 = vpop.f32.mrb[109].mxu0  ;;  %9937 = vmatpush3.bf16.msra.mxu0 %v9934_v25 }
 0x791   : > { %v3091_v36 = vmul.f32 0.5, %v3060_v40  ;;  %v9938_v12 = vpack.c.bf16 %v3106_v46, %v3105_v21 }
 0x792   : > { %v3108_v53 = vadd.f32 %v11308_v34, %v3092_v27 }
 0x793   : > { %v3107_v42 = vadd.f32 %v11314_v33, %v3091_v36  ;;  %v8678_v55 = vpop.f32.mrb[110].mxu0  ;;  %9939 = vmatprep.subr.bf16.mxu0 %v9938_v12 }
 0x794   : > { %v3094_v63 = vmul.f32 0.5, %v8678_v55  ;;  %v3070_v16 = vpop.f32.mrb[111].mxu0  ;;  %9941 = vmatpush3.bf16.msra.mxu0 %v9938_v12 }
 0x795   : > { %v3093_v6 = vmul.f32 0.5, %v3070_v16  ;;  %v9942_v60 = vpack.c.bf16 %v3108_v53, %v3107_v42 }
 0x796   : > { %v3110_v0 = vadd.f32 %v11322_v39, %v3094_v63 }
 0x797   : > { %v3109_v20 = vadd.f32 %v11328_v38, %v3093_v6  ;;  %9943 = vmatprep.subr.bf16.mxu0 %v9942_v60 }
 0x798   : > { %9945 = vmatpush3.bf16.msra.mxu0 %v9942_v60 }
 0x799   : > { %v9946_v19 = vpack.c.bf16 %v3110_v0, %v3109_v20 }
 0x79b   : > { %9947 = vmatprep.subr.bf16.mxu0 %v9946_v19 }
 0x79c   : > { %9949 = vmatpush3.bf16.msra.mxu0 %v9946_v19 }
 0x79f   : > { %8768 = vmatmul.mubr.f32.vlgmr.msra.gmra.mrb[112].mxu0 %v12075_v43 }
 0x7a0   : > { %8770 = vmatprep.mubr.f32.mxu0 %v12076_v49 }
 0x7a3   : > { %8771 = vmatmul.mubr.f32.gmra.mrb[114].mxu0 %v12077_v37 }
 0x7a4   : > { %8773 = vmatprep.mubr.f32.mxu0 %v12078_v7 }
 0x7a7   : > { %8774 = vmatmul.mubr.f32.gmra.mrb[116].mxu0 %v12079_v41 }
 0x7a8   : > { %8776 = vmatprep.mubr.f32.mxu0 %v12080_v48 }
 0x7ab   : > { %8777 = vmatmul.mubr.f32.gmra.mrb[118].mxu0 %v12081_v35 }
 0x7ac   : > { %8779 = vmatprep.mubr.f32.mxu0 %v12082_v4 }
 0x7af   : > { %8780 = vmatmul.mubr.f32.gmra.mrb[120].mxu0 %v12083_v22 }
 0x7b0   : > { %8782 = vmatprep.mubr.f32.mxu0 %v12084_v44 }
 0x7b3   : > { %8783 = vmatmul.mubr.f32.gmra.mrb[122].mxu0 %v12085_v26 }
 0x7b4   : > { %8785 = vmatprep.mubr.f32.mxu0 %v12086_v51 }
 0x7b7   : > { %v8713_v43 = vpop.f32.mrb[96].mxu1  ;;  %8786 = vmatmul.mubr.f32.gmra.mrb[124].mxu0 %v12087_v47 }
 0x7b8   : > { %v3257_v49 = vmul.f32 0.5, %v8713_v43  ;;  %v3177_v37 = vpop.f32.mrb[97].mxu1  ;;  %8788 = vmatprep.mubr.f32.mxu0 %v11130_v30 }
 0x7b9   : > { %v3256_v7 = vmul.f32 0.5, %v3177_v37 }
 0x7ba   : > { %v3273_v41 = vadd.f32 %v11224_v59, %v3257_v49 }
 0x7bb   : > { %v3272_v48 = vadd.f32 %v11230_v62, %v3256_v7  ;;  %v8716_v35 = vpop.f32.mrb[98].mxu1  ;;  %8789 = vmatmul.mubr.f32.gmra.mrb[126].mxu0 %v11135_v5 }
 0x7bc   : > { %v3259_v4 = vmul.f32 0.5, %v8716_v35  ;;  %v3187_v22 = vpop.f32.mrb[99].mxu1 }
 0x7bd   : > { %v3258_v44 = vmul.f32 0.5, %v3187_v22  ;;  %v9950_v26 = vpack.c.bf16 %v3273_v41, %v3272_v48 }
 0x7be   : > { %v3275_v51 = vadd.f32 %v11238_v11, %v3259_v4 }
 0x7bf   : > { %v3274_v47 = vadd.f32 %v11244_v8, %v3258_v44  ;;  %v8719_v25 = vpop.f32.mrb[100].mxu1  ;;  %9951 = vmatprep.subr.bf16.mxu1 %v9950_v26 }
 0x7c0   : > { %v3261_v46 = vmul.f32 0.5, %v8719_v25  ;;  %v3197_v30 = vpop.f32.mrb[101].mxu1  ;;  %9953 = vmatpush3.bf16.msra.mxu1 %v9950_v26 }
 0x7c1   : > { %v3260_v21 = vmul.f32 0.5, %v3197_v30  ;;  %v9954_v2 = vpack.c.bf16 %v3275_v51, %v3274_v47 }
 0x7c2   : > { %v3277_v27 = vadd.f32 %v11252_v14, %v3261_v46 }
 0x7c3   : > { %v3276_v40 = vadd.f32 %v11258_v13, %v3260_v21  ;;  %v8722_v5 = vpop.f32.mrb[102].mxu1  ;;  %9955 = vmatprep.subr.bf16.mxu1 %v9954_v2 }
 0x7c4   : > { %v3263_v36 = vmul.f32 0.5, %v8722_v5  ;;  %v3207_v12 = vpop.f32.mrb[103].mxu1  ;;  %9957 = vmatpush3.bf16.msra.mxu1 %v9954_v2 }
 0x7c5   : > { %v3262_v53 = vmul.f32 0.5, %v3207_v12  ;;  %v9958_v42 = vpack.c.bf16 %v3277_v27, %v3276_v40 }
 0x7c6   : > { %v3279_v55 = vadd.f32 %v11266_v18, %v3263_v36 }
 0x7c7   : > { %v3278_v63 = vadd.f32 %v11272_v17, %v3262_v53  ;;  %v8725_v16 = vpop.f32.mrb[104].mxu1  ;;  %9959 = vmatprep.subr.bf16.mxu1 %v9958_v42 }
 0x7c8   : > { %v3265_v6 = vmul.f32 0.5, %v8725_v16  ;;  %v3217_v60 = vpop.f32.mrb[105].mxu1  ;;  %9961 = vmatpush3.bf16.msra.mxu1 %v9958_v42 }
 0x7c9   : > { %v3264_v0 = vmul.f32 0.5, %v3217_v60  ;;  %v9962_v20 = vpack.c.bf16 %v3279_v55, %v3278_v63 }
 0x7ca   : > { %v3281_v19 = vadd.f32 %v11280_v24, %v3265_v6 }
 0x7cb   : > { %v3280_v43 = vadd.f32 %v11286_v23, %v3264_v0  ;;  %v8728_v49 = vpop.f32.mrb[106].mxu1  ;;  %9963 = vmatprep.subr.bf16.mxu1 %v9962_v20 }
 0x7cc   : > { %v3267_v37 = vmul.f32 0.5, %v8728_v49  ;;  %v3227_v7 = vpop.f32.mrb[107].mxu1  ;;  %9965 = vmatpush3.bf16.msra.mxu1 %v9962_v20 }
 0x7cd   : > { %v3266_v41 = vmul.f32 0.5, %v3227_v7  ;;  %v9966_v48 = vpack.c.bf16 %v3281_v19, %v3280_v43 }
 0x7ce   : > { %v3283_v35 = vadd.f32 %v11294_v29, %v3267_v37 }
 0x7cf   : > { %v3282_v4 = vadd.f32 %v11300_v28, %v3266_v41  ;;  %v8731_v22 = vpop.f32.mrb[108].mxu1  ;;  %9967 = vmatprep.subr.bf16.mxu1 %v9966_v48 }
 0x7d0   : > { %v3269_v44 = vmul.f32 0.5, %v8731_v22  ;;  %v3237_v26 = vpop.f32.mrb[109].mxu1  ;;  %9969 = vmatpush3.bf16.msra.mxu1 %v9966_v48 }
 0x7d1   : > { %v3268_v51 = vmul.f32 0.5, %v3237_v26  ;;  %v9970_v47 = vpack.c.bf16 %v3283_v35, %v3282_v4 }
 0x7d2   : > { %v3285_v25 = vadd.f32 %v11308_v34, %v3269_v44 }
 0x7d3   : > { %v3284_v46 = vadd.f32 %v11314_v33, %v3268_v51  ;;  %v8734_v30 = vpop.f32.mrb[110].mxu1  ;;  %9971 = vmatprep.subr.bf16.mxu1 %v9970_v47 }
 0x7d4   : > { %v3271_v21 = vmul.f32 0.5, %v8734_v30  ;;  %v3247_v2 = vpop.f32.mrb[111].mxu1  ;;  %9973 = vmatpush3.bf16.msra.mxu1 %v9970_v47 }
 0x7d5   : > { %v3270_v27 = vmul.f32 0.5, %v3247_v2  ;;  %v9974_v40 = vpack.c.bf16 %v3285_v25, %v3284_v46 }
 0x7d6   : > { %v3287_v5 = vadd.f32 %v11322_v39, %v3271_v21 }
 0x7d7   : > { %v3286_v36 = vadd.f32 %v11328_v38, %v3270_v27  ;;  %9975 = vmatprep.subr.bf16.mxu1 %v9974_v40 }
 0x7d8   : > { %9977 = vmatpush3.bf16.msra.mxu1 %v9974_v40 }
 0x7d9   : > { %v9978_v12 = vpack.c.bf16 %v3287_v5, %v3286_v36 }
 0x7db   : > { %9979 = vmatprep.subr.bf16.mxu1 %v9978_v12 }
 0x7dc   : > { %9981 = vmatpush3.bf16.msra.mxu1 %v9978_v12 }
 0x7df   : > { %8824 = vmatmul.mubr.f32.vlgmr.msra.gmra.mrb[112].mxu1 %v11146_v32 }
 0x7e0   : > { %8826 = vmatprep.mubr.f32.mxu1 %v11151_v61 }
 0x7e3   : > { %8827 = vmatmul.mubr.f32.gmra.mrb[114].mxu1 %v11156_v15 }
 0x7e4   : > { %8829 = vmatprep.mubr.f32.mxu1 %v11161_v45 }
 0x7e7   : > { %8830 = vmatmul.mubr.f32.gmra.mrb[116].mxu1 %v11166_v52 }
 0x7e8   : > { %8832 = vmatprep.mubr.f32.mxu1 %v11171_v58 }
 0x7eb   : > { %8833 = vmatmul.mubr.f32.gmra.mrb[118].mxu1 %v11176_v31 }
 0x7ec   : > { %8835 = vmatprep.mubr.f32.mxu1 %v11181_v1 }
 0x7ef   : > { %8836 = vmatmul.mubr.f32.gmra.mrb[120].mxu1 %v11186_v9 }
 0x7f0   : > { %8838 = vmatprep.mubr.f32.mxu1 %v11191_v57 }
 0x7f3   : > { %8839 = vmatmul.mubr.f32.gmra.mrb[122].mxu1 %v11196_v54 }
 0x7f4   : > { %8841 = vmatprep.mubr.f32.mxu1 %v11201_v50 }
 0x7f7   : > { %8842 = vmatmul.mubr.f32.gmra.mrb[124].mxu1 %v11206_v56 }
 0x7f8   : > { %8844 = vmatprep.mubr.f32.mxu1 %v11211_v3 }
 0x7fb   : > { %8845 = vmatmul.mubr.f32.gmra.mrb[126].mxu1 %v11216_v10 }
 0x872   : > { %v8769_v61 = vpop.f32.mrb[112].mxu0 }
 0x873   : > { %v3434_v32 = vadd.f32 %v8769_v61, %v11224_v59  ;;  %v3354_v15 = vpop.f32.mrb[113].mxu0 }
 0x874   : > { %v3433_v45 = vadd.f32 %v11230_v62, %v3354_v15 }
 0x876   : > { %v9982_v52 = vpack.c.bf16 %v3434_v32, %v3433_v45  ;;  %v8772_v58 = vpop.f32.mrb[114].mxu0  ;;  %8879 = vmatprep.mubr.f32.mxu0 %v3433_v45 }
 0x877   : > { %v3436_v31 = vadd.f32 %v8772_v58, %v11238_v11  ;;  %v3364_v1 = vpop.f32.mrb[115].mxu0 }
 0x878   : > { %v3435_v9 = vadd.f32 %v11244_v8, %v3364_v1  ;;  %9983 = vmatprep.subr.bf16.mxu0 %v9982_v52 }
 0x879   : > { %9985 = vmatpush3.bf16.msra.mxu0 %v9982_v52 }
 0x87a   : > { %v9986_v57 = vpack.c.bf16 %v3436_v31, %v3435_v9  ;;  %v8775_v54 = vpop.f32.mrb[116].mxu0 }
 0x87b   : > { %v3438_v50 = vadd.f32 %v8775_v54, %v11252_v14  ;;  %v3374_v56 = vpop.f32.mrb[117].mxu0 }
 0x87c   : > { %v3437_v3 = vadd.f32 %v11258_v13, %v3374_v56  ;;  %9987 = vmatprep.subr.bf16.mxu0 %v9986_v57 }
 0x87d   : > { %9989 = vmatpush3.bf16.msra.mxu0 %v9986_v57 }
 0x87e   : > { %v9990_v10 = vpack.c.bf16 %v3438_v50, %v3437_v3  ;;  %v8778_v53 = vpop.f32.mrb[118].mxu0 }
 0x87f   : > { %v3440_v42 = vadd.f32 %v8778_v53, %v11266_v18  ;;  %v3384_v55 = vpop.f32.mrb[119].mxu0 }
 0x880   : > { %v3439_v63 = vadd.f32 %v11272_v17, %v3384_v55  ;;  %9991 = vmatprep.subr.bf16.mxu0 %v9990_v10 }
 0x881   : > { %9993 = vmatpush3.bf16.msra.mxu0 %v9990_v10 }
 0x882   : > { %v9994_v16 = vpack.c.bf16 %v3440_v42, %v3439_v63  ;;  %v8781_v6 = vpop.f32.mrb[120].mxu0 }
 0x883   : > { %v3442_v60 = vadd.f32 %v8781_v6, %v11280_v24  ;;  %v3394_v0 = vpop.f32.mrb[121].mxu0 }
 0x884   : > { %v3441_v20 = vadd.f32 %v11286_v23, %v3394_v0  ;;  %9995 = vmatprep.subr.bf16.mxu0 %v9994_v16 }
 0x885   : > { %9997 = vmatpush3.bf16.msra.mxu0 %v9994_v16 }
 0x886   : > { %v9998_v19 = vpack.c.bf16 %v3442_v60, %v3441_v20  ;;  %v8784_v43 = vpop.f32.mrb[122].mxu0 }
 0x887   : > { %v3444_v49 = vadd.f32 %v8784_v43, %v11294_v29  ;;  %v3404_v37 = vpop.f32.mrb[123].mxu0 }
 0x888   : > { %v3443_v7 = vadd.f32 %v11300_v28, %v3404_v37  ;;  %9999 = vmatprep.subr.bf16.mxu0 %v9998_v19 }
 0x889   : > { %10001 = vmatpush3.bf16.msra.mxu0 %v9998_v19 }
 0x88a   : > { %v10002_v41 = vpack.c.bf16 %v3444_v49, %v3443_v7  ;;  %v8787_v48 = vpop.f32.mrb[124].mxu0 }
 0x88b   : > { %v3446_v35 = vadd.f32 %v8787_v48, %v11308_v34  ;;  %v3414_v4 = vpop.f32.mrb[125].mxu0 }
 0x88c   : > { %v3445_v22 = vadd.f32 %v11314_v33, %v3414_v4  ;;  %10003 = vmatprep.subr.bf16.mxu0 %v10002_v41 }
 0x88d   : > { %10005 = vmatpush3.bf16.msra.mxu0 %v10002_v41 }
 0x88e   : > { %v10006_v44 = vpack.c.bf16 %v3446_v35, %v3445_v22  ;;  %v8790_v26 = vpop.f32.mrb[126].mxu0 }
 0x88f   : > { %v3448_v51 = vadd.f32 %v8790_v26, %v11322_v39  ;;  %v3424_v47 = vpop.f32.mrb[127].mxu0 }
 0x890   : > { %v3447_v25 = vadd.f32 %v11328_v38, %v3424_v47  ;;  %10007 = vmatprep.subr.bf16.mxu0 %v10006_v44 }
 0x891   : > { %10009 = vmatpush3.bf16.msra.mxu0 %v10006_v44 }
 0x892   : > { %v10010_v46 = vpack.c.bf16 %v3448_v51, %v3447_v25 }
 0x894   : > { %10011 = vmatprep.subr.bf16.mxu0 %v10010_v46 }
 0x895   : > { %10013 = vmatpush3.bf16.msra.mxu0 %v10010_v46 }
 0x898   : > { %8880 = vmatmul.mubr.f32.vlgmr.msra.gmra.mrb[128].mxu0 %v3434_v32 }
 0x899   : > { %8882 = vmatprep.mubr.f32.mxu0 %v3435_v9 }
 0x89c   : > { %8883 = vmatmul.mubr.f32.gmra.mrb[130].mxu0 %v3436_v31 }
 0x89d   : > { %8885 = vmatprep.mubr.f32.mxu0 %v3437_v3 }
 0x8a0   : > { %8886 = vmatmul.mubr.f32.gmra.mrb[132].mxu0 %v3438_v50 }
 0x8a1   : > { %8888 = vmatprep.mubr.f32.mxu0 %v3439_v63 }
 0x8a4   : > { %8889 = vmatmul.mubr.f32.gmra.mrb[134].mxu0 %v3440_v42 }
 0x8a5   : > { %8891 = vmatprep.mubr.f32.mxu0 %v3441_v20 }
 0x8a8   : > { %8892 = vmatmul.mubr.f32.gmra.mrb[136].mxu0 %v3442_v60 }
 0x8a9   : > { %8894 = vmatprep.mubr.f32.mxu0 %v3443_v7 }
 0x8ac   : > { %8895 = vmatmul.mubr.f32.gmra.mrb[138].mxu0 %v3444_v49 }
 0x8ad   : > { %8897 = vmatprep.mubr.f32.mxu0 %v3445_v22 }
 0x8b0   : > { %8898 = vmatmul.mubr.f32.gmra.mrb[140].mxu0 %v3446_v35 }
 0x8b1   : > { %8900 = vmatprep.mubr.f32.mxu0 %v3447_v25 }
 0x8b2   : > { %v8825_v30 = vpop.f32.mrb[112].mxu1 }
 0x8b3   : > { %v3595_v21 = vadd.f32 %v8825_v30, %v11224_v59  ;;  %v3515_v2 = vpop.f32.mrb[113].mxu1 }
 0x8b4   : > { %v3594_v27 = vadd.f32 %v11230_v62, %v3515_v2  ;;  %8901 = vmatmul.mubr.f32.gmra.mrb[142].mxu0 %v3448_v51 }
 0x8b6   : > { %v10014_v40 = vpack.c.bf16 %v3595_v21, %v3594_v27  ;;  %v8828_v5 = vpop.f32.mrb[114].mxu1  ;;  %8935 = vmatprep.mubr.f32.mxu1 %v3594_v27 }
 0x8b7   : > { %v3597_v36 = vadd.f32 %v8828_v5, %v11238_v11  ;;  %v3525_v12 = vpop.f32.mrb[115].mxu1 }
 0x8b8   : > { %v3596_v61 = vadd.f32 %v11244_v8, %v3525_v12  ;;  %10015 = vmatprep.subr.bf16.mxu1 %v10014_v40 }
 0x8b9   : > { %10017 = vmatpush3.bf16.msra.mxu1 %v10014_v40 }
 0x8ba   : > { %v10018_v32 = vpack.c.bf16 %v3597_v36, %v3596_v61  ;;  %v8831_v15 = vpop.f32.mrb[116].mxu1 }
 0x8bb   : > { %v3599_v45 = vadd.f32 %v8831_v15, %v11252_v14  ;;  %v3535_v52 = vpop.f32.mrb[117].mxu1 }
 0x8bc   : > { %v3598_v59 = vadd.f32 %v11258_v13, %v3535_v52  ;;  %10019 = vmatprep.subr.bf16.mxu1 %v10018_v32 }
 0x8bd   : > { %10021 = vmatpush3.bf16.msra.mxu1 %v10018_v32 }
 0x8be   : > { %v10022_v62 = vpack.c.bf16 %v3599_v45, %v3598_v59  ;;  %v8834_v58 = vpop.f32.mrb[118].mxu1 }
 0x8bf   : > { %v3601_v31 = vadd.f32 %v8834_v58, %v11266_v18  ;;  %v3545_v1 = vpop.f32.mrb[119].mxu1 }
 0x8c0   : > { %v3600_v11 = vadd.f32 %v11272_v17, %v3545_v1  ;;  %10023 = vmatprep.subr.bf16.mxu1 %v10022_v62 }
 0x8c1   : > { %10025 = vmatpush3.bf16.msra.mxu1 %v10022_v62 }
 0x8c2   : > { %v10026_v8 = vpack.c.bf16 %v3601_v31, %v3600_v11  ;;  %v8837_v9 = vpop.f32.mrb[120].mxu1 }
 0x8c3   : > { %v3603_v57 = vadd.f32 %v8837_v9, %v11280_v24  ;;  %v3555_v54 = vpop.f32.mrb[121].mxu1 }
 0x8c4   : > { %v3602_v14 = vadd.f32 %v11286_v23, %v3555_v54  ;;  %10027 = vmatprep.subr.bf16.mxu1 %v10026_v8 }
 0x8c5   : > { %10029 = vmatpush3.bf16.msra.mxu1 %v10026_v8 }
 0x8c6   : > { %v10030_v13 = vpack.c.bf16 %v3603_v57, %v3602_v14  ;;  %v8840_v50 = vpop.f32.mrb[122].mxu1 }
 0x8c7   : > { %v3605_v56 = vadd.f32 %v8840_v50, %v11294_v29  ;;  %v3565_v3 = vpop.f32.mrb[123].mxu1 }
 0x8c8   : > { %v3604_v18 = vadd.f32 %v11300_v28, %v3565_v3  ;;  %10031 = vmatprep.subr.bf16.mxu1 %v10030_v13 }
 0x8c9   : > { %10033 = vmatpush3.bf16.msra.mxu1 %v10030_v13 }
 0x8ca   : > { %v10034_v17 = vpack.c.bf16 %v3605_v56, %v3604_v18  ;;  %v8843_v10 = vpop.f32.mrb[124].mxu1 }
 0x8cb   : > { %v3607_v53 = vadd.f32 %v8843_v10, %v11308_v34  ;;  %v3575_v42 = vpop.f32.mrb[125].mxu1 }
 0x8cc   : > { %v3606_v24 = vadd.f32 %v11314_v33, %v3575_v42  ;;  %10035 = vmatprep.subr.bf16.mxu1 %v10034_v17 }
 0x8cd   : > { %10037 = vmatpush3.bf16.msra.mxu1 %v10034_v17 }
 0x8ce   : > { %v10038_v23 = vpack.c.bf16 %v3607_v53, %v3606_v24  ;;  %v8846_v55 = vpop.f32.mrb[126].mxu1 }
 0x8cf   : > { %v3609_v63 = vadd.f32 %v8846_v55, %v11322_v39  ;;  %v3585_v16 = vpop.f32.mrb[127].mxu1 }
 0x8d0   : > { %v3608_v29 = vadd.f32 %v11328_v38, %v3585_v16  ;;  %10039 = vmatprep.subr.bf16.mxu1 %v10038_v23 }
 0x8d1   : > { %10041 = vmatpush3.bf16.msra.mxu1 %v10038_v23 }
 0x8d2   : > { %v10042_v28 = vpack.c.bf16 %v3609_v63, %v3608_v29 }
 0x8d4   : > { %10043 = vmatprep.subr.bf16.mxu1 %v10042_v28 }
 0x8d5   : > { %10045 = vmatpush3.bf16.msra.mxu1 %v10042_v28 }
 0x8d8   : > { %8936 = vmatmul.mubr.f32.vlgmr.msra.gmra.mrb[128].mxu1 %v3595_v21 }
 0x8d9   : > { %8938 = vmatprep.mubr.f32.mxu1 %v3596_v61 }
 0x8dc   : > { %8939 = vmatmul.mubr.f32.gmra.mrb[130].mxu1 %v3597_v36 }
 0x8dd   : > { %8941 = vmatprep.mubr.f32.mxu1 %v3598_v59 }
 0x8e0   : > { %8942 = vmatmul.mubr.f32.gmra.mrb[132].mxu1 %v3599_v45 }
 0x8e1   : > { %8944 = vmatprep.mubr.f32.mxu1 %v3600_v11 }
 0x8e4   : > { %8945 = vmatmul.mubr.f32.gmra.mrb[134].mxu1 %v3601_v31 }
 0x8e5   : > { %8947 = vmatprep.mubr.f32.mxu1 %v3602_v14 }
 0x8e8   : > { %8948 = vmatmul.mubr.f32.gmra.mrb[136].mxu1 %v3603_v57 }
 0x8e9   : > { %8950 = vmatprep.mubr.f32.mxu1 %v3604_v18 }
 0x8ec   : > { %8951 = vmatmul.mubr.f32.gmra.mrb[138].mxu1 %v3605_v56 }
 0x8ed   : > { %8953 = vmatprep.mubr.f32.mxu1 %v3606_v24 }
 0x8f0   : > { %8954 = vmatmul.mubr.f32.gmra.mrb[140].mxu1 %v3607_v53 }
 0x8f1   : > { %8956 = vmatprep.mubr.f32.mxu1 %v3608_v29 }
 0x8f4   : > { %8957 = vmatmul.mubr.f32.gmra.mrb[142].mxu1 %v3609_v63 }
 0x96b   : > { %v8881_v34 = vpop.f32.mrb[128].mxu0 }
 0x96c   : > { %v3676_v33 = vpop.f32.mrb[129].mxu0 }
 0x96d   : > { %v10046_v39 = vpack.c.bf16 %v8881_v34, %v3676_v33  ;;  %8991 = vmatprep.mubr.f32.mxu0 %v3676_v33 }
 0x96f   : > { %v8884_v38 = vpop.f32.mrb[130].mxu0  ;;  %10047 = vmatprep.subr.bf16.mxu0 %v10046_v39 }
 0x970   : > { %v3686_v6 = vpop.f32.mrb[131].mxu0  ;;  %10049 = vmatpush3.bf16.msra.mxu0 %v10046_v39 }
 0x971   : > { %v10050_v60 = vpack.c.bf16 %v8884_v38, %v3686_v6 }
 0x973   : > { %v8887_v0 = vpop.f32.mrb[132].mxu0  ;;  %10051 = vmatprep.subr.bf16.mxu0 %v10050_v60 }
 0x974   : > { %v3696_v20 = vpop.f32.mrb[133].mxu0  ;;  %10053 = vmatpush3.bf16.msra.mxu0 %v10050_v60 }
 0x975   : > { %v10054_v19 = vpack.c.bf16 %v8887_v0, %v3696_v20 }
 0x977   : > { %v8890_v43 = vpop.f32.mrb[134].mxu0  ;;  %10055 = vmatprep.subr.bf16.mxu0 %v10054_v19 }
 0x978   : > { %v3706_v49 = vpop.f32.mrb[135].mxu0  ;;  %10057 = vmatpush3.bf16.msra.mxu0 %v10054_v19 }
 0x979   : > { %v10058_v37 = vpack.c.bf16 %v8890_v43, %v3706_v49 }
 0x97b   : > { %v8893_v7 = vpop.f32.mrb[136].mxu0  ;;  %10059 = vmatprep.subr.bf16.mxu0 %v10058_v37 }
 0x97c   : > { %v3716_v41 = vpop.f32.mrb[137].mxu0  ;;  %10061 = vmatpush3.bf16.msra.mxu0 %v10058_v37 }
 0x97d   : > { %v10062_v48 = vpack.c.bf16 %v8893_v7, %v3716_v41 }
 0x97f   : > { %v8896_v35 = vpop.f32.mrb[138].mxu0  ;;  %10063 = vmatprep.subr.bf16.mxu0 %v10062_v48 }
 0x980   : > { %v3726_v4 = vpop.f32.mrb[139].mxu0  ;;  %10065 = vmatpush3.bf16.msra.mxu0 %v10062_v48 }
 0x981   : > { %v10066_v22 = vpack.c.bf16 %v8896_v35, %v3726_v4 }
 0x983   : > { %v8899_v44 = vpop.f32.mrb[140].mxu0  ;;  %10067 = vmatprep.subr.bf16.mxu0 %v10066_v22 }
 0x984   : > { %v3736_v26 = vpop.f32.mrb[141].mxu0  ;;  %10069 = vmatpush3.bf16.msra.mxu0 %v10066_v22 }
 0x985   : > { %v10070_v51 = vpack.c.bf16 %v8899_v44, %v3736_v26 }
 0x987   : > { %v8902_v47 = vpop.f32.mrb[142].mxu0  ;;  %10071 = vmatprep.subr.bf16.mxu0 %v10070_v51 }
 0x988   : > { %v3746_v25 = vpop.f32.mrb[143].mxu0  ;;  %10073 = vmatpush3.bf16.msra.mxu0 %v10070_v51 }
 0x989   : > { %v10074_v46 = vpack.c.bf16 %v8902_v47, %v3746_v25 }
 0x98b   : > { %10075 = vmatprep.subr.bf16.mxu0 %v10074_v46 }
 0x98c   : > { %10077 = vmatpush3.bf16.msra.mxu0 %v10074_v46 }
 0x98f   : > { %8992 = vmatmul.mubr.f32.vlgmr.msra.gmra.mrb[144].mxu0 %v8881_v34 }
 0x990   : > { %8994 = vmatprep.mubr.f32.mxu0 %v3686_v6 }
 0x993   : > { %8995 = vmatmul.mubr.f32.gmra.mrb[146].mxu0 %v8884_v38 }
 0x994   : > { %8997 = vmatprep.mubr.f32.mxu0 %v3696_v20 }
 0x997   : > { %8998 = vmatmul.mubr.f32.gmra.mrb[148].mxu0 %v8887_v0 }
 0x998   : > { %9000 = vmatprep.mubr.f32.mxu0 %v3706_v49 }
 0x99b   : > { %9001 = vmatmul.mubr.f32.gmra.mrb[150].mxu0 %v8890_v43 }
 0x99c   : > { %9003 = vmatprep.mubr.f32.mxu0 %v3716_v41 }
 0x99f   : > { %9004 = vmatmul.mubr.f32.gmra.mrb[152].mxu0 %v8893_v7 }
 0x9a0   : > { %9006 = vmatprep.mubr.f32.mxu0 %v3726_v4 }
 0x9a3   : > { %9007 = vmatmul.mubr.f32.gmra.mrb[154].mxu0 %v8896_v35 }
 0x9a4   : > { %9009 = vmatprep.mubr.f32.mxu0 %v3736_v26 }
 0x9a7   : > { %9010 = vmatmul.mubr.f32.gmra.mrb[156].mxu0 %v8899_v44 }
 0x9a8   : > { %9012 = vmatprep.mubr.f32.mxu0 %v3746_v25 }
 0x9ab   : > { %v8937_v30 = vpop.f32.mrb[128].mxu1  ;;  %9013 = vmatmul.mubr.f32.gmra.mrb[158].mxu0 %v8902_v47 }
 0x9ac   : > { %v3821_v21 = vpop.f32.mrb[129].mxu1 }
 0x9ad   : > { %v10078_v2 = vpack.c.bf16 %v8937_v30, %v3821_v21  ;;  %9047 = vmatprep.mubr.f32.mxu1 %v3821_v21 }
 0x9af   : > { %v8940_v27 = vpop.f32.mrb[130].mxu1  ;;  %10079 = vmatprep.subr.bf16.mxu1 %v10078_v2 }
 0x9b0   : > { %v3831_v40 = vpop.f32.mrb[131].mxu1  ;;  %10081 = vmatpush3.bf16.msra.mxu1 %v10078_v2 }
 0x9b1   : > { %v10082_v5 = vpack.c.bf16 %v8940_v27, %v3831_v40 }
 0x9b3   : > { %v8943_v36 = vpop.f32.mrb[132].mxu1  ;;  %10083 = vmatprep.subr.bf16.mxu1 %v10082_v5 }
 0x9b4   : > { %v3841_v12 = vpop.f32.mrb[133].mxu1  ;;  %10085 = vmatpush3.bf16.msra.mxu1 %v10082_v5 }
 0x9b5   : > { %v10086_v61 = vpack.c.bf16 %v8943_v36, %v3841_v12 }
 0x9b7   : > { %v8946_v32 = vpop.f32.mrb[134].mxu1  ;;  %10087 = vmatprep.subr.bf16.mxu1 %v10086_v61 }
 0x9b8   : > { %v3851_v15 = vpop.f32.mrb[135].mxu1  ;;  %10089 = vmatpush3.bf16.msra.mxu1 %v10086_v61 }
 0x9b9   : > { %v10090_v45 = vpack.c.bf16 %v8946_v32, %v3851_v15 }
 0x9bb   : > { %v8949_v52 = vpop.f32.mrb[136].mxu1  ;;  %10091 = vmatprep.subr.bf16.mxu1 %v10090_v45 }
 0x9bc   : > { %v3861_v59 = vpop.f32.mrb[137].mxu1  ;;  %10093 = vmatpush3.bf16.msra.mxu1 %v10090_v45 }
 0x9bd   : > { %v10094_v62 = vpack.c.bf16 %v8949_v52, %v3861_v59 }
 0x9bf   : > { %v8952_v58 = vpop.f32.mrb[138].mxu1  ;;  %10095 = vmatprep.subr.bf16.mxu1 %v10094_v62 }
 0x9c0   : > { %v3871_v31 = vpop.f32.mrb[139].mxu1  ;;  %10097 = vmatpush3.bf16.msra.mxu1 %v10094_v62 }
 0x9c1   : > { %v10098_v1 = vpack.c.bf16 %v8952_v58, %v3871_v31 }
 0x9c3   : > { %v8955_v11 = vpop.f32.mrb[140].mxu1  ;;  %10099 = vmatprep.subr.bf16.mxu1 %v10098_v1 }
 0x9c4   : > { %v3881_v8 = vpop.f32.mrb[141].mxu1  ;;  %10101 = vmatpush3.bf16.msra.mxu1 %v10098_v1 }
 0x9c5   : > { %v10102_v9 = vpack.c.bf16 %v8955_v11, %v3881_v8 }
 0x9c7   : > { %v8958_v57 = vpop.f32.mrb[142].mxu1  ;;  %10103 = vmatprep.subr.bf16.mxu1 %v10102_v9 }
 0x9c8   : > { %v3891_v54 = vpop.f32.mrb[143].mxu1  ;;  %10105 = vmatpush3.bf16.msra.mxu1 %v10102_v9 }
 0x9c9   : > { %v10106_v14 = vpack.c.bf16 %v8958_v57, %v3891_v54 }
 0x9cb   : > { %10107 = vmatprep.subr.bf16.mxu1 %v10106_v14 }
 0x9cc   : > { %10109 = vmatpush3.bf16.msra.mxu1 %v10106_v14 }
 0x9cf   : > { %9048 = vmatmul.mubr.f32.vlgmr.msra.gmra.mrb[144].mxu1 %v8937_v30 }
 0x9d0   : > { %9050 = vmatprep.mubr.f32.mxu1 %v3831_v40 }
 0x9d3   : > { %9051 = vmatmul.mubr.f32.gmra.mrb[146].mxu1 %v8940_v27 }
 0x9d4   : > { %9053 = vmatprep.mubr.f32.mxu1 %v3841_v12 }
 0x9d7   : > { %9054 = vmatmul.mubr.f32.gmra.mrb[148].mxu1 %v8943_v36 }
 0x9d8   : > { %9056 = vmatprep.mubr.f32.mxu1 %v3851_v15 }
 0x9db   : > { %9057 = vmatmul.mubr.f32.gmra.mrb[150].mxu1 %v8946_v32 }
 0x9dc   : > { %9059 = vmatprep.mubr.f32.mxu1 %v3861_v59 }
 0x9df   : > { %9060 = vmatmul.mubr.f32.gmra.mrb[152].mxu1 %v8949_v52 }
 0x9e0   : > { %9062 = vmatprep.mubr.f32.mxu1 %v3871_v31 }
 0x9e3   : > { %9063 = vmatmul.mubr.f32.gmra.mrb[154].mxu1 %v8952_v58 }
 0x9e4   : > { %9065 = vmatprep.mubr.f32.mxu1 %v3881_v8 }
 0x9e7   : > { %9066 = vmatmul.mubr.f32.gmra.mrb[156].mxu1 %v8955_v11 }
 0x9e8   : > { %9068 = vmatprep.mubr.f32.mxu1 %v3891_v54 }
 0x9eb   : > { %9069 = vmatmul.mubr.f32.gmra.mrb[158].mxu1 %v8958_v57 }
 0xa62   : > { %v8993_v13 = vpop.f32.mrb[144].mxu0 }
 0xa63   : > { %v3966_v50 = vpop.f32.mrb[145].mxu0 }
 0xa64   : > { %v10110_v56 = vpack.c.bf16 %v8993_v13, %v3966_v50  ;;  %9103 = vmatprep.mubr.f32.mxu0 %v3966_v50 }
 0xa66   : > { %v8996_v3 = vpop.f32.mrb[146].mxu0  ;;  %10111 = vmatprep.subr.bf16.mxu0 %v10110_v56 }
 0xa67   : > { %v3976_v18 = vpop.f32.mrb[147].mxu0  ;;  %10113 = vmatpush3.bf16.msra.mxu0 %v10110_v56 }
 0xa68   : > { %v10114_v17 = vpack.c.bf16 %v8996_v3, %v3976_v18 }
 0xa6a   : > { %v8999_v10 = vpop.f32.mrb[148].mxu0  ;;  %10115 = vmatprep.subr.bf16.mxu0 %v10114_v17 }
 0xa6b   : > { %v3986_v53 = vpop.f32.mrb[149].mxu0  ;;  %10117 = vmatpush3.bf16.msra.mxu0 %v10114_v17 }
 0xa6c   : > { %v10118_v42 = vpack.c.bf16 %v8999_v10, %v3986_v53 }
 0xa6e   : > { %v9002_v24 = vpop.f32.mrb[150].mxu0  ;;  %10119 = vmatprep.subr.bf16.mxu0 %v10118_v42 }
 0xa6f   : > { %v3996_v23 = vpop.f32.mrb[151].mxu0  ;;  %10121 = vmatpush3.bf16.msra.mxu0 %v10118_v42 }
 0xa70   : > { %v10122_v55 = vpack.c.bf16 %v9002_v24, %v3996_v23 }
 0xa72   : > { %v9005_v63 = vpop.f32.mrb[152].mxu0  ;;  %10123 = vmatprep.subr.bf16.mxu0 %v10122_v55 }
 0xa73   : > { %v4006_v16 = vpop.f32.mrb[153].mxu0  ;;  %10125 = vmatpush3.bf16.msra.mxu0 %v10122_v55 }
 0xa74   : > { %v10126_v29 = vpack.c.bf16 %v9005_v63, %v4006_v16 }
 0xa76   : > { %v9008_v28 = vpop.f32.mrb[154].mxu0  ;;  %10127 = vmatprep.subr.bf16.mxu0 %v10126_v29 }
 0xa77   : > { %v4016_v34 = vpop.f32.mrb[155].mxu0  ;;  %10129 = vmatpush3.bf16.msra.mxu0 %v10126_v29 }
 0xa78   : > { %v10130_v33 = vpack.c.bf16 %v9008_v28, %v4016_v34 }
 0xa7a   : > { %v9011_v39 = vpop.f32.mrb[156].mxu0  ;;  %10131 = vmatprep.subr.bf16.mxu0 %v10130_v33 }
 0xa7b   : > { %v4026_v38 = vpop.f32.mrb[157].mxu0  ;;  %10133 = vmatpush3.bf16.msra.mxu0 %v10130_v33 }
 0xa7c   : > { %v10134_v6 = vpack.c.bf16 %v9011_v39, %v4026_v38 }
 0xa7e   : > { %v9014_v60 = vpop.f32.mrb[158].mxu0  ;;  %10135 = vmatprep.subr.bf16.mxu0 %v10134_v6 }
 0xa7f   : > { %v4036_v0 = vpop.f32.mrb[159].mxu0  ;;  %10137 = vmatpush3.bf16.msra.mxu0 %v10134_v6 }
 0xa80   : > { %v10138_v20 = vpack.c.bf16 %v9014_v60, %v4036_v0 }
 0xa82   : > { %10139 = vmatprep.subr.bf16.mxu0 %v10138_v20 }
 0xa83   : > { %10141 = vmatpush3.bf16.msra.mxu0 %v10138_v20 }
 0xa86   : > { %9104 = vmatmul.mubr.f32.vlgmr.msra.gmra.mrb[160].mxu0 %v8993_v13 }
 0xa87   : > { %9106 = vmatprep.mubr.f32.mxu0 %v3976_v18 }
 0xa8a   : > { %9107 = vmatmul.mubr.f32.gmra.mrb[162].mxu0 %v8996_v3 }
 0xa8b   : > { %9109 = vmatprep.mubr.f32.mxu0 %v3986_v53 }
 0xa8e   : > { %9110 = vmatmul.mubr.f32.gmra.mrb[164].mxu0 %v8999_v10 }
 0xa8f   : > { %9112 = vmatprep.mubr.f32.mxu0 %v3996_v23 }
 0xa92   : > { %9113 = vmatmul.mubr.f32.gmra.mrb[166].mxu0 %v9002_v24 }
 0xa93   : > { %9115 = vmatprep.mubr.f32.mxu0 %v4006_v16 }
 0xa96   : > { %9116 = vmatmul.mubr.f32.gmra.mrb[168].mxu0 %v9005_v63 }
 0xa97   : > { %9118 = vmatprep.mubr.f32.mxu0 %v4016_v34 }
 0xa9a   : > { %9119 = vmatmul.mubr.f32.gmra.mrb[170].mxu0 %v9008_v28 }
 0xa9b   : > { %9121 = vmatprep.mubr.f32.mxu0 %v4026_v38 }
 0xa9e   : > { %9122 = vmatmul.mubr.f32.gmra.mrb[172].mxu0 %v9011_v39 }
 0xa9f   : > { %9124 = vmatprep.mubr.f32.mxu0 %v4036_v0 }
 0xaa2   : > { %v9049_v19 = vpop.f32.mrb[144].mxu1  ;;  %9125 = vmatmul.mubr.f32.gmra.mrb[174].mxu0 %v9014_v60 }
 0xaa3   : > { %v4111_v43 = vpop.f32.mrb[145].mxu1 }
 0xaa4   : > { %v10142_v49 = vpack.c.bf16 %v9049_v19, %v4111_v43  ;;  %9159 = vmatprep.mubr.f32.mxu1 %v4111_v43 }
 0xaa6   : > { %v9052_v37 = vpop.f32.mrb[146].mxu1  ;;  %10143 = vmatprep.subr.bf16.mxu1 %v10142_v49 }
 0xaa7   : > { %v4121_v7 = vpop.f32.mrb[147].mxu1  ;;  %10145 = vmatpush3.bf16.msra.mxu1 %v10142_v49 }
 0xaa8   : > { %v10146_v41 = vpack.c.bf16 %v9052_v37, %v4121_v7 }
 0xaaa   : > { %v9055_v48 = vpop.f32.mrb[148].mxu1  ;;  %10147 = vmatprep.subr.bf16.mxu1 %v10146_v41 }
 0xaab   : > { %v4131_v35 = vpop.f32.mrb[149].mxu1  ;;  %10149 = vmatpush3.bf16.msra.mxu1 %v10146_v41 }
 0xaac   : > { %v10150_v4 = vpack.c.bf16 %v9055_v48, %v4131_v35 }
 0xaae   : > { %v9058_v22 = vpop.f32.mrb[150].mxu1  ;;  %10151 = vmatprep.subr.bf16.mxu1 %v10150_v4 }
 0xaaf   : > { %v4141_v44 = vpop.f32.mrb[151].mxu1  ;;  %10153 = vmatpush3.bf16.msra.mxu1 %v10150_v4 }
 0xab0   : > { %v10154_v26 = vpack.c.bf16 %v9058_v22, %v4141_v44 }
 0xab2   : > { %v9061_v51 = vpop.f32.mrb[152].mxu1  ;;  %10155 = vmatprep.subr.bf16.mxu1 %v10154_v26 }
 0xab3   : > { %v4151_v47 = vpop.f32.mrb[153].mxu1  ;;  %10157 = vmatpush3.bf16.msra.mxu1 %v10154_v26 }
 0xab4   : > { %v10158_v25 = vpack.c.bf16 %v9061_v51, %v4151_v47 }
 0xab6   : > { %v9064_v46 = vpop.f32.mrb[154].mxu1  ;;  %10159 = vmatprep.subr.bf16.mxu1 %v10158_v25 }
 0xab7   : > { %v4161_v30 = vpop.f32.mrb[155].mxu1  ;;  %10161 = vmatpush3.bf16.msra.mxu1 %v10158_v25 }
 0xab8   : > { %v10162_v21 = vpack.c.bf16 %v9064_v46, %v4161_v30 }
 0xaba   : > { %v9067_v2 = vpop.f32.mrb[156].mxu1  ;;  %10163 = vmatprep.subr.bf16.mxu1 %v10162_v21 }
 0xabb   : > { %v4171_v27 = vpop.f32.mrb[157].mxu1  ;;  %10165 = vmatpush3.bf16.msra.mxu1 %v10162_v21 }
 0xabc   : > { %v10166_v40 = vpack.c.bf16 %v9067_v2, %v4171_v27 }
 0xabe   : > { %v9070_v5 = vpop.f32.mrb[158].mxu1  ;;  %10167 = vmatprep.subr.bf16.mxu1 %v10166_v40 }
 0xabf   : > { %v4181_v36 = vpop.f32.mrb[159].mxu1  ;;  %10169 = vmatpush3.bf16.msra.mxu1 %v10166_v40 }
 0xac0   : > { %v10170_v12 = vpack.c.bf16 %v9070_v5, %v4181_v36 }
 0xac2   : > { %10171 = vmatprep.subr.bf16.mxu1 %v10170_v12 }
 0xac3   : > { %10173 = vmatpush3.bf16.msra.mxu1 %v10170_v12 }
 0xac6   : > { %9160 = vmatmul.mubr.f32.vlgmr.msra.gmra.mrb[160].mxu1 %v9049_v19 }
 0xac7   : > { %9162 = vmatprep.mubr.f32.mxu1 %v4121_v7 }
 0xaca   : > { %9163 = vmatmul.mubr.f32.gmra.mrb[162].mxu1 %v9052_v37 }
 0xacb   : > { %9165 = vmatprep.mubr.f32.mxu1 %v4131_v35 }
 0xace   : > { %9166 = vmatmul.mubr.f32.gmra.mrb[164].mxu1 %v9055_v48 }
 0xacf   : > { %9168 = vmatprep.mubr.f32.mxu1 %v4141_v44 }
 0xad2   : > { %9169 = vmatmul.mubr.f32.gmra.mrb[166].mxu1 %v9058_v22 }
 0xad3   : > { %9171 = vmatprep.mubr.f32.mxu1 %v4151_v47 }
 0xad6   : > { %9172 = vmatmul.mubr.f32.gmra.mrb[168].mxu1 %v9061_v51 }
 0xad7   : > { %9174 = vmatprep.mubr.f32.mxu1 %v4161_v30 }
 0xada   : > { %9175 = vmatmul.mubr.f32.gmra.mrb[170].mxu1 %v9064_v46 }
 0xadb   : > { %9177 = vmatprep.mubr.f32.mxu1 %v4171_v27 }
 0xade   : > { %9178 = vmatmul.mubr.f32.gmra.mrb[172].mxu1 %v9067_v2 }
 0xadf   : > { %9180 = vmatprep.mubr.f32.mxu1 %v4181_v36 }
 0xae2   : > { %9181 = vmatmul.mubr.f32.gmra.mrb[174].mxu1 %v9070_v5 }
 0xb59   : > { %v9105_v61 = vpop.f32.mrb[160].mxu0 }
 0xb5a   : > { %v4256_v32 = vpop.f32.mrb[161].mxu0 }
 0xb5b   : > { %v10174_v15 = vpack.c.bf16 %v9105_v61, %v4256_v32  ;;  %9215 = vmatprep.mubr.f32.mxu0 %v4256_v32 }
 0xb5d   : > { %v9108_v45 = vpop.f32.mrb[162].mxu0  ;;  %10175 = vmatprep.subr.bf16.mxu0 %v10174_v15 }
 0xb5e   : > { %v4266_v52 = vpop.f32.mrb[163].mxu0  ;;  %10177 = vmatpush3.bf16.msra.mxu0 %v10174_v15 }
 0xb5f   : > { %v10178_v59 = vpack.c.bf16 %v9108_v45, %v4266_v52 }
 0xb61   : > { %v9111_v62 = vpop.f32.mrb[164].mxu0  ;;  %10179 = vmatprep.subr.bf16.mxu0 %v10178_v59 }
 0xb62   : > { %v4276_v58 = vpop.f32.mrb[165].mxu0  ;;  %10181 = vmatpush3.bf16.msra.mxu0 %v10178_v59 }
 0xb63   : > { %v10182_v31 = vpack.c.bf16 %v9111_v62, %v4276_v58 }
 0xb65   : > { %v9114_v1 = vpop.f32.mrb[166].mxu0  ;;  %10183 = vmatprep.subr.bf16.mxu0 %v10182_v31 }
 0xb66   : > { %v4286_v11 = vpop.f32.mrb[167].mxu0  ;;  %10185 = vmatpush3.bf16.msra.mxu0 %v10182_v31 }
 0xb67   : > { %v10186_v8 = vpack.c.bf16 %v9114_v1, %v4286_v11 }
 0xb69   : > { %v9117_v9 = vpop.f32.mrb[168].mxu0  ;;  %10187 = vmatprep.subr.bf16.mxu0 %v10186_v8 }
 0xb6a   : > { %v4296_v57 = vpop.f32.mrb[169].mxu0  ;;  %10189 = vmatpush3.bf16.msra.mxu0 %v10186_v8 }
 0xb6b   : > { %v10190_v54 = vpack.c.bf16 %v9117_v9, %v4296_v57 }
 0xb6d   : > { %v9120_v14 = vpop.f32.mrb[170].mxu0  ;;  %10191 = vmatprep.subr.bf16.mxu0 %v10190_v54 }
 0xb6e   : > { %v4306_v13 = vpop.f32.mrb[171].mxu0  ;;  %10193 = vmatpush3.bf16.msra.mxu0 %v10190_v54 }
 0xb6f   : > { %v10194_v50 = vpack.c.bf16 %v9120_v14, %v4306_v13 }
 0xb71   : > { %v9123_v56 = vpop.f32.mrb[172].mxu0  ;;  %10195 = vmatprep.subr.bf16.mxu0 %v10194_v50 }
 0xb72   : > { %v4316_v3 = vpop.f32.mrb[173].mxu0  ;;  %10197 = vmatpush3.bf16.msra.mxu0 %v10194_v50 }
 0xb73   : > { %v10198_v18 = vpack.c.bf16 %v9123_v56, %v4316_v3 }
 0xb75   : > { %v9126_v17 = vpop.f32.mrb[174].mxu0  ;;  %10199 = vmatprep.subr.bf16.mxu0 %v10198_v18 }
 0xb76   : > { %v4326_v10 = vpop.f32.mrb[175].mxu0  ;;  %10201 = vmatpush3.bf16.msra.mxu0 %v10198_v18 }
 0xb77   : > { %v10202_v53 = vpack.c.bf16 %v9126_v17, %v4326_v10 }
 0xb79   : > { %10203 = vmatprep.subr.bf16.mxu0 %v10202_v53 }
 0xb7a   : > { %10205 = vmatpush3.bf16.msra.mxu0 %v10202_v53 }
 0xb7d   : > { %9216 = vmatmul.mubr.f32.vlgmr.msra.gmra.mrb[176].mxu0 %v9105_v61 }
 0xb7e   : > { %9218 = vmatprep.mubr.f32.mxu0 %v4266_v52 }
 0xb81   : > { %9219 = vmatmul.mubr.f32.gmra.mrb[178].mxu0 %v9108_v45 }
 0xb82   : > { %9221 = vmatprep.mubr.f32.mxu0 %v4276_v58 }
 0xb85   : > { %9222 = vmatmul.mubr.f32.gmra.mrb[180].mxu0 %v9111_v62 }
 0xb86   : > { %9224 = vmatprep.mubr.f32.mxu0 %v4286_v11 }
 0xb89   : > { %9225 = vmatmul.mubr.f32.gmra.mrb[182].mxu0 %v9114_v1 }
 0xb8a   : > { %9227 = vmatprep.mubr.f32.mxu0 %v4296_v57 }
 0xb8d   : > { %9228 = vmatmul.mubr.f32.gmra.mrb[184].mxu0 %v9117_v9 }
 0xb8e   : > { %9230 = vmatprep.mubr.f32.mxu0 %v4306_v13 }
 0xb91   : > { %9231 = vmatmul.mubr.f32.gmra.mrb[186].mxu0 %v9120_v14 }
 0xb92   : > { %9233 = vmatprep.mubr.f32.mxu0 %v4316_v3 }
 0xb95   : > { %9234 = vmatmul.mubr.f32.gmra.mrb[188].mxu0 %v9123_v56 }
 0xb96   : > { %9236 = vmatprep.mubr.f32.mxu0 %v4326_v10 }
 0xb99   : > { %v9161_v42 = vpop.f32.mrb[160].mxu1  ;;  %9237 = vmatmul.mubr.f32.gmra.mrb[190].mxu0 %v9126_v17 }
 0xb9a   : > { %v4401_v24 = vpop.f32.mrb[161].mxu1 }
 0xb9b   : > { %v10206_v23 = vpack.c.bf16 %v9161_v42, %v4401_v24  ;;  %9271 = vmatprep.mubr.f32.mxu0 %v4401_v24 }
 0xb9d   : > { %v9164_v55 = vpop.f32.mrb[162].mxu1  ;;  %10207 = vmatprep.subr.bf16.mxu0 %v10206_v23  ;;  %10328 = vmatprep.subr.bf16.mxu1 %v10206_v23 }
 0xb9e   : > { %v4411_v63 = vpop.f32.mrb[163].mxu1  ;;  %10209 = vmatpush3.bf16.msra.mxu0 %v10206_v23  ;;  %10336 = vmatpush3.bf16.msra.mxu1 %v10206_v23 }
 0xb9f   : > { %v10210_v16 = vpack.c.bf16 %v9164_v55, %v4411_v63 }
 0xba1   : > { %v9167_v29 = vpop.f32.mrb[164].mxu1  ;;  %10211 = vmatprep.subr.bf16.mxu0 %v10210_v16  ;;  %10329 = vmatprep.subr.bf16.mxu1 %v10210_v16 }
 0xba2   : > { %v4421_v28 = vpop.f32.mrb[165].mxu1  ;;  %10213 = vmatpush3.bf16.msra.mxu0 %v10210_v16  ;;  %10337 = vmatpush3.bf16.msra.mxu1 %v10210_v16 }
 0xba3   : > { %v10214_v34 = vpack.c.bf16 %v9167_v29, %v4421_v28 }
 0xba5   : > { %v9170_v33 = vpop.f32.mrb[166].mxu1  ;;  %10215 = vmatprep.subr.bf16.mxu0 %v10214_v34  ;;  %10330 = vmatprep.subr.bf16.mxu1 %v10214_v34 }
 0xba6   : > { %v4431_v39 = vpop.f32.mrb[167].mxu1  ;;  %10217 = vmatpush3.bf16.msra.mxu0 %v10214_v34  ;;  %10338 = vmatpush3.bf16.msra.mxu1 %v10214_v34 }
 0xba7   : > { %v10218_v38 = vpack.c.bf16 %v9170_v33, %v4431_v39 }
 0xba9   : > { %v9173_v6 = vpop.f32.mrb[168].mxu1  ;;  %10219 = vmatprep.subr.bf16.mxu0 %v10218_v38  ;;  %10331 = vmatprep.subr.bf16.mxu1 %v10218_v38 }
 0xbaa   : > { %v4441_v60 = vpop.f32.mrb[169].mxu1  ;;  %10221 = vmatpush3.bf16.msra.mxu0 %v10218_v38  ;;  %10339 = vmatpush3.bf16.msra.mxu1 %v10218_v38 }
 0xbab   : > { %v10222_v0 = vpack.c.bf16 %v9173_v6, %v4441_v60  ;;  %9283 = vmatprep.mubr.f32.mxu1 %v4441_v60 }
 0xbad   : > { %v9176_v20 = vpop.f32.mrb[170].mxu1  ;;  %10223 = vmatprep.subr.bf16.mxu0 %v10222_v0  ;;  %10332 = vmatprep.subr.bf16.mxu1 %v10222_v0 }
 0xbae   : > { %v4451_v19 = vpop.f32.mrb[171].mxu1  ;;  %10225 = vmatpush3.bf16.msra.mxu0 %v10222_v0  ;;  %10340 = vmatpush3.bf16.msra.mxu1 %v10222_v0 }
 0xbaf   : > { %v10226_v43 = vpack.c.bf16 %v9176_v20, %v4451_v19 }
 0xbb1   : > { %v9179_v49 = vpop.f32.mrb[172].mxu1  ;;  %10227 = vmatprep.subr.bf16.mxu0 %v10226_v43  ;;  %10333 = vmatprep.subr.bf16.mxu1 %v10226_v43 }
 0xbb2   : > { %v4461_v37 = vpop.f32.mrb[173].mxu1  ;;  %10229 = vmatpush3.bf16.msra.mxu0 %v10226_v43  ;;  %10341 = vmatpush3.bf16.msra.mxu1 %v10226_v43 }
 0xbb3   : > { %v10230_v7 = vpack.c.bf16 %v9179_v49, %v4461_v37 }
 0xbb5   : > { %v9182_v41 = vpop.f32.mrb[174].mxu1  ;;  %10231 = vmatprep.subr.bf16.mxu0 %v10230_v7  ;;  %10334 = vmatprep.subr.bf16.mxu1 %v10230_v7 }
 0xbb6   : > { %v4471_v48 = vpop.f32.mrb[175].mxu1  ;;  %10233 = vmatpush3.bf16.msra.mxu0 %v10230_v7  ;;  %10342 = vmatpush3.bf16.msra.mxu1 %v10230_v7 }
 0xbb7   : > { %v10234_v35 = vpack.c.bf16 %v9182_v41, %v4471_v48 }
 0xbb9   : > { %10235 = vmatprep.subr.bf16.mxu0 %v10234_v35  ;;  %10335 = vmatprep.subr.bf16.mxu1 %v10234_v35 }
 0xbba   : > { %10237 = vmatpush3.bf16.msra.mxu0 %v10234_v35  ;;  %10343 = vmatpush3.bf16.msra.mxu1 %v10234_v35 }
 0xbbd   : > { %9272 = vmatmul.mubr.f32.vlgmr.msra.gmra.mrb[192].mxu0 %v9161_v42  ;;  %9284 = vmatmul.mubr.f32.vlgmr.msra.gmra.mrb[176].mxu1 %v9173_v6 }
 0xbbe   : > { %9274 = vmatprep.mubr.f32.mxu0 %v4411_v63  ;;  %9286 = vmatprep.mubr.f32.mxu1 %v4451_v19 }
 0xbc1   : > { %9275 = vmatmul.mubr.f32.gmra.mrb[194].mxu0 %v9164_v55  ;;  %9287 = vmatmul.mubr.f32.gmra.mrb[178].mxu1 %v9176_v20 }
 0xbc2   : > { %9277 = vmatprep.mubr.f32.mxu0 %v4421_v28  ;;  %9289 = vmatprep.mubr.f32.mxu1 %v4461_v37 }
 0xbc5   : > { %9278 = vmatmul.mubr.f32.gmra.mrb[196].mxu0 %v9167_v29  ;;  %9290 = vmatmul.mubr.f32.gmra.mrb[180].mxu1 %v9179_v49 }
 0xbc6   : > { %9280 = vmatprep.mubr.f32.mxu0 %v4431_v39  ;;  %9292 = vmatprep.mubr.f32.mxu1 %v4471_v48 }
 0xbc9   : > { %9281 = vmatmul.mubr.f32.gmra.mrb[198].mxu0 %v9170_v33  ;;  %9293 = vmatmul.mubr.f32.gmra.mrb[182].mxu1 %v9182_v41 }
 0xc50   : > { %v11794_v4 = vpop.f32.mrb[176].mxu0 }
 0xc51   : > { %v4546_v22 = vpop.f32.mrb[177].mxu0 }
 0xc52   : > { %9299 = vmatprep.mubr.msk.f32.mxu0 %vm4778_vm3, %v4546_v22 }
 0xc54   : > { %v9220_v44 = vpop.f32.mrb[178].mxu0 }
 0xc55   : > { %v4556_v26 = vpop.f32.mrb[179].mxu0 }
 0xc56   : > { %v10416_v51 = vpack.i.bf16 %v9220_v44, %v4556_v26 }
 0xc58   : > { %10417 = vrot.lane.b32.xlu0 %v10416_v51, %s10523_s28  ;;  %v9223_v47 = vpop.f32.mrb[180].mxu0 }
 0xc59   : > { %v4566_v25 = vpop.f32.mrb[181].mxu0 }
 0xc5a   : > { %4862 = vrot.lane.b32.xlu1 %v4566_v25, %s10524_s29 }
 0xc5c   : > { %4864 = vrot.lane.b32.xlu0 %v9223_v47, %s10524_s29  ;;  %v9226_v46 = vpop.f32.mrb[182].mxu0 }
 0xc5d   : > { %v4576_v30 = vpop.f32.mrb[183].mxu0 }
 0xc5e   : > { %v10421_v21 = vpack.i.bf16 %v9226_v46, %v4576_v30 }
 0xc60   : > { %10422 = vrot.lane.b32.xlu0 %v10421_v21, %s10525_s30  ;;  %v9229_v2 = vpop.f32.mrb[184].mxu0 }
 0xc61   : > { %v4586_v27 = vpop.f32.mrb[185].mxu0 }
 0xc64   : > { %4955 = vrot.lane.b32.xlu0 %v4586_v27, %s10526_s5  ;;  %v9232_v40 = vpop.f32.mrb[186].mxu0 }
 0xc65   : > { %v4596_v5 = vpop.f32.mrb[187].mxu0 }
 0xc66   : > { %v10431_v36 = vpack.i.bf16 %v9232_v40, %v4596_v5 }
 0xc68   : > { %10432 = vrot.lane.b32.xlu0 %v10431_v36, %s10527_s6  ;;  %v9235_v12 = vpop.f32.mrb[188].mxu0 }
 0xc69   : > { %v4606_v61 = vpop.f32.mrb[189].mxu0 }
 0xc6c   : > { %5050 = vrot.lane.b32.xlu0 %v9235_v12, %s10528_s7  ;;  %v9238_v32 = vpop.f32.mrb[190].mxu0 }
 0xc6d   : > { %v4616_v15 = vpop.f32.mrb[191].mxu0 }
 0xc6e   : > { %v10436_v45 = vpack.i.bf16 %v9238_v32, %v4616_v15 }
 0xc90   : > { %v11804_v52 = vpop.f32.mrb[192].mxu0  ;;  %v9285_v59 = vpop.f32.mrb[176].mxu1 }
 0xc91   : > { %v11806_v62 = vpop.f32.mrb[193].mxu0  ;;  %v4731_v58 = vpop.f32.mrb[177].mxu1 }
 0xc94   : > { %v9276_v31 = vpop.f32.mrb[194].mxu0  ;;  %v9288_v1 = vpop.f32.mrb[178].mxu1 }
 0xc95   : > { %v4701_v11 = vpop.f32.mrb[195].mxu0  ;;  %v4741_v8 = vpop.f32.mrb[179].mxu1 }
 0xc96   : > { %v10441_v9 = vpack.i.bf16 %v9276_v31, %v4701_v11  ;;  %v10451_v57 = vpack.i.bf16 %v9288_v1, %v4741_v8 }
 0xc98   : > { %v9291_v54 = vpop.f32.mrb[180].mxu1  ;;  %10442 = vrot.lane.b32.xlu0 %v10441_v9, %s10523_s28  ;;  %v9279_v14 = vpop.f32.mrb[196].mxu0  ;;  %s189_s28 = scalar_lea.vmem [#allocation2], %s188_s20 }
 0xc99   : > { %v4711_v13 = vpop.f32.mrb[197].mxu0  ;;  %v4751_v50 = vpop.f32.mrb[181].mxu1 }
 0xc9c   : > { %v9294_v56 = vpop.f32.mrb[182].mxu1  ;;  %4957 = vrot.lane.b32.xlu0 %v9229_v2, %s10526_s5  ;;  %v9282_v3 = vpop.f32.mrb[198].mxu0 }
 0xc9d   : > { %v4721_v18 = vpop.f32.mrb[199].mxu0  ;;  %v4761_v17 = vpop.f32.mrb[183].mxu1 }
 0xc9e   : > { %v10446_v10 = vpack.i.bf16 %v9282_v3, %v4721_v18  ;;  %v10426_v53 = vpack.i.bf16 %v9294_v56, %v4761_v17 }
 0xca0   : > { %10427 = vrot.lane.b32.xlu1 %v10426_v53, %s10529_s8  ;;  %5416 = vrot.lane.b32.xlu0 %v4751_v50, %s10528_s7 }
 0xca4   : > { %5048 = vrot.lane.b32.xlu1 %v4606_v61, %s10528_s7  ;;  %5323 = vrot.lane.b32.xlu0 %v4731_v58, %s10526_s5 }
 0xca8   : > { %10437 = vrot.lane.b32.xlu1 %v10436_v45, %s10529_s8 }
 0xcac   : > { %5230 = vrot.lane.b32.xlu1 %v4711_v13, %s10524_s29 }
 0xcb0   : > { %10447 = vrot.lane.b32.xlu1 %v10446_v10, %s10525_s30 }
 0xcb4   : > { %5232 = vrot.lane.b32.xlu1 %v9279_v14, %s10524_s29  ;;  %s6858_s29 = sshll.u32 %s189_s28, 4  ;;  %s11965_s29 = int_to_ptr.vmem [resolvable:$true] %s6858_s29 }
 0xcb5   : > { %s10456_s8 = scalar_lea.vmem %s11965_s29, 16  ;;  %p10463_p0 = scmp.lt.s32.totalorder %s11965_s29, %s10461_s9 }
 0xcb6   : > { %p10457_p11 = scmp.ne.s32.totalorder %s11965_s29, %s10456_s8  ;;  %p10464_p1 = scmp.lt.s32.totalorder %s10462_s10, %s10456_s8 }
 0xcb8   : > { %10452 = vrot.lane.b32.xlu1 %v10451_v57, %s10527_s6  ;;  %s11963_s6 = scalar_lea.hbm %s12009_s4, %s7089_s27  ;;  %p10458_p12 = pnand %p10457_p11, %p10596_p5 }
 0xcb9   : > { %p10465_p2 = por %p10464_p1, %p10463_p0 }
 0xcba   : > { %p10459_p13 = pneg %p10458_p12 }
 0xcbc   : > { %5418 = vrot.lane.b32.xlu1 %v9291_v54, %s10528_s7  ;;  %s6846_s7 = scalar_lea.sflag [#allocation3], %s188_s20  ;;  %p10466_p3 = pnand %p10465_p2, %p10459_p13 }
 0xcc0   : > { %5325 = vrot.lane.b32.xlu1 %v9285_v59, %s10526_s5 }
 0xcca   : > { %v10418_v42 = vpop.permute.xlu0 %10417 }
 0xccb   : > { %v10420_v24 = vunpack.i.h.bf16 %v10418_v42  ;;  %v10419_v23 = vunpack.i.l.bf16 %v10418_v42 }
 0xccc   : > { %v4863_v55 = vpop.permute.xlu1 %4862 }
 0xccd   : > { %v10238_v63 = vpack.c.bf16 %v10420_v24, %v10419_v23  ;;  %9306 = vmatprep.mubr.msk.f32.mxu1 %vm4778_vm3, %v4863_v55 }
 0xcce   : > { %v4865_v16 = vpop.permute.xlu0 %4864 }
 0xccf   : > { %10239 = vmatprep.subr.bf16.mxu0 %v10238_v63 }
 0xcd0   : > { %10241 = vmatpush3.bf16.msra.mxu0 %v10238_v63 }
 0xcd2   : > { %v10423_v29 = vpop.permute.xlu0 %10422 }
 0xcd3   : > { %v10425_v28 = vunpack.i.h.bf16 %v10423_v29  ;;  %v10424_v34 = vunpack.i.l.bf16 %v10423_v29  ;;  %9300 = vmatmul.mubr.msk.f32.vlgmr.msra.gmra.mrb[200].mxu0 %vm4778_vm3, %v11794_v4 }
 0xcd5   : > { %v10242_v33 = vpack.c.bf16 %v10425_v28, %v10424_v34 }
 0xcd6   : > { %v4956_v39 = vpop.permute.xlu0 %4955 }
 0xcd7   : > { %10243 = vmatprep.subr.bf16.mxu1 %v10242_v33  ;;  %9313 = vmatprep.mubr.msk.f32.mxu0 %vm4778_vm3, %v4956_v39  ;;  %v6075_v39 = vld [vmem:[%s12007_s2] sm:$0xff] }
 0xcd8   : > { %10245 = vmatpush3.bf16.msra.mxu1 %v10242_v33 }
 0xcda   : > { %v10433_v38 = vpop.permute.xlu0 %10432 }
 0xcdb   : > { %v10435_v6 = vunpack.i.h.bf16 %v10433_v38  ;;  %v10434_v60 = vunpack.i.l.bf16 %v10433_v38  ;;  %9307 = vmatmul.mubr.msk.f32.vlgmr.msra.gmra.mrb[184].mxu1 %vm4778_vm3, %v4865_v16  ;;  %v6076_v38 = vld [vmem:[%s12007_s2 + $0x8] sm:$0xff] }
 0xcdd   : > { %v10246_v0 = vpack.c.bf16 %v10435_v6, %v10434_v60  ;;  %v10530_v6 = vmov 0.0|0.0   ;;  %v10299_v60 = vpack.c.bf16 %v6076_v38, %v6075_v39 }
 0xcde   : > { %v5051_v20 = vpop.permute.xlu0 %5050 }
 0xcdf   : > { %10247 = vmatprep.subr.bf16.mxu0 %v10246_v0 }
 0xce0   : > { %10249 = vmatpush3.bf16.msra.mxu0 %v10246_v0 }
 0xd0a   : > { %v10443_v19 = vpop.permute.xlu0 %10442 }
 0xd0b   : > { %v10445_v43 = vunpack.i.h.bf16 %v10443_v19  ;;  %v10444_v49 = vunpack.i.l.bf16 %v10443_v19 }
 0xd0d   : > { %v10254_v37 = vpack.c.bf16 %v10445_v43, %v10444_v49 }
 0xd0e   : > { %v4958_v7 = vpop.permute.xlu0 %4957 }
 0xd0f   : > { %9314 = vmatmul.mubr.msk.f32.vlgmr.msra.gmra.mrb[202].mxu0 %vm4778_vm3, %v4958_v7  ;;  %10255 = vmatprep.subr.bf16.mxu0 %v10254_v37  ;;  %v7062_v7 = vld [vmem:[%s12007_s2 + $0x10] sm:$0xff] }
 0xd10   : > { %10257 = vmatpush3.bf16.msra.mxu0 %v10254_v37  ;;  %9327 = vmatprep.mubr.msk.f32.mxu0 %vm4778_vm3, %v11806_v62  ;;  %v12094_v37 = vmov 0.0  }
 0xd12   : > { %v10428_v41 = vpop.permute.xlu1 %10427  ;;  %v5417_v48 = vpop.permute.xlu0 %5416 }
 0xd13   : > { %9328 = vmatmul.mubr.msk.f32.vlgmr.msra.gmra.mrb[204].mxu0 %vm4778_vm3, %v11804_v52  ;;  %v10430_v46 = vunpack.i.h.bf16 %v10428_v41  ;;  %v10429_v30 = vunpack.i.l.bf16 %v10428_v41  ;;  %v7063_v41 = vld [vmem:[%s12007_s2 + $0x18] sm:$0xff] }
 0xd15   : > { %v10266_v5 = vpack.c.bf16 %v10430_v46, %v10429_v30 }
 0xd16   : > { %v5049_v35 = vpop.permute.xlu1 %5048  ;;  %v5324_v4 = vpop.permute.xlu0 %5323 }
 0xd17   : > { %9320 = vmatprep.mubr.msk.f32.mxu1 %vm4778_vm3, %v5049_v35  ;;  %9341 = vmatprep.mubr.msk.f32.mxu0 %vm4778_vm3, %v5324_v4 }
 0xd1a   : > { %v10438_v22 = vpop.permute.xlu1 %10437 }
 0xd1b   : > { %v10440_v44 = vunpack.i.h.bf16 %v10438_v22  ;;  %v10439_v26 = vunpack.i.l.bf16 %v10438_v22  ;;  %v7065_v22 = vld [vmem:[%s12007_s2 + $0x20] sm:$0xff] }
 0xd1d   : > { %v10250_v51 = vpack.c.bf16 %v10440_v44, %v10439_v26  ;;  %v7066_v44 = vld [vmem:[%s12007_s2 + $0x28] sm:$0xff] }
 0xd1e   : > { %v5231_v47 = vpop.permute.xlu1 %5230  ;;  %v10305_v26 = vpack.c.bf16 %v7066_v44, %v7065_v22 }
 0xd1f   : > { %10251 = vmatprep.subr.bf16.mxu1 %v10250_v51 }
 0xd20   : > { %10253 = vmatpush3.bf16.msra.mxu1 %v10250_v51 }
 0xd22   : > { %v10448_v25 = vpop.permute.xlu1 %10447 }
 0xd23   : > { %v10450_v21 = vunpack.i.h.bf16 %v10448_v25  ;;  %v10449_v2 = vunpack.i.l.bf16 %v10448_v25  ;;  %9321 = vmatmul.mubr.msk.f32.vlgmr.msra.gmra.mrb[186].mxu1 %vm4778_vm3, %v5051_v20  ;;  %v7069_v25 = vld [vmem:[%s12007_s2 + $0x38] sm:$0xff] }
 0xd24   : > { %9334 = vmatprep.mubr.msk.f32.mxu1 %vm4778_vm3, %v5231_v47  ;;  %v7068_v47 = vld [vmem:[%s12007_s2 + $0x30] sm:$0xff] }
 0xd25   : > { %v10258_v27 = vpack.c.bf16 %v10450_v21, %v10449_v2  ;;  %v10308_v46 = vpack.c.bf16 %v7069_v25, %v7068_v47  ;;  %v7071_v21 = vld [vmem:[%s12007_s2 + $0x40] sm:$0xff]  ;;  %v7072_v2 = vld [vmem:[%s12007_s2 + $0x48] sm:$0xff] }
 0xd26   : > { %v5233_v40 = vpop.permute.xlu1 %5232 }
 0xd27   : > { %10259 = vmatprep.subr.bf16.mxu1 %v10258_v27 }
 0xd28   : > { %10261 = vmatpush3.bf16.msra.mxu1 %v10258_v27  ;;  %v10311_v27 = vpack.c.bf16 %v7072_v2, %v7071_v21 }
 0xd29   : > { %10267 = vmatprep.subr.bf16.mxu1 %v10266_v5 }
 0xd2a   : > { %v10453_v36 = vpop.permute.xlu1 %10452 }
 0xd2b   : > { %v10455_v12 = vunpack.i.h.bf16 %v10453_v36  ;;  %v10454_v61 = vunpack.i.l.bf16 %v10453_v36  ;;  %9335 = vmatmul.mubr.msk.f32.vlgmr.msra.gmra.mrb[188].mxu1 %vm4778_vm3, %v5233_v40  ;;  %v7075_v36 = vld [vmem:[%s12007_s2 + $0x58] sm:$0xff] }
 0xd2c   : > { %10269 = vmatpush3.bf16.msra.mxu1 %v10266_v5  ;;  %9348 = vmatprep.mubr.msk.f32.mxu1 %vm4778_vm3, %v5417_v48  ;;  %v10302_v48 = vpack.c.bf16 %v7063_v41, %v7062_v7  ;;  %v7074_v5 = vld [vmem:[%s12007_s2 + $0x50] sm:$0xff] }
 0xd2d   : > { %v10262_v32 = vpack.c.bf16 %v10455_v12, %v10454_v61  ;;  %v10314_v12 = vpack.c.bf16 %v7075_v36, %v7074_v5 }
 0xd2e   : > { %v5419_v15 = vpop.permute.xlu1 %5418 }
 0xd2f   : > { %10263 = vmatprep.subr.bf16.mxu0 %v10262_v32  ;;  %9349 = vmatmul.mubr.msk.f32.vlgmr.msra.gmra.mrb[190].mxu1 %vm4778_vm3, %v5419_v15  ;;  %v7078_v15 = vld [vmem:[%s12007_s2 + $0x68] sm:$0xff] }
 0xd30   : > { %10265 = vmatpush3.bf16.msra.mxu0 %v10262_v32  ;;  %v7077_v32 = vld [vmem:[%s12007_s2 + $0x60] sm:$0xff] }
 0xd32   : > { %v5326_v45 = vpop.permute.xlu1 %5325 }
 0xd33   : > { %9342 = vmatmul.mubr.msk.f32.vlgmr.msra.gmra.mrb[206].mxu0 %vm4778_vm3, %v5326_v45  ;;  %v10317_v45 = vpack.c.bf16 %v7078_v15, %v7077_v32 }
 0xda6   : > { %v9301_v52 = vpop.f32.mrb[200].mxu0 }
 0xda7   : > { %v4851_v59 = vpop.f32.mrb[201].mxu0 }
 0xda8   : > { %9355 = vmatprep.mubr.msk.f32.mxu0 %vm4778_vm3, %v4851_v59  ;;  %v7080_v59 = vld [vmem:[%s12007_s2 + $0x70] sm:$0xff] }
 0xdae   : > { %v9308_v62 = vpop.f32.mrb[184].mxu1 }
 0xdaf   : > { %v4944_v58 = vpop.f32.mrb[185].mxu1 }
 0xdb0   : > { %v10270_v31 = vpack.c.bf16 %v9308_v62, %v4944_v58  ;;  %v7081_v62 = vld [vmem:[%s12007_s2 + $0x78] sm:$0xff] }
 0xdb1   : > { %v10320_v58 = vpack.c.bf16 %v7081_v62, %v7080_v59 }
 0xdb2   : > { %10271 = vmatprep.subr.bf16.mxu0 %v10270_v31 }
 0xdb3   : > { %10273 = vmatpush3.bf16.msra.mxu0 %v10270_v31 }
 0xdb6   : > { %9356 = vmatmul.mubr.msk.f32.vlgmr.msra.gmra.mrb[208].mxu0 %vm4778_vm3, %v9301_v52 }
 0xde2   : > { %v9315_v1 = vpop.f32.mrb[202].mxu0 }
 0xde3   : > { %v5037_v11 = vpop.f32.mrb[203].mxu0 }
 0xde4   : > { %9362 = vmatprep.mubr.msk.f32.mxu1 %vm4778_vm3, %v5037_v11  ;;  %v7084_v11 = vld [vmem:[%s12007_s2 + $0x88] sm:$0xff] }
 0xde6   : > { %v9329_v8 = vpop.f32.mrb[204].mxu0 }
 0xde7   : > { %v5219_v9 = vpop.f32.mrb[205].mxu0 }
 0xde8   : > { %9369 = vmatprep.mubr.msk.f32.mxu0 %vm4778_vm3, %v5219_v9 }
 0xdf6   : > { %v9322_v57 = vpop.f32.mrb[186].mxu1 }
 0xdf7   : > { %v5130_v54 = vpop.f32.mrb[187].mxu1 }
 0xdf8   : > { %v10274_v14 = vpack.c.bf16 %v9322_v57, %v5130_v54  ;;  %v7086_v57 = vld [vmem:[%s12007_s2 + $0x90] sm:$0xff]  ;;  %v7087_v54 = vld [vmem:[%s12007_s2 + $0x98] sm:$0xff] }
 0xdfa   : > { %10275 = vmatprep.subr.bf16.mxu1 %v10274_v14 }
 0xdfb   : > { %10277 = vmatpush3.bf16.msra.mxu1 %v10274_v14  ;;  %v10326_v14 = vpack.c.bf16 %v7087_v54, %v7086_v57 }
 0xdfe   : > { %v9336_v13 = vpop.f32.mrb[188].mxu1  ;;  %9363 = vmatmul.mubr.msk.f32.vlgmr.msra.gmra.mrb[192].mxu1 %vm4778_vm3, %v9315_v1  ;;  %v7083_v1 = vld [vmem:[%s12007_s2 + $0x80] sm:$0xff] }
 0xdff   : > { %v5312_v50 = vpop.f32.mrb[189].mxu1 }
 0xe00   : > { %v10278_v56 = vpack.c.bf16 %v9336_v13, %v5312_v50  ;;  %v6074_v50 = vld [vmem:[%s12008_s3] sm:$0x1] }
 0xe02   : > { %v9350_v3 = vpop.f32.mrb[190].mxu1  ;;  %10279 = vmatprep.subr.bf16.mxu0 %v10278_v56 }
 0xe03   : > { %v5498_v18 = vpop.f32.mrb[191].mxu1  ;;  %10281 = vmatpush3.bf16.msra.mxu0 %v10278_v56 }
 0xe04   : > { %v10282_v17 = vpack.c.bf16 %v9350_v3, %v5498_v18 }
 0xe06   : > { %v9343_v10 = vpop.f32.mrb[206].mxu0  ;;  %9370 = vmatmul.mubr.msk.f32.vlgmr.msra.gmra.mrb[210].mxu0 %vm4778_vm3, %v9329_v8  ;;  %10283 = vmatprep.subr.bf16.mxu1 %v10282_v17  ;;  %v10323_v8 = vpack.c.bf16 %v7084_v11, %v7083_v1 }
 0xe07   : > { %v5405_v53 = vpop.f32.mrb[207].mxu0  ;;  %10285 = vmatpush3.bf16.msra.mxu1 %v10282_v17 }
 0xe08   : > { %9376 = vmatprep.mubr.msk.f32.mxu1 %vm4778_vm3, %v5405_v53 }
 0xe0a   : > { %9377 = vmatmul.mubr.msk.f32.vlgmr.msra.gmra.mrb[194].mxu1 %vm4778_vm3, %v9343_v10 }
 0xe89   : > { %v9357_v42 = vpop.f32.mrb[208].mxu0 }
 0xe8a   : > { %v5579_v24 = vpop.f32.mrb[209].mxu0 }
 0xe8b   : > { %9383 = vmatprep.mubr.msk.f32.mxu0 %vm4778_vm3, %v5579_v24 }
 0xed1   : > { %v9364_v23 = vpop.f32.mrb[192].mxu1 }
 0xed2   : > { %v5660_v55 = vpop.f32.mrb[193].mxu1 }
 0xed3   : > { %v10286_v63 = vpack.c.bf16 %v9364_v23, %v5660_v55 }
 0xed5   : > { %10287 = vmatprep.subr.bf16.mxu0 %v10286_v63 }
 0xed6   : > { %10289 = vmatpush3.bf16.msra.mxu0 %v10286_v63 }
 0xed9   : > { %v9371_v16 = vpop.f32.mrb[210].mxu0  ;;  %9384 = vmatmul.mubr.msk.f32.vlgmr.msra.gmra.mrb[212].mxu0 %vm4778_vm3, %v9357_v42 }
 0xeda   : > { %v5741_v29 = vpop.f32.mrb[211].mxu0 }
 0xedb   : > { %9390 = vmatprep.mubr.msk.f32.mxu1 %vm4778_vm3, %v5741_v29 }
 0xedd   : > { %v9378_v28 = vpop.f32.mrb[194].mxu1 }
 0xede   : > { %v5822_v34 = vpop.f32.mrb[195].mxu1 }
 0xedf   : > { %v10290_v33 = vpack.c.bf16 %v9378_v28, %v5822_v34 }
 0xee1   : > { %10291 = vmatprep.subr.bf16.mxu1 %v10290_v33 }
 0xee2   : > { %10293 = vmatpush3.bf16.msra.mxu1 %v10290_v33 }
 0xee3   : > { %10298 = vmatprep.subr.bf16.mxu1 %v10530_v6 }
 0xee5   : > { %9391 = vmatmul.mubr.msk.f32.vlgmr.msra.gmra.mrb[196].mxu1 %vm4778_vm3, %v9371_v16 }
 0xee6   : > { %10300 = vmatpush3.bf16.msra.mxu1 %v10299_v60  ;;  %9404 = vmatprep.mubr.msk.f32.mxu1 %vm10531_vm6, %v12094_v37 }
 0xee7   : > { %10301 = vmatprep.subr.bf16.mxu1 %v10530_v6 }
 0xfac   : > { %v9385_v0 = vpop.f32.mrb[212].mxu0 }
 0xfad   : > { %v5903_v20 = vpop.f32.mrb[213].mxu0 }
 0xfae   : > { %9397 = vmatprep.mubr.msk.f32.mxu0 %vm4778_vm3, %v5903_v20 }
 0xfb8   : > { %v9392_v19 = vpop.f32.mrb[196].mxu1 }
 0xfb9   : > { %v5984_v43 = vpop.f32.mrb[197].mxu1 }
 0xfba   : > { %v10294_v49 = vpack.c.bf16 %v9392_v19, %v5984_v43 }
 0xfbc   : > { %10295 = vmatprep.subr.bf16.mxu0 %v10294_v49 }
 0xfbd   : > { %10297 = vmatpush3.bf16.msra.mxu0 %v10294_v49 }
 0xfc0   : > { %9398 = vmatmul.mubr.msk.f32.vlgmr.msra.gmra.mrb[214].mxu0 %vm4778_vm3, %v9385_v0 }
0x1093   : > { %v11867_v35 = vpop.f32.mrb[214].mxu0 }
0x1094   : > { %v6065_v4 = vpop.f32.mrb[215].mxu0  ;;  %v6770_v13 = vrot.slane %v11867_v35, 1 }
0x1095   : > { %9405 = vmatmul.mubr.msk.f32.vlgmr.msra.gmra.mrb[198].mxu1 %vm4778_vm3, %v6065_v4  ;;  %v6154_v51 = vrot.slane %v6065_v4, 1  ;;  %v6231_v30 = vrot.slane %v6065_v4, 2  ;;  %v6308_v40 = vrot.slane %v6065_v4, 3  ;;  %v6385_v61 = vrot.slane %v6065_v4, 4 }
0x1096   : > { %10303 = vmatpush3.bf16.msra.mxu1 %v10302_v48  ;;  %9411 = vmatprep.mubr.msk.f32.mxu1 %vm10531_vm6, %v12094_v37  ;;  %v6462_v52 = vrot.slane %v6065_v4, 5  ;;  %v6539_v31 = vrot.slane %v6065_v4, 6  ;;  %v6616_v9 = vrot.slane %v6065_v4, 7 }
0x1097   : > { %10304 = vmatprep.subr.bf16.mxu1 %v10530_v6 }
0x109d   : > { %9412 = vmatmul.mubr.msk.f32.vlgmr.msra.gmra.mrb[198].mxu1 %vm4778_vm3, %v6154_v51 }
0x109e   : > { %10306 = vmatpush3.bf16.msra.mxu1 %v10305_v26  ;;  %9418 = vmatprep.mubr.msk.f32.mxu1 %vm10531_vm6, %v12094_v37 }
0x109f   : > { %10307 = vmatprep.subr.bf16.mxu1 %v10530_v6 }
0x10a5   : > { %9419 = vmatmul.mubr.msk.f32.vlgmr.msra.gmra.mrb[198].mxu1 %vm4778_vm3, %v6231_v30 }
0x10a6   : > { %10309 = vmatpush3.bf16.msra.mxu1 %v10308_v46  ;;  %9425 = vmatprep.mubr.msk.f32.mxu1 %vm10531_vm6, %v12094_v37 }
0x10a7   : > { %10310 = vmatprep.subr.bf16.mxu1 %v10530_v6 }
0x10ad   : > { %9426 = vmatmul.mubr.msk.f32.vlgmr.msra.gmra.mrb[198].mxu1 %vm4778_vm3, %v6308_v40 }
0x10ae   : > { %10312 = vmatpush3.bf16.msra.mxu1 %v10311_v27  ;;  %9432 = vmatprep.mubr.msk.f32.mxu1 %vm10531_vm6, %v12094_v37 }
0x10af   : > { %10313 = vmatprep.subr.bf16.mxu1 %v10530_v6 }
0x10b5   : > { %9433 = vmatmul.mubr.msk.f32.vlgmr.msra.gmra.mrb[198].mxu1 %vm4778_vm3, %v6385_v61 }
0x10b6   : > { %10315 = vmatpush3.bf16.msra.mxu1 %v10314_v12  ;;  %9439 = vmatprep.mubr.msk.f32.mxu1 %vm10531_vm6, %v12094_v37 }
0x10b7   : > { %10316 = vmatprep.subr.bf16.mxu1 %v10530_v6 }
0x10bd   : > { %9440 = vmatmul.mubr.msk.f32.vlgmr.msra.gmra.mrb[198].mxu1 %vm4778_vm3, %v6462_v52 }
0x10be   : > { %10318 = vmatpush3.bf16.msra.mxu1 %v10317_v45  ;;  %9446 = vmatprep.mubr.msk.f32.mxu1 %vm10531_vm6, %v12094_v37 }
0x10bf   : > { %10319 = vmatprep.subr.bf16.mxu1 %v10530_v6 }
0x10c5   : > { %9447 = vmatmul.mubr.msk.f32.vlgmr.msra.gmra.mrb[198].mxu1 %vm4778_vm3, %v6539_v31 }
0x10c6   : > { %10321 = vmatpush3.bf16.msra.mxu1 %v10320_v58  ;;  %9453 = vmatprep.mubr.msk.f32.mxu1 %vm10531_vm6, %v12094_v37 }
0x10c7   : > { %10322 = vmatprep.subr.bf16.mxu1 %v10530_v6 }
0x10cd   : > { %9454 = vmatmul.mubr.msk.f32.vlgmr.msra.gmra.mrb[198].mxu1 %vm4778_vm3, %v6616_v9 }
0x10ce   : > { %10324 = vmatpush3.bf16.msra.mxu1 %v10323_v8  ;;  %9460 = vmatprep.mubr.msk.f32.mxu1 %vm10531_vm6, %v12094_v37 }
0x10cf   : > { %10325 = vmatprep.subr.bf16.mxu1 %v10530_v6 }
0x10d5   : > { %9461 = vmatmul.mubr.msk.f32.vlgmr.msra.gmra.mrb[198].mxu1 %vm4778_vm3, %v11867_v35 }
0x10d6   : > { %10327 = vmatpush3.bf16.msra.mxu1 %v10326_v14  ;;  %9467 = vmatprep.mubr.msk.f32.mxu1 %vm10531_vm6, %v12094_v37 }
0x10dd   : > { %9468 = vmatmul.mubr.msk.f32.vlgmr.msra.gmra.mrb[198].mxu1 %vm4778_vm3, %v6770_v13 }
0x11b0   : > { %v6839_v56 = vpop.f32.mrb[198].mxu1 }
0x11b1   : > { %v10344_v3 = vadd.f32 %v6839_v56, %v6074_v50  ;;  %v9469_v18 = vpop.f32.mrb[199].mxu1 }
0x11b3   : > { %6844 = vst [vmem:[%s189_s28] sm:$0x1] %v10344_v3 }
0x11b4   : > { %10469 = shalt.err (!%p10466_p3)
}
0x11b5   : > { %s10470_s11 = scalar_lea.hbm %s11963_s6, 16  ;;  %s10474_s14 = scalar_lea.hbm %s12009_s4, 32 }
0x11b6   : > { %p10471_p4 = scmp.ne.s32.totalorder %s11963_s6, %s10470_s11  ;;  %p10475_p9 = scmp.lt.u32.totalorder %s11963_s6, %s12009_s4 }
0x11b7   : > { %p10476_p10 = scmp.lt.u32.totalorder %s10474_s14, %s10470_s11  ;;  %p10478_p12 = scmp.lt.u32.totalorder %s10470_s11, %s11963_s6 }
0x11b8   : > { %p10472_p7 = pnand %p10471_p4, %p10596_p5 }
0x11b9   : > { %p10477_p11 = por %p10476_p10, %p10475_p9 }
0x11ba   : > { %p10473_p8 = pneg %p10472_p7 }
0x11bb   : > { %p10479_p13 = por %p10478_p12, %p10477_p11 }
0x11bd   : > { %p10480_p0 = pnand %p10479_p13, %p10473_p8 }
0x11bf   : > { %10483 = shalt.err (!%p10480_p0)
}
0x11c0   : > { %10363 = dma.vmem_to_hbm [thread:$0]  (%p10596_p5), %s11965_s29, 16, %s11963_s6, %s6846_s7  }
0x11c1 PF: > { %p10369_p1 = scmp.ge.s32.totalorder %s10518_s18, 2  ;;  %s6870_s23 = sand.u32 1, %s10506_s15  }
0x11c2   : > { %s6871_s27 = scalar_lea.sflag [#allocation3], %s6870_s23 }
0x11c3   : > { %p10366_p2 = pnand %p10369_p1, %p10600_p6 }
0x11c5   : > { %10501 = dma.done.wait (!%p10366_p2), %s6871_s27, 16  }
0x11c6   : > { %10503 = vsyncadd (!%p10366_p2), %s6871_s27, 4294967280  ;;  %p14_p3 = scmp.ge.s32.totalorder %s10583_s21, 4   ;;  %s12095_s15 = smov %s10510_s16 }
0x11c7   : > { %s12096_s16 = smov %s10514_s17  ;;  %s12097_s17 = smov %s10594_s24 }
0x11c8   : > { %s12098_s18 = smov %s10583_s21  ;;  %16 = sbr.rel (!%p14_p3) target bundleno = 3 (0x3), region = 84 }
0x11cf   :  { %6875 = vsyncpa [#allocation3], 1 }
0x11d0   :  { %6877 = vsyncpa [#allocation3 + $0x1], 1 }

</bundles_post_ra>
